<compile_context>
chip_gen: v5e
topology: v5e:2x2
jax: 0.10.0
libtpu: 0.0.40
codegen_flags: <defaults>
</compile_context>

<pallas_src>
import functools
import math

import jax
import jax.numpy as jnp
from jax.experimental import pallas as pl
from jax.experimental.pallas import tpu as pltpu

# ----------------------------- configuration -----------------------------
CFG = dict(
    num_classes=10,
    d_model=32,
    input_dim=16,
    d_ff=64,
    num_heads=4,
    num_encoder_layers=2,
    num_decoder_layers=2,
    max_length=8,
    pad_id=0,
    sos_id=1,
    eos_id=2,
    vgg_channels=(8, 16),   # scaled-down VGG extractor channels (orig 64/128)
)

NEG_INF = -1e9


# ----------------------------- in-kernel helpers -----------------------------
def _ln(x, g, b, eps=1e-5):
    mu = jnp.mean(x, axis=-1, keepdims=True)
    var = jnp.mean(jnp.square(x - mu), axis=-1, keepdims=True)
    return (x - mu) * jax.lax.rsqrt(var + eps) * g + b


def _mha(q, k, v, bias, num_heads, scale):
    """Multi-head scaled-dot-product attention on (rows, D) slabs, all in VMEM."""
    D = q.shape[-1]
    dh = D // num_heads
    outs = []
    for h in range(num_heads):
        qh = q[:, h * dh:(h + 1) * dh]
        kh = k[:, h * dh:(h + 1) * dh]
        vh = v[:, h * dh:(h + 1) * dh]
        s = jax.lax.dot_general(qh, kh, (((1,), (1,)), ((), ())),
                                preferred_element_type=jnp.float32)
        s = s * scale + bias
        s = s - jnp.max(s, axis=-1, keepdims=True)
        p = jnp.exp(s)
        p = p * pl.reciprocal(jnp.sum(p, axis=-1, keepdims=True), approx=True)
        outs.append(jnp.dot(p, vh, preferred_element_type=jnp.float32))
    return jnp.concatenate(outs, axis=-1)


# ----------------------------- Pallas kernels -----------------------------
def _conv_gemm_kernel(x_ref, w_ref, b_ref, o_ref):
    # im2col-GEMM with folded BatchNorm scale in w, BN bias in b, Hardtanh(0,20).
    y = jnp.dot(x_ref[...], w_ref[...], preferred_element_type=jnp.float32) + b_ref[...]
    o_ref[...] = jnp.clip(y, 0.0, 20.0)


def _inproj_kernel(x_ref, w_ref, b_ref, ln_ref, pe_ref, o_ref):
    # input projection + LayerNorm + positional-encoding add, fused.
    h = jnp.dot(x_ref[...], w_ref[...], preferred_element_type=jnp.float32) + b_ref[...]
    h = _ln(h, ln_ref[0:1, :], ln_ref[1:2, :])
    o_ref[...] = h + pe_ref[...]


def _enc_layer_kernel(len_ref, x_ref, ln_ref, wqkv_ref, bqkv_ref, wo_ref, bo_ref,
                      w1_ref, b1_ref, w2_ref, b2_ref, o_ref, *, num_heads):
    # Whole pre-LN encoder layer for one batch element, all residents in VMEM.
    x = x_ref[0]                                   # (Tq, D)
    Tq, D = x.shape
    scale = 1.0 / math.sqrt(D // num_heads)
    enc_len = len_ref[pl.program_id(0)]            # scalar from SMEM prefetch

    kpos = jax.lax.broadcasted_iota(jnp.int32, (Tq, Tq), 1)
    pad_bias = jnp.where(kpos < enc_len, 0.0, NEG_INF)

    # self-attention block
    h = _ln(x, ln_ref[0:1, :], ln_ref[1:2, :])
    qkv = jnp.dot(h, wqkv_ref[...], preferred_element_type=jnp.float32) + bqkv_ref[...]
    ctx = _mha(qkv[:, :D], qkv[:, D:2 * D], qkv[:, 2 * D:], pad_bias, num_heads, scale)
    x = x + jnp.dot(ctx, wo_ref[...], preferred_element_type=jnp.float32) + bo_ref[...]

    # feed-forward block
    h = _ln(x, ln_ref[2:3, :], ln_ref[3:4, :])
    h = jnp.maximum(
        jnp.dot(h, w1_ref[...], preferred_element_type=jnp.float32) + b1_ref[...], 0.0)
    h = jnp.dot(h, w2_ref[...], preferred_element_type=jnp.float32) + b2_ref[...]
    o_ref[0] = x + h


def _dec_layer_kernel(len_ref, x_ref, enc_ref, ln_ref,
                      wqkv_ref, bqkv_ref, wos_ref, bos_ref,
                      wqc_ref, bqc_ref, wkvc_ref, bkvc_ref, woc_ref, boc_ref,
                      w1_ref, b1_ref, w2_ref, b2_ref,
                      o_ref, *, num_heads):
    # Whole pre-LN decoder layer (masked self-attn + cross-attn + FFN) per batch elem.
    x = x_ref[0]                                   # (L, D)
    enc = enc_ref[0]                               # (Lk, D)
    L, D = x.shape
    Lk = enc.shape[0]
    scale = 1.0 / math.sqrt(D // num_heads)
    enc_len = len_ref[pl.program_id(0)]

    row = jax.lax.broadcasted_iota(jnp.int32, (L, L), 0)
    col = jax.lax.broadcasted_iota(jnp.int32, (L, L), 1)
    causal_bias = jnp.where(row >= col, 0.0, NEG_INF)
    kpos = jax.lax.broadcasted_iota(jnp.int32, (L, Lk), 1)
    cross_bias = jnp.where(kpos < enc_len, 0.0, NEG_INF)

    # masked self-attention
    h = _ln(x, ln_ref[0:1, :], ln_ref[1:2, :])
    qkv = jnp.dot(h, wqkv_ref[...], preferred_element_type=jnp.float32) + bqkv_ref[...]
    ctx = _mha(qkv[:, :D], qkv[:, D:2 * D], qkv[:, 2 * D:], causal_bias, num_heads, scale)
    x = x + jnp.dot(ctx, wos_ref[...], preferred_element_type=jnp.float32) + bos_ref[...]

    # cross-attention over encoder outputs
    h = _ln(x, ln_ref[2:3, :], ln_ref[3:4, :])
    q = jnp.dot(h, wqc_ref[...], preferred_element_type=jnp.float32) + bqc_ref[...]
    kv = jnp.dot(enc, wkvc_ref[...], preferred_element_type=jnp.float32) + bkvc_ref[...]
    ctx = _mha(q, kv[:, :D], kv[:, D:], cross_bias, num_heads, scale)
    x = x + jnp.dot(ctx, woc_ref[...], preferred_element_type=jnp.float32) + boc_ref[...]

    # feed-forward
    h = _ln(x, ln_ref[4:5, :], ln_ref[5:6, :])
    h = jnp.maximum(
        jnp.dot(h, w1_ref[...], preferred_element_type=jnp.float32) + b1_ref[...], 0.0)
    h = jnp.dot(h, w2_ref[...], preferred_element_type=jnp.float32) + b2_ref[...]
    o_ref[0] = x + h


def _head_kernel(x_ref, ln_ref, w_ref, o_ref):
    # final LayerNorm + Linear(no bias) + log_softmax, fused.
    h = _ln(x_ref[...], ln_ref[0:1, :], ln_ref[1:2, :])
    logits = jnp.dot(h, w_ref[...], preferred_element_type=jnp.float32)
    m = jnp.max(logits, axis=-1, keepdims=True)
    e = jnp.exp(logits - m)
    o_ref[...] = logits - m - jnp.log(jnp.sum(e, axis=-1, keepdims=True))


# ----------------------------- kernel wrappers -----------------------------
def conv_bn_hardtanh(x, p):
    """3x3 conv (stride 1, pad 1, no bias) + folded BN + Hardtanh(0, 20).
    x is channels-last (B, H, W, Cin); im2col layout is built in XLA (tiny),
    the GEMM + BN + clip run as one fused whole-array Pallas kernel."""
    B, H, W, Cin = x.shape
    Cout = p['w'].shape[0]
    scale = p['bn_g'] * jax.lax.rsqrt(p['bn_v'] + 1e-5)
    bias = (p['bn_b'] - p['bn_m'] * scale).reshape(1, Cout)
    wmat = p['w'].transpose(2, 3, 1, 0).reshape(9 * Cin, Cout) * scale[None, :]
    xp = jnp.pad(x, ((0, 0), (1, 1), (1, 1), (0, 0)))
    cols = [xp[:, kh:kh + H, kw:kw + W, :] for kh in range(3) for kw in range(3)]
    patches = jnp.concatenate(cols, axis=-1).reshape(B * H * W, 9 * Cin)
    out = pl.pallas_call(
        _conv_gemm_kernel,
        out_shape=jax.ShapeDtypeStruct((B * H * W, Cout), jnp.float32),
    )(patches, wmat, bias)
    return out.reshape(B, H, W, Cout)


def maxpool2(x):
    B, H, W, C = x.shape
    return x.reshape(B, H // 2, 2, W // 2, 2, C).max(axis=(2, 4))


def encoder_layer(x, enc_len, lp, num_heads):
    B, Tq, D = x.shape
    d_ff = lp['ff']['w1'].shape[1]
    kern = functools.partial(_enc_layer_kernel, num_heads=num_heads)

    def full(shape):
        return pl.BlockSpec(shape, lambda b, lens: (0,) * len(shape))

    return pl.pallas_call(
        kern,
        out_shape=jax.ShapeDtypeStruct((B, Tq, D), jnp.float32),
        grid_spec=pltpu.PrefetchScalarGridSpec(
            num_scalar_prefetch=1,
            grid=(B,),
            in_specs=[
                pl.BlockSpec((1, Tq, D), lambda b, lens: (b, 0, 0)),
                full((4, D)),
                full((D, 3 * D)), full((1, 3 * D)),
                full((D, D)), full((1, D)),
                full((D, d_ff)), full((1, d_ff)),
                full((d_ff, D)), full((1, D)),
            ],
            out_specs=pl.BlockSpec((1, Tq, D), lambda b, lens: (b, 0, 0)),
        ),
        compiler_params=pltpu.CompilerParams(dimension_semantics=("parallel",)),
    )(enc_len, x, lp['ln'],
      lp['attn']['wqkv'], lp['attn']['bqkv'], lp['attn']['wo'], lp['attn']['bo'],
      lp['ff']['w1'], lp['ff']['b1'], lp['ff']['w2'], lp['ff']['b2'])


def decoder_layer(x, enc_out, enc_len, lp, num_heads):
    B, L, D = x.shape
    Lk = enc_out.shape[1]
    d_ff = lp['ff']['w1'].shape[1]
    kern = functools.partial(_dec_layer_kernel, num_heads=num_heads)
    sa, ca, ff = lp['self_attn'], lp['cross_attn'], lp['ff']

    def full(shape):
        return pl.BlockSpec(shape, lambda b, lens: (0,) * len(shape))

    return pl.pallas_call(
        kern,
        out_shape=jax.ShapeDtypeStruct((B, L, D), jnp.float32),
        grid_spec=pltpu.PrefetchScalarGridSpec(
            num_scalar_prefetch=1,
            grid=(B,),
            in_specs=[
                pl.BlockSpec((1, L, D), lambda b, lens: (b, 0, 0)),
                pl.BlockSpec((1, Lk, D), lambda b, lens: (b, 0, 0)),
                full((6, D)),
                full((D, 3 * D)), full((1, 3 * D)), full((D, D)), full((1, D)),
                full((D, D)), full((1, D)), full((D, 2 * D)), full((1, 2 * D)),
                full((D, D)), full((1, D)),
                full((D, d_ff)), full((1, d_ff)), full((d_ff, D)), full((1, D)),
            ],
            out_specs=pl.BlockSpec((1, L, D), lambda b, lens: (b, 0, 0)),
        ),
        compiler_params=pltpu.CompilerParams(dimension_semantics=("parallel",)),
    )(enc_len, x, enc_out, lp['ln'],
      sa['wqkv'], sa['bqkv'], sa['wo'], sa['bo'],
      ca['wq'], ca['bq'], ca['wkv'], ca['bkv'], ca['wo'], ca['bo'],
      ff['w1'], ff['b1'], ff['w2'], ff['b2'])


def decoder_head(x, ln, fc_w):
    B, L, D = x.shape
    C = fc_w.shape[1]
    out = pl.pallas_call(
        _head_kernel,
        out_shape=jax.ShapeDtypeStruct((B * L, C), jnp.float32),
    )(x.reshape(B * L, D), ln, fc_w)
    return out.reshape(B, L, C)


# ----------------------------- model pieces -----------------------------
def positional_encoding(length, d_model):
    pos = jnp.arange(length, dtype=jnp.float32)[:, None]
    i = jnp.arange(d_model, dtype=jnp.float32)[None, :]
    angle = pos / jnp.power(10000.0, (2.0 * jnp.floor(i / 2.0)) / d_model)
    even = (jnp.arange(d_model)[None, :] % 2) == 0
    return jnp.where(even, jnp.sin(angle), jnp.cos(angle))


def encoder_forward(inputs, input_lengths, params):
    cfg = CFG
    d_model = cfg['d_model']
    B = inputs.shape[0]

    x = inputs[..., None]                              # (B, T, F, 1) channels-last
    x = conv_bn_hardtanh(x, params['conv'][0])
    x = conv_bn_hardtanh(x, params['conv'][1])
    x = maxpool2(x)
    x = conv_bn_hardtanh(x, params['conv'][2])
    x = conv_bn_hardtanh(x, params['conv'][3])
    x = maxpool2(x)                                    # (B, T/4, F/4, C2)
    _, Tq, Fq, C = x.shape
    x = x.transpose(0, 1, 3, 2).reshape(B * Tq, C * Fq)   # channel-major flatten

    pe = jnp.broadcast_to(positional_encoding(Tq, d_model)[None],
                          (B, Tq, d_model)).reshape(B * Tq, d_model)
    x = pl.pallas_call(
        _inproj_kernel,
        out_shape=jax.ShapeDtypeStruct((B * Tq, d_model), jnp.float32),
    )(x, params['in_w'], params['in_b'], params['in_ln'], pe)
    x = x.reshape(B, Tq, d_model)

    enc_len = (input_lengths // 4).astype(jnp.int32)   # VGG time subsampling
    for lp in params['enc_layers']:
        x = encoder_layer(x, enc_len, lp, cfg['num_heads'])
    return x, enc_len


def decoder_step(tokens, enc_out, enc_len, params, pe):
    cfg = CFG
    d_model = cfg['d_model']
    x = jnp.take(params['embed'], tokens, axis=0) * math.sqrt(d_model) + pe[None]
    for lp in params['dec_layers']:
        x = decoder_layer(x, enc_out, enc_len, lp, cfg['num_heads'])
    return decoder_head(x, params['fc_ln'], params['fc_w'])


def _speech_transformer_forward(inputs, input_lengths, params):
    """Greedy decode (teacher_forcing_ratio = 0.0). Returns (predictions, logits)."""
    cfg = CFG
    B = inputs.shape[0]
    L = cfg['max_length']
    C = cfg['num_classes']

    enc_out, enc_len = encoder_forward(inputs, input_lengths, params)

    pe = positional_encoding(L, cfg['d_model'])
    tokens0 = jnp.full((B, L), cfg['pad_id'], jnp.int32).at[:, 0].set(cfg['sos_id'])
    logits0 = jnp.zeros((B, L - 1, C), jnp.float32)

    def body(di, carry):
        tokens, logits_acc = carry
        # Full fixed-length decode; causal masking makes position di-1 depend
        # only on already-generated tokens, matching step-wise greedy decoding.
        log_probs = decoder_step(tokens, enc_out, enc_len, params, pe)   # (B, L, C)
        step = jax.lax.dynamic_slice_in_dim(log_probs, di - 1, 1, axis=1)  # (B, 1, C)
        nxt = jnp.argmax(step[:, 0, :], axis=-1).astype(jnp.int32)
        tokens = jax.lax.dynamic_update_slice_in_dim(tokens, nxt[:, None], di, axis=1)
        logits_acc = jax.lax.dynamic_update_slice_in_dim(logits_acc, step, di - 1, axis=1)
        return tokens, logits_acc

    _, logits = jax.lax.fori_loop(1, L, body, (tokens0, logits0))
    predictions = jnp.argmax(logits, axis=-1)
    return predictions, logits


speech_transformer_forward = jax.jit(_speech_transformer_forward)


# ----------------------------- parameter init -----------------------------
def init_params(key):
    cfg = CFG
    keys = iter(jax.random.split(key, 256))
    nk = lambda: next(keys)
    D, d_ff = cfg['d_model'], cfg['d_ff']
    c1, c2 = cfg['vgg_channels']

    def dense(fin, fout):
        return jax.random.normal(nk(), (fin, fout), jnp.float32) * 0.02

    def conv_p(cin, cout):
        return dict(
            w=jax.random.normal(nk(), (cout, cin, 3, 3), jnp.float32) * 0.05,
            bn_g=jnp.ones((cout,), jnp.float32),
            bn_b=jnp.zeros((cout,), jnp.float32),
            bn_m=jnp.zeros((cout,), jnp.float32),
            bn_v=jnp.ones((cout,), jnp.float32),
        )

    def ln_stack(n):  # rows: [g, b, g, b, ...]
        rows = []
        for _ in range(n):
            rows.append(jnp.ones((D,), jnp.float32))
            rows.append(jnp.zeros((D,), jnp.float32))
        return jnp.stack(rows, axis=0)

    def self_attn_p():
        return dict(
            wqkv=jnp.concatenate([dense(D, D) for _ in range(3)], axis=1),
            bqkv=jnp.zeros((1, 3 * D), jnp.float32),
            wo=dense(D, D), bo=jnp.zeros((1, D), jnp.float32))

    def cross_attn_p():
        return dict(
            wq=dense(D, D), bq=jnp.zeros((1, D), jnp.float32),
            wkv=jnp.concatenate([dense(D, D) for _ in range(2)], axis=1),
            bkv=jnp.zeros((1, 2 * D), jnp.float32),
            wo=dense(D, D), bo=jnp.zeros((1, D), jnp.float32))

    def ff_p():
        return dict(w1=dense(D, d_ff), b1=jnp.zeros((1, d_ff), jnp.float32),
                    w2=dense(d_ff, D), b2=jnp.zeros((1, D), jnp.float32))

    conv = [conv_p(1, c1), conv_p(c1, c1), conv_p(c1, c2), conv_p(c2, c2)]
    feat = c2 * (cfg['input_dim'] // 4)

    enc_layers = [dict(ln=ln_stack(2), attn=self_attn_p(), ff=ff_p())
                  for _ in range(cfg['num_encoder_layers'])]
    dec_layers = [dict(ln=ln_stack(3), self_attn=self_attn_p(),
                       cross_attn=cross_attn_p(), ff=ff_p())
                  for _ in range(cfg['num_decoder_layers'])]

    embed = jax.random.normal(nk(), (cfg['num_classes'], D), jnp.float32) * 0.02
    embed = embed.at[cfg['pad_id']].set(0.0)          # padding_idx row zeroed

    return dict(
        conv=conv,
        in_w=dense(feat, D), in_b=jnp.zeros((1, D), jnp.float32), in_ln=ln_stack(1),
        enc_layers=enc_layers, dec_layers=dec_layers,
        embed=embed,
        fc_ln=ln_stack(1), fc_w=dense(D, cfg['num_classes']),
    )


# ----------------------------- main -----------------------------
if __name__ == "__main__":
    key = jax.random.PRNGKey(0)
    pkey, dkey = jax.random.split(key)
    params = init_params(pkey)

    B, T, D = 2, 16, CFG['input_dim']
    inputs = jax.random.normal(dkey, (B, T, D), dtype=jnp.float32)
    input_lengths = jnp.array([16, 12], dtype=jnp.int32)

    predictions, logits = speech_transformer_forward(inputs, input_lengths, params)
    jax.block_until_ready(predictions)
    jax.block_until_ready(logits)
    assert predictions.shape == (B, CFG['max_length'] - 1)
    assert logits.shape == (B, CFG['max_length'] - 1, CFG['num_classes'])
    print("KERNEL_OK")
</pallas_src>

<mosaic_0001>
module attributes {stable_mosaic.version = 11 : i64} {
  func.func @_conv_gemm_kernel(%arg0: memref<512x9xf32, #tpu.memory_space<vmem>>, %arg1: memref<9x8xf32, #tpu.memory_space<vmem>>, %arg2: memref<1x8xf32, #tpu.memory_space<vmem>>, %arg3: memref<512x8xf32, #tpu.memory_space<vmem>>) attributes {dimension_semantics = [], scalar_prefetch = 0 : i64, scratch_operands = 0 : i64, tpu.core_type = #tpu.core_type<tc>} {
    %c0 = arith.constant 0 : index
    %c0_0 = arith.constant 0 : index
    %0 = vector.load %arg0[%c0, %c0_0] : memref<512x9xf32, #tpu.memory_space<vmem>>, vector<512x9xf32>
    %c0_1 = arith.constant 0 : index
    %c0_2 = arith.constant 0 : index
    %1 = vector.load %arg1[%c0_1, %c0_2] : memref<9x8xf32, #tpu.memory_space<vmem>>, vector<9x8xf32>
    %cst = arith.constant dense<0.000000e+00> : vector<512x8xf32>
    %2 = tpu.matmul %0, %1, %cst {dimension_numbers = #tpu.dot_dimension_numbers<[1], [0], [0], [1], [0, 0, 1, 1], [], []>} : vector<512x9xf32>, vector<9x8xf32>, vector<512x8xf32> -> vector<512x8xf32>
    %c0_3 = arith.constant 0 : index
    %c0_4 = arith.constant 0 : index
    %3 = vector.load %arg2[%c0_3, %c0_4] : memref<1x8xf32, #tpu.memory_space<vmem>>, vector<1x8xf32>
    %4 = vector.broadcast %3 : vector<1x8xf32> to vector<512x8xf32>
    %5 = arith.addf %2, %4 : vector<512x8xf32>
    %cst_5 = arith.constant 0.000000e+00 : f32
    %cst_6 = arith.constant 2.000000e+01 : f32
    %6 = vector.broadcast %cst_5 : f32 to vector<512x8xf32>
    %7 = arith.maximumf %6, %5 : vector<512x8xf32>
    %8 = vector.broadcast %cst_6 : f32 to vector<512x8xf32>
    %9 = arith.minimumf %8, %7 : vector<512x8xf32>
    %c0_7 = arith.constant 0 : index
    %c0_8 = arith.constant 0 : index
    %10 = vector.load %arg3[%c0_7, %c0_8] : memref<512x8xf32, #tpu.memory_space<vmem>>, vector<512x8xf32>
    tpu.vector_store %arg3[%c0_7, %c0_8], %9 {strides = array<i32>} : memref<512x8xf32, #tpu.memory_space<vmem>>, vector<512x8xf32>,
    return
  }
}

module attributes {stable_mosaic.version = 11 : i64} {
  func.func @_conv_gemm_kernel(%arg0: memref<512x72xf32, #tpu.memory_space<vmem>>, %arg1: memref<72x8xf32, #tpu.memory_space<vmem>>, %arg2: memref<1x8xf32, #tpu.memory_space<vmem>>, %arg3: memref<512x8xf32, #tpu.memory_space<vmem>>) attributes {dimension_semantics = [], scalar_prefetch = 0 : i64, scratch_operands = 0 : i64, tpu.core_type = #tpu.core_type<tc>} {
    %c0 = arith.constant 0 : index
    %c0_0 = arith.constant 0 : index
    %0 = vector.load %arg0[%c0, %c0_0] : memref<512x72xf32, #tpu.memory_space<vmem>>, vector<512x72xf32>
    %c0_1 = arith.constant 0 : index
    %c0_2 = arith.constant 0 : index
    %1 = vector.load %arg1[%c0_1, %c0_2] : memref<72x8xf32, #tpu.memory_space<vmem>>, vector<72x8xf32>
    %cst = arith.constant dense<0.000000e+00> : vector<512x8xf32>
    %2 = tpu.matmul %0, %1, %cst {dimension_numbers = #tpu.dot_dimension_numbers<[1], [0], [0], [1], [0, 0, 1, 1], [], []>} : vector<512x72xf32>, vector<72x8xf32>, vector<512x8xf32> -> vector<512x8xf32>
    %c0_3 = arith.constant 0 : index
    %c0_4 = arith.constant 0 : index
    %3 = vector.load %arg2[%c0_3, %c0_4] : memref<1x8xf32, #tpu.memory_space<vmem>>, vector<1x8xf32>
    %4 = vector.broadcast %3 : vector<1x8xf32> to vector<512x8xf32>
    %5 = arith.addf %2, %4 : vector<512x8xf32>
    %cst_5 = arith.constant 0.000000e+00 : f32
    %cst_6 = arith.constant 2.000000e+01 : f32
    %6 = vector.broadcast %cst_5 : f32 to vector<512x8xf32>
    %7 = arith.maximumf %6, %5 : vector<512x8xf32>
    %8 = vector.broadcast %cst_6 : f32 to vector<512x8xf32>
    %9 = arith.minimumf %8, %7 : vector<512x8xf32>
    %c0_7 = arith.constant 0 : index
    %c0_8 = arith.constant 0 : index
    %10 = vector.load %arg3[%c0_7, %c0_8] : memref<512x8xf32, #tpu.memory_space<vmem>>, vector<512x8xf32>
    tpu.vector_store %arg3[%c0_7, %c0_8], %9 {strides = array<i32>} : memref<512x8xf32, #tpu.memory_space<vmem>>, vector<512x8xf32>,
    return
  }
}

module attributes {stable_mosaic.version = 11 : i64} {
  func.func @_conv_gemm_kernel(%arg0: memref<128x72xf32, #tpu.memory_space<vmem>>, %arg1: memref<72x16xf32, #tpu.memory_space<vmem>>, %arg2: memref<1x16xf32, #tpu.memory_space<vmem>>, %arg3: memref<128x16xf32, #tpu.memory_space<vmem>>) attributes {dimension_semantics = [], scalar_prefetch = 0 : i64, scratch_operands = 0 : i64, tpu.core_type = #tpu.core_type<tc>} {
    %c0 = arith.constant 0 : index
    %c0_0 = arith.constant 0 : index
    %0 = vector.load %arg0[%c0, %c0_0] : memref<128x72xf32, #tpu.memory_space<vmem>>, vector<128x72xf32>
    %c0_1 = arith.constant 0 : index
    %c0_2 = arith.constant 0 : index
    %1 = vector.load %arg1[%c0_1, %c0_2] : memref<72x16xf32, #tpu.memory_space<vmem>>, vector<72x16xf32>
    %cst = arith.constant dense<0.000000e+00> : vector<128x16xf32>
    %2 = tpu.matmul %0, %1, %cst {dimension_numbers = #tpu.dot_dimension_numbers<[1], [0], [0], [1], [0, 0, 1, 1], [], []>} : vector<128x72xf32>, vector<72x16xf32>, vector<128x16xf32> -> vector<128x16xf32>
    %c0_3 = arith.constant 0 : index
    %c0_4 = arith.constant 0 : index
    %3 = vector.load %arg2[%c0_3, %c0_4] : memref<1x16xf32, #tpu.memory_space<vmem>>, vector<1x16xf32>
    %4 = vector.broadcast %3 : vector<1x16xf32> to vector<128x16xf32>
    %5 = arith.addf %2, %4 : vector<128x16xf32>
    %cst_5 = arith.constant 0.000000e+00 : f32
    %cst_6 = arith.constant 2.000000e+01 : f32
    %6 = vector.broadcast %cst_5 : f32 to vector<128x16xf32>
    %7 = arith.maximumf %6, %5 : vector<128x16xf32>
    %8 = vector.broadcast %cst_6 : f32 to vector<128x16xf32>
    %9 = arith.minimumf %8, %7 : vector<128x16xf32>
    %c0_7 = arith.constant 0 : index
    %c0_8 = arith.constant 0 : index
    %10 = vector.load %arg3[%c0_7, %c0_8] : memref<128x16xf32, #tpu.memory_space<vmem>>, vector<128x16xf32>
    tpu.vector_store %arg3[%c0_7, %c0_8], %9 {strides = array<i32>} : memref<128x16xf32, #tpu.memory_space<vmem>>, vector<128x16xf32>,
    return
  }
}

module attributes {stable_mosaic.version = 11 : i64} {
  func.func @_conv_gemm_kernel(%arg0: memref<128x144xf32, #tpu.memory_space<vmem>>, %arg1: memref<144x16xf32, #tpu.memory_space<vmem>>, %arg2: memref<1x16xf32, #tpu.memory_space<vmem>>, %arg3: memref<128x16xf32, #tpu.memory_space<vmem>>) attributes {dimension_semantics = [], scalar_prefetch = 0 : i64, scratch_operands = 0 : i64, tpu.core_type = #tpu.core_type<tc>} {
    %c0 = arith.constant 0 : index
    %c0_0 = arith.constant 0 : index
    %0 = vector.load %arg0[%c0, %c0_0] : memref<128x144xf32, #tpu.memory_space<vmem>>, vector<128x144xf32>
    %c0_1 = arith.constant 0 : index
    %c0_2 = arith.constant 0 : index
    %1 = vector.load %arg1[%c0_1, %c0_2] : memref<144x16xf32, #tpu.memory_space<vmem>>, vector<144x16xf32>
    %cst = arith.constant dense<0.000000e+00> : vector<128x16xf32>
    %2 = tpu.matmul %0, %1, %cst {dimension_numbers = #tpu.dot_dimension_numbers<[1], [0], [0], [1], [0, 0, 1, 1], [], []>} : vector<128x144xf32>, vector<144x16xf32>, vector<128x16xf32> -> vector<128x16xf32>
    %c0_3 = arith.constant 0 : index
    %c0_4 = arith.constant 0 : index
    %3 = vector.load %arg2[%c0_3, %c0_4] : memref<1x16xf32, #tpu.memory_space<vmem>>, vector<1x16xf32>
    %4 = vector.broadcast %3 : vector<1x16xf32> to vector<128x16xf32>
    %5 = arith.addf %2, %4 : vector<128x16xf32>
    %cst_5 = arith.constant 0.000000e+00 : f32
    %cst_6 = arith.constant 2.000000e+01 : f32
    %6 = vector.broadcast %cst_5 : f32 to vector<128x16xf32>
    %7 = arith.maximumf %6, %5 : vector<128x16xf32>
    %8 = vector.broadcast %cst_6 : f32 to vector<128x16xf32>
    %9 = arith.minimumf %8, %7 : vector<128x16xf32>
    %c0_7 = arith.constant 0 : index
    %c0_8 = arith.constant 0 : index
    %10 = vector.load %arg3[%c0_7, %c0_8] : memref<128x16xf32, #tpu.memory_space<vmem>>, vector<128x16xf32>
    tpu.vector_store %arg3[%c0_7, %c0_8], %9 {strides = array<i32>} : memref<128x16xf32, #tpu.memory_space<vmem>>, vector<128x16xf32>,
    return
  }
}

module attributes {stable_mosaic.version = 11 : i64} {
  func.func @_enc_layer_kernel(%arg0: i32, %arg1: memref<2xi32, #tpu.memory_space<smem>>, %arg2: memref<1x4x32xf32, #tpu.memory_space<vmem>>, %arg3: memref<4x32xf32, #tpu.memory_space<vmem>>, %arg4: memref<32x96xf32, #tpu.memory_space<vmem>>, %arg5: memref<1x96xf32, #tpu.memory_space<vmem>>, %arg6: memref<32x32xf32, #tpu.memory_space<vmem>>, %arg7: memref<1x32xf32, #tpu.memory_space<vmem>>, %arg8: memref<32x64xf32, #tpu.memory_space<vmem>>, %arg9: memref<1x64xf32, #tpu.memory_space<vmem>>, %arg10: memref<64x32xf32, #tpu.memory_space<vmem>>, %arg11: memref<1x32xf32, #tpu.memory_space<vmem>>, %arg12: memref<1x4x32xf32, #tpu.memory_space<vmem>>) attributes {dimension_semantics = [#tpu.dimension_semantics<parallel>], iteration_bounds = array<i64: 2>, scalar_prefetch = 1 : i64, scratch_operands = 0 : i64, tpu.core_type = #tpu.core_type<tc>, window_params = [{transform_indices = @transform_0, window_bounds = array<i64: 1, 4, 32>}, {pipeline_mode = #tpu.pipeline_mode<synchronous>, transform_indices = @transform_1, window_bounds = array<i64: 4, 32>}, {pipeline_mode = #tpu.pipeline_mode<synchronous>, transform_indices = @transform_2, window_bounds = array<i64: 32, 96>}, {pipeline_mode = #tpu.pipeline_mode<synchronous>, transform_indices = @transform_3, window_bounds = array<i64: 1, 96>}, {pipeline_mode = #tpu.pipeline_mode<synchronous>, transform_indices = @transform_4, window_bounds = array<i64: 32, 32>}, {pipeline_mode = #tpu.pipeline_mode<synchronous>, transform_indices = @transform_5, window_bounds = array<i64: 1, 32>}, {pipeline_mode = #tpu.pipeline_mode<synchronous>, transform_indices = @transform_6, window_bounds = array<i64: 32, 64>}, {pipeline_mode = #tpu.pipeline_mode<synchronous>, transform_indices = @transform_7, window_bounds = array<i64: 1, 64>}, {pipeline_mode = #tpu.pipeline_mode<synchronous>, transform_indices = @transform_8, window_bounds = array<i64: 64, 32>}, {pipeline_mode = #tpu.pipeline_mode<synchronous>, transform_indices = @transform_9, window_bounds = array<i64: 1, 32>}, {transform_indices = @transform_10, window_bounds = array<i64: 1, 4, 32>}]} {
    %c0 = arith.constant 0 : index
    %c0_0 = arith.constant 0 : index
    %c0_1 = arith.constant 0 : index
    %0 = vector.load %arg2[%c0, %c0_0, %c0_1] : memref<1x4x32xf32, #tpu.memory_space<vmem>>, vector<1x4x32xf32>
    %1 = vector.shape_cast %0 : vector<1x4x32xf32> to vector<4x32xf32>
    %2 = arith.index_cast %arg0 : i32 to index
    %3 = memref.load %arg1[%2] : memref<2xi32, #tpu.memory_space<smem>>
    %4 = tpu.iota {dimensions = array<i32: 1>} : vector<4x4xi32>
    %5 = vector.broadcast %3 : i32 to vector<4x4xi32>
    %6 = arith.cmpi slt, %4, %5 : vector<4x4xi32>
    %cst = arith.constant 0.000000e+00 : f32
    %cst_2 = arith.constant -1.000000e+09 : f32
    %7 = vector.broadcast %cst : f32 to vector<4x4xf32>
    %8 = vector.broadcast %cst_2 : f32 to vector<4x4xf32>
    %9 = arith.select %6, %7, %8 : vector<4x4xi1>, vector<4x4xf32>
    %c0_3 = arith.constant 0 : index
    %c0_4 = arith.constant 0 : index
    %10 = vector.load %arg3[%c0_3, %c0_4] : memref<4x32xf32, #tpu.memory_space<vmem>>, vector<1x32xf32>
    %c1 = arith.constant 1 : index
    %c0_5 = arith.constant 0 : index
    %11 = vector.load %arg3[%c1, %c0_5] : memref<4x32xf32, #tpu.memory_space<vmem>>, vector<1x32xf32>
    %cst_6 = arith.constant dense<0.000000e+00> : vector<4xf32>
    %12 = vector.multi_reduction <add>, %1, %cst_6 [1] : vector<4x32xf32> to vector<4xf32>
    %13 = vector.shape_cast %12 : vector<4xf32> to vector<4x1xf32>
    %cst_7 = arith.constant 3.200000e+01 : f32
    %14 = vector.broadcast %cst_7 : f32 to vector<4x1xf32>
    %15 = arith.divf %13, %14 : vector<4x1xf32>
    %16 = vector.broadcast %15 : vector<4x1xf32> to vector<4x32xf32>
    %17 = arith.subf %1, %16 : vector<4x32xf32>
    %18 = arith.mulf %17, %17 : vector<4x32xf32>
    %cst_8 = arith.constant dense<0.000000e+00> : vector<4xf32>
    %19 = vector.multi_reduction <add>, %18, %cst_8 [1] : vector<4x32xf32> to vector<4xf32>
    %20 = vector.shape_cast %19 : vector<4xf32> to vector<4x1xf32>
    %cst_9 = arith.constant 3.200000e+01 : f32
    %21 = vector.broadcast %cst_9 : f32 to vector<4x1xf32>
    %22 = arith.divf %20, %21 : vector<4x1xf32>
    %23 = vector.broadcast %15 : vector<4x1xf32> to vector<4x32xf32>
    %24 = arith.subf %1, %23 : vector<4x32xf32>
    %cst_10 = arith.constant 9.99999974E-6 : f32
    %25 = vector.broadcast %cst_10 : f32 to vector<4x1xf32>
    %26 = arith.addf %22, %25 : vector<4x1xf32>
    %27 = math.rsqrt %26 : vector<4x1xf32>
    %28 = vector.broadcast %27 : vector<4x1xf32> to vector<4x32xf32>
    %29 = arith.mulf %24, %28 : vector<4x32xf32>
    %30 = vector.broadcast %10 : vector<1x32xf32> to vector<4x32xf32>
    %31 = arith.mulf %29, %30 : vector<4x32xf32>
    %32 = vector.broadcast %11 : vector<1x32xf32> to vector<4x32xf32>
    %33 = arith.addf %31, %32 : vector<4x32xf32>
    %c0_11 = arith.constant 0 : index
    %c0_12 = arith.constant 0 : index
    %34 = vector.load %arg4[%c0_11, %c0_12] : memref<32x96xf32, #tpu.memory_space<vmem>>, vector<32x96xf32>
    %cst_13 = arith.constant dense<0.000000e+00> : vector<4x96xf32>
    %35 = tpu.matmul %33, %34, %cst_13 {dimension_numbers = #tpu.dot_dimension_numbers<[1], [0], [0], [1], [0, 0, 1, 1], [], []>} : vector<4x32xf32>, vector<32x96xf32>, vector<4x96xf32> -> vector<4x96xf32>
    %c0_14 = arith.constant 0 : index
    %c0_15 = arith.constant 0 : index
    %36 = vector.load %arg5[%c0_14, %c0_15] : memref<1x96xf32, #tpu.memory_space<vmem>>, vector<1x96xf32>
    %37 = vector.broadcast %36 : vector<1x96xf32> to vector<4x96xf32>
    %38 = arith.addf %35, %37 : vector<4x96xf32>
    %39 = vector.extract_strided_slice %38 {offsets = [0, 0], sizes = [4, 32], strides = [1, 1]} : vector<4x96xf32> to vector<4x32xf32>
    %40 = vector.extract_strided_slice %38 {offsets = [0, 32], sizes = [4, 32], strides = [1, 1]} : vector<4x96xf32> to vector<4x32xf32>
    %41 = vector.extract_strided_slice %38 {offsets = [0, 64], sizes = [4, 32], strides = [1, 1]} : vector<4x96xf32> to vector<4x32xf32>
    %42 = vector.extract_strided_slice %39 {offsets = [0, 0], sizes = [4, 8], strides = [1, 1]} : vector<4x32xf32> to vector<4x8xf32>
    %43 = vector.extract_strided_slice %40 {offsets = [0, 0], sizes = [4, 8], strides = [1, 1]} : vector<4x32xf32> to vector<4x8xf32>
    %44 = vector.extract_strided_slice %41 {offsets = [0, 0], sizes = [4, 8], strides = [1, 1]} : vector<4x32xf32> to vector<4x8xf32>
    %cst_16 = arith.constant dense<0.000000e+00> : vector<4x4xf32>
    %45 = tpu.matmul %42, %43, %cst_16 {dimension_numbers = #tpu.dot_dimension_numbers<[1], [1], [0], [0], [0, 0, 1, 0], [], []>} : vector<4x8xf32>, vector<4x8xf32>, vector<4x4xf32> -> vector<4x4xf32>
    %cst_17 = arith.constant 0.353553385 : f32
    %46 = vector.broadcast %cst_17 : f32 to vector<4x4xf32>
    %47 = arith.mulf %45, %46 : vector<4x4xf32>
    %48 = arith.addf %47, %9 : vector<4x4xf32>
    %cst_18 = arith.constant dense<0xFF800000> : vector<4xf32>
    %49 = vector.multi_reduction <maximumf>, %48, %cst_18 [1] : vector<4x4xf32> to vector<4xf32>
    %50 = vector.shape_cast %49 : vector<4xf32> to vector<4x1xf32>
    %51 = vector.broadcast %50 : vector<4x1xf32> to vector<4x4xf32>
    %52 = arith.subf %48, %51 : vector<4x4xf32>
    %53 = math.exp %52 : vector<4x4xf32>
    %cst_19 = arith.constant dense<0.000000e+00> : vector<4xf32>
    %54 = vector.multi_reduction <add>, %53, %cst_19 [1] : vector<4x4xf32> to vector<4xf32>
    %55 = vector.shape_cast %54 : vector<4xf32> to vector<4x1xf32>
    %56 = tpu.reciprocal %55 {approx = true} : vector<4x1xf32> -> vector<4x1xf32>
    %57 = vector.broadcast %56 : vector<4x1xf32> to vector<4x4xf32>
    %58 = arith.mulf %53, %57 : vector<4x4xf32>
    %cst_20 = arith.constant dense<0.000000e+00> : vector<4x8xf32>
    %59 = tpu.matmul %58, %44, %cst_20 {dimension_numbers = #tpu.dot_dimension_numbers<[1], [0], [0], [1], [0, 0, 1, 1], [], []>} : vector<4x4xf32>, vector<4x8xf32>, vector<4x8xf32> -> vector<4x8xf32>
    %60 = vector.extract_strided_slice %39 {offsets = [0, 8], sizes = [4, 8], strides = [1, 1]} : vector<4x32xf32> to vector<4x8xf32>
    %61 = vector.extract_strided_slice %40 {offsets = [0, 8], sizes = [4, 8], strides = [1, 1]} : vector<4x32xf32> to vector<4x8xf32>
    %62 = vector.extract_strided_slice %41 {offsets = [0, 8], sizes = [4, 8], strides = [1, 1]} : vector<4x32xf32> to vector<4x8xf32>
    %cst_21 = arith.constant dense<0.000000e+00> : vector<4x4xf32>
    %63 = tpu.matmul %60, %61, %cst_21 {dimension_numbers = #tpu.dot_dimension_numbers<[1], [1], [0], [0], [0, 0, 1, 0], [], []>} : vector<4x8xf32>, vector<4x8xf32>, vector<4x4xf32> -> vector<4x4xf32>
    %cst_22 = arith.constant 0.353553385 : f32
    %64 = vector.broadcast %cst_22 : f32 to vector<4x4xf32>
    %65 = arith.mulf %63, %64 : vector<4x4xf32>
    %66 = arith.addf %65, %9 : vector<4x4xf32>
    %cst_23 = arith.constant dense<0xFF800000> : vector<4xf32>
    %67 = vector.multi_reduction <maximumf>, %66, %cst_23 [1] : vector<4x4xf32> to vector<4xf32>
    %68 = vector.shape_cast %67 : vector<4xf32> to vector<4x1xf32>
    %69 = vector.broadcast %68 : vector<4x1xf32> to vector<4x4xf32>
    %70 = arith.subf %66, %69 : vector<4x4xf32>
    %71 = math.exp %70 : vector<4x4xf32>
    %cst_24 = arith.constant dense<0.000000e+00> : vector<4xf32>
    %72 = vector.multi_reduction <add>, %71, %cst_24 [1] : vector<4x4xf32> to vector<4xf32>
    %73 = vector.shape_cast %72 : vector<4xf32> to vector<4x1xf32>
    %74 = tpu.reciprocal %73 {approx = true} : vector<4x1xf32> -> vector<4x1xf32>
    %75 = vector.broadcast %74 : vector<4x1xf32> to vector<4x4xf32>
    %76 = arith.mulf %71, %75 : vector<4x4xf32>
    %cst_25 = arith.constant dense<0.000000e+00> : vector<4x8xf32>
    %77 = tpu.matmul %76, %62, %cst_25 {dimension_numbers = #tpu.dot_dimension_numbers<[1], [0], [0], [1], [0, 0, 1, 1], [], []>} : vector<4x4xf32>, vector<4x8xf32>, vector<4x8xf32> -> vector<4x8xf32>
    %78 = vector.extract_strided_slice %39 {offsets = [0, 16], sizes = [4, 8], strides = [1, 1]} : vector<4x32xf32> to vector<4x8xf32>
    %79 = vector.extract_strided_slice %40 {offsets = [0, 16], sizes = [4, 8], strides = [1, 1]} : vector<4x32xf32> to vector<4x8xf32>
    %80 = vector.extract_strided_slice %41 {offsets = [0, 16], sizes = [4, 8], strides = [1, 1]} : vector<4x32xf32> to vector<4x8xf32>
    %cst_26 = arith.constant dense<0.000000e+00> : vector<4x4xf32>
    %81 = tpu.matmul %78, %79, %cst_26 {dimension_numbers = #tpu.dot_dimension_numbers<[1], [1], [0], [0], [0, 0, 1, 0], [], []>} : vector<4x8xf32>, vector<4x8xf32>, vector<4x4xf32> -> vector<4x4xf32>
    %cst_27 = arith.constant 0.353553385 : f32
    %82 = vector.broadcast %cst_27 : f32 to vector<4x4xf32>
    %83 = arith.mulf %81, %82 : vector<4x4xf32>
    %84 = arith.addf %83, %9 : vector<4x4xf32>
    %cst_28 = arith.constant dense<0xFF800000> : vector<4xf32>
    %85 = vector.multi_reduction <maximumf>, %84, %cst_28 [1] : vector<4x4xf32> to vector<4xf32>
    %86 = vector.shape_cast %85 : vector<4xf32> to vector<4x1xf32>
    %87 = vector.broadcast %86 : vector<4x1xf32> to vector<4x4xf32>
    %88 = arith.subf %84, %87 : vector<4x4xf32>
    %89 = math.exp %88 : vector<4x4xf32>
    %cst_29 = arith.constant dense<0.000000e+00> : vector<4xf32>
    %90 = vector.multi_reduction <add>, %89, %cst_29 [1] : vector<4x4xf32> to vector<4xf32>
    %91 = vector.shape_cast %90 : vector<4xf32> to vector<4x1xf32>
    %92 = tpu.reciprocal %91 {approx = true} : vector<4x1xf32> -> vector<4x1xf32>
    %93 = vector.broadcast %92 : vector<4x1xf32> to vector<4x4xf32>
    %94 = arith.mulf %89, %93 : vector<4x4xf32>
    %cst_30 = arith.constant dense<0.000000e+00> : vector<4x8xf32>
    %95 = tpu.matmul %94, %80, %cst_30 {dimension_numbers = #tpu.dot_dimension_numbers<[1], [0], [0], [1], [0, 0, 1, 1], [], []>} : vector<4x4xf32>, vector<4x8xf32>, vector<4x8xf32> -> vector<4x8xf32>
    %96 = vector.extract_strided_slice %39 {offsets = [0, 24], sizes = [4, 8], strides = [1, 1]} : vector<4x32xf32> to vector<4x8xf32>
    %97 = vector.extract_strided_slice %40 {offsets = [0, 24], sizes = [4, 8], strides = [1, 1]} : vector<4x32xf32> to vector<4x8xf32>
    %98 = vector.extract_strided_slice %41 {offsets = [0, 24], sizes = [4, 8], strides = [1, 1]} : vector<4x32xf32> to vector<4x8xf32>
    %cst_31 = arith.constant dense<0.000000e+00> : vector<4x4xf32>
    %99 = tpu.matmul %96, %97, %cst_31 {dimension_numbers = #tpu.dot_dimension_numbers<[1], [1], [0], [0], [0, 0, 1, 0], [], []>} : vector<4x8xf32>, vector<4x8xf32>, vector<4x4xf32> -> vector<4x4xf32>
    %cst_32 = arith.constant 0.353553385 : f32
    %100 = vector.broadcast %cst_32 : f32 to vector<4x4xf32>
    %101 = arith.mulf %99, %100 : vector<4x4xf32>
    %102 = arith.addf %101, %9 : vector<4x4xf32>
    %cst_33 = arith.constant dense<0xFF800000> : vector<4xf32>
    %103 = vector.multi_reduction <maximumf>, %102, %cst_33 [1] : vector<4x4xf32> to vector<4xf32>
    %104 = vector.shape_cast %103 : vector<4xf32> to vector<4x1xf32>
    %105 = vector.broadcast %104 : vector<4x1xf32> to vector<4x4xf32>
    %106 = arith.subf %102, %105 : vector<4x4xf32>
    %107 = math.exp %106 : vector<4x4xf32>
    %cst_34 = arith.constant dense<0.000000e+00> : vector<4xf32>
    %108 = vector.multi_reduction <add>, %107, %cst_34 [1] : vector<4x4xf32> to vector<4xf32>
    %109 = vector.shape_cast %108 : vector<4xf32> to vector<4x1xf32>
    %110 = tpu.reciprocal %109 {approx = true} : vector<4x1xf32> -> vector<4x1xf32>
    %111 = vector.broadcast %110 : vector<4x1xf32> to vector<4x4xf32>
    %112 = arith.mulf %107, %111 : vector<4x4xf32>
    %cst_35 = arith.constant dense<0.000000e+00> : vector<4x8xf32>
    %113 = tpu.matmul %112, %98, %cst_35 {dimension_numbers = #tpu.dot_dimension_numbers<[1], [0], [0], [1], [0, 0, 1, 1], [], []>} : vector<4x4xf32>, vector<4x8xf32>, vector<4x8xf32> -> vector<4x8xf32>
    %114 = tpu.concatenate %59, %77, %95, %113 in 1 : vector<4x8xf32>, vector<4x8xf32>, vector<4x8xf32>, vector<4x8xf32> -> vector<4x32xf32>
    %c0_36 = arith.constant 0 : index
    %c0_37 = arith.constant 0 : index
    %115 = vector.load %arg6[%c0_36, %c0_37] : memref<32x32xf32, #tpu.memory_space<vmem>>, vector<32x32xf32>
    %cst_38 = arith.constant dense<0.000000e+00> : vector<4x32xf32>
    %116 = tpu.matmul %114, %115, %cst_38 {dimension_numbers = #tpu.dot_dimension_numbers<[1], [0], [0], [1], [0, 0, 1, 1], [], []>} : vector<4x32xf32>, vector<32x32xf32>, vector<4x32xf32> -> vector<4x32xf32>
    %117 = arith.addf %1, %116 : vector<4x32xf32>
    %c0_39 = arith.constant 0 : index
    %c0_40 = arith.constant 0 : index
    %118 = vector.load %arg7[%c0_39, %c0_40] : memref<1x32xf32, #tpu.memory_space<vmem>>, vector<1x32xf32>
    %119 = vector.broadcast %118 : vector<1x32xf32> to vector<4x32xf32>
    %120 = arith.addf %117, %119 : vector<4x32xf32>
    %c2 = arith.constant 2 : index
    %c0_41 = arith.constant 0 : index
    %121 = vector.load %arg3[%c2, %c0_41] : memref<4x32xf32, #tpu.memory_space<vmem>>, vector<1x32xf32>
    %c3 = arith.constant 3 : index
    %c0_42 = arith.constant 0 : index
    %122 = vector.load %arg3[%c3, %c0_42] : memref<4x32xf32, #tpu.memory_space<vmem>>, vector<1x32xf32>
    %cst_43 = arith.constant dense<0.000000e+00> : vector<4xf32>
    %123 = vector.multi_reduction <add>, %120, %cst_43 [1] : vector<4x32xf32> to vector<4xf32>
    %124 = vector.shape_cast %123 : vector<4xf32> to vector<4x1xf32>
    %cst_44 = arith.constant 3.200000e+01 : f32
    %125 = vector.broadcast %cst_44 : f32 to vector<4x1xf32>
    %126 = arith.divf %124, %125 : vector<4x1xf32>
    %127 = vector.broadcast %126 : vector<4x1xf32> to vector<4x32xf32>
    %128 = arith.subf %120, %127 : vector<4x32xf32>
    %129 = arith.mulf %128, %128 : vector<4x32xf32>
    %cst_45 = arith.constant dense<0.000000e+00> : vector<4xf32>
    %130 = vector.multi_reduction <add>, %129, %cst_45 [1] : vector<4x32xf32> to vector<4xf32>
    %131 = vector.shape_cast %130 : vector<4xf32> to vector<4x1xf32>
    %cst_46 = arith.constant 3.200000e+01 : f32
    %132 = vector.broadcast %cst_46 : f32 to vector<4x1xf32>
    %133 = arith.divf %131, %132 : vector<4x1xf32>
    %134 = vector.broadcast %126 : vector<4x1xf32> to vector<4x32xf32>
    %135 = arith.subf %120, %134 : vector<4x32xf32>
    %cst_47 = arith.constant 9.99999974E-6 : f32
    %136 = vector.broadcast %cst_47 : f32 to vector<4x1xf32>
    %137 = arith.addf %133, %136 : vector<4x1xf32>
    %138 = math.rsqrt %137 : vector<4x1xf32>
    %139 = vector.broadcast %138 : vector<4x1xf32> to vector<4x32xf32>
    %140 = arith.mulf %135, %139 : vector<4x32xf32>
    %141 = vector.broadcast %121 : vector<1x32xf32> to vector<4x32xf32>
    %142 = arith.mulf %140, %141 : vector<4x32xf32>
    %143 = vector.broadcast %122 : vector<1x32xf32> to vector<4x32xf32>
    %144 = arith.addf %142, %143 : vector<4x32xf32>
    %c0_48 = arith.constant 0 : index
    %c0_49 = arith.constant 0 : index
    %145 = vector.load %arg8[%c0_48, %c0_49] : memref<32x64xf32, #tpu.memory_space<vmem>>, vector<32x64xf32>
    %cst_50 = arith.constant dense<0.000000e+00> : vector<4x64xf32>
    %146 = tpu.matmul %144, %145, %cst_50 {dimension_numbers = #tpu.dot_dimension_numbers<[1], [0], [0], [1], [0, 0, 1, 1], [], []>} : vector<4x32xf32>, vector<32x64xf32>, vector<4x64xf32> -> vector<4x64xf32>
    %c0_51 = arith.constant 0 : index
    %c0_52 = arith.constant 0 : index
    %147 = vector.load %arg9[%c0_51, %c0_52] : memref<1x64xf32, #tpu.memory_space<vmem>>, vector<1x64xf32>
    %148 = vector.broadcast %147 : vector<1x64xf32> to vector<4x64xf32>
    %149 = arith.addf %146, %148 : vector<4x64xf32>
    %cst_53 = arith.constant 0.000000e+00 : f32
    %150 = vector.broadcast %cst_53 : f32 to vector<4x64xf32>
    %151 = arith.maximumf %149, %150 : vector<4x64xf32>
    %c0_54 = arith.constant 0 : index
    %c0_55 = arith.constant 0 : index
    %152 = vector.load %arg10[%c0_54, %c0_55] : memref<64x32xf32, #tpu.memory_space<vmem>>, vector<64x32xf32>
    %cst_56 = arith.constant dense<0.000000e+00> : vector<4x32xf32>
    %153 = tpu.matmul %151, %152, %cst_56 {dimension_numbers = #tpu.dot_dimension_numbers<[1], [0], [0], [1], [0, 0, 1, 1], [], []>} : vector<4x64xf32>, vector<64x32xf32>, vector<4x32xf32> -> vector<4x32xf32>
    %c0_57 = arith.constant 0 : index
    %c0_58 = arith.constant 0 : index
    %154 = vector.load %arg11[%c0_57, %c0_58] : memref<1x32xf32, #tpu.memory_space<vmem>>, vector<1x32xf32>
    %155 = vector.broadcast %154 : vector<1x32xf32> to vector<4x32xf32>
    %156 = arith.addf %153, %155 : vector<4x32xf32>
    %157 = arith.addf %120, %156 : vector<4x32xf32>
    %c0_59 = arith.constant 0 : index
    %c0_60 = arith.constant 0 : index
    %c0_61 = arith.constant 0 : index
    %158 = vector.load %arg12[%c0_59, %c0_60, %c0_61] : memref<1x4x32xf32, #tpu.memory_space<vmem>>, vector<1x4x32xf32>
    %159 = vector.shape_cast %158 : vector<1x4x32xf32> to vector<4x32xf32>
    %160 = vector.shape_cast %157 : vector<4x32xf32> to vector<1x4x32xf32>
    tpu.vector_store %arg12[%c0_59, %c0_60, %c0_61], %160 {strides = array<i32>} : memref<1x4x32xf32, #tpu.memory_space<vmem>>, vector<1x4x32xf32>,
    return
  }
  func.func @transform_0(%arg0: i32, %arg1: memref<2xi32, #tpu.memory_space<smem>>) -> (i32, i32, i32) {
    %c0_i32 = arith.constant 0 : i32
    %c0_i32_0 = arith.constant 0 : i32
    %c0_i32_1 = arith.constant 0 : i32
    return %arg0, %c0_i32, %c0_i32_0 : i32, i32, i32
  }
  func.func @transform_1(%arg0: i32, %arg1: memref<2xi32, #tpu.memory_space<smem>>) -> (i32, i32) {
    %c0_i32 = arith.constant 0 : i32
    %c0_i32_0 = arith.constant 0 : i32
    %c0_i32_1 = arith.constant 0 : i32
    return %c0_i32, %c0_i32_0 : i32, i32
  }
  func.func @transform_2(%arg0: i32, %arg1: memref<2xi32, #tpu.memory_space<smem>>) -> (i32, i32) {
    %c0_i32 = arith.constant 0 : i32
    %c0_i32_0 = arith.constant 0 : i32
    %c0_i32_1 = arith.constant 0 : i32
    return %c0_i32, %c0_i32_0 : i32, i32
  }
  func.func @transform_3(%arg0: i32, %arg1: memref<2xi32, #tpu.memory_space<smem>>) -> (i32, i32) {
    %c0_i32 = arith.constant 0 : i32
    %c0_i32_0 = arith.constant 0 : i32
    %c0_i32_1 = arith.constant 0 : i32
    return %c0_i32, %c0_i32_0 : i32, i32
  }
  func.func @transform_4(%arg0: i32, %arg1: memref<2xi32, #tpu.memory_space<smem>>) -> (i32, i32) {
    %c0_i32 = arith.constant 0 : i32
    %c0_i32_0 = arith.constant 0 : i32
    %c0_i32_1 = arith.constant 0 : i32
    return %c0_i32, %c0_i32_0 : i32, i32
  }
  func.func @transform_5(%arg0: i32, %arg1: memref<2xi32, #tpu.memory_space<smem>>) -> (i32, i32) {
    %c0_i32 = arith.constant 0 : i32
    %c0_i32_0 = arith.constant 0 : i32
    %c0_i32_1 = arith.constant 0 : i32
    return %c0_i32, %c0_i32_0 : i32, i32
  }
  func.func @transform_6(%arg0: i32, %arg1: memref<2xi32, #tpu.memory_space<smem>>) -> (i32, i32) {
    %c0_i32 = arith.constant 0 : i32
    %c0_i32_0 = arith.constant 0 : i32
    %c0_i32_1 = arith.constant 0 : i32
    return %c0_i32, %c0_i32_0 : i32, i32
  }
  func.func @transform_7(%arg0: i32, %arg1: memref<2xi32, #tpu.memory_space<smem>>) -> (i32, i32) {
    %c0_i32 = arith.constant 0 : i32
    %c0_i32_0 = arith.constant 0 : i32
    %c0_i32_1 = arith.constant 0 : i32
    return %c0_i32, %c0_i32_0 : i32, i32
  }
  func.func @transform_8(%arg0: i32, %arg1: memref<2xi32, #tpu.memory_space<smem>>) -> (i32, i32) {
    %c0_i32 = arith.constant 0 : i32
    %c0_i32_0 = arith.constant 0 : i32
    %c0_i32_1 = arith.constant 0 : i32
    return %c0_i32, %c0_i32_0 : i32, i32
  }
  func.func @transform_9(%arg0: i32, %arg1: memref<2xi32, #tpu.memory_space<smem>>) -> (i32, i32) {
    %c0_i32 = arith.constant 0 : i32
    %c0_i32_0 = arith.constant 0 : i32
    %c0_i32_1 = arith.constant 0 : i32
    return %c0_i32, %c0_i32_0 : i32, i32
  }
  func.func @transform_10(%arg0: i32, %arg1: memref<2xi32, #tpu.memory_space<smem>>) -> (i32, i32, i32) {
    %c0_i32 = arith.constant 0 : i32
    %c0_i32_0 = arith.constant 0 : i32
    %c0_i32_1 = arith.constant 0 : i32
    return %arg0, %c0_i32, %c0_i32_0 : i32, i32, i32
  }
}

module attributes {stable_mosaic.version = 11 : i64} {
  func.func @_inproj_kernel(%arg0: memref<8x64xf32, #tpu.memory_space<vmem>>, %arg1: memref<64x32xf32, #tpu.memory_space<vmem>>, %arg2: memref<1x32xf32, #tpu.memory_space<vmem>>, %arg3: memref<2x32xf32, #tpu.memory_space<vmem>>, %arg4: memref<8x32xf32, #tpu.memory_space<vmem>>, %arg5: memref<8x32xf32, #tpu.memory_space<vmem>>) attributes {dimension_semantics = [], scalar_prefetch = 0 : i64, scratch_operands = 0 : i64, tpu.core_type = #tpu.core_type<tc>} {
    %c0 = arith.constant 0 : index
    %c0_0 = arith.constant 0 : index
    %0 = vector.load %arg0[%c0, %c0_0] : memref<8x64xf32, #tpu.memory_space<vmem>>, vector<8x64xf32>
    %c0_1 = arith.constant 0 : index
    %c0_2 = arith.constant 0 : index
    %1 = vector.load %arg1[%c0_1, %c0_2] : memref<64x32xf32, #tpu.memory_space<vmem>>, vector<64x32xf32>
    %cst = arith.constant dense<0.000000e+00> : vector<8x32xf32>
    %2 = tpu.matmul %0, %1, %cst {dimension_numbers = #tpu.dot_dimension_numbers<[1], [0], [0], [1], [0, 0, 1, 1], [], []>} : vector<8x64xf32>, vector<64x32xf32>, vector<8x32xf32> -> vector<8x32xf32>
    %c0_3 = arith.constant 0 : index
    %c0_4 = arith.constant 0 : index
    %3 = vector.load %arg2[%c0_3, %c0_4] : memref<1x32xf32, #tpu.memory_space<vmem>>, vector<1x32xf32>
    %4 = vector.broadcast %3 : vector<1x32xf32> to vector<8x32xf32>
    %5 = arith.addf %2, %4 : vector<8x32xf32>
    %c0_5 = arith.constant 0 : index
    %c0_6 = arith.constant 0 : index
    %6 = vector.load %arg3[%c0_5, %c0_6] : memref<2x32xf32, #tpu.memory_space<vmem>>, vector<1x32xf32>
    %c1 = arith.constant 1 : index
    %c0_7 = arith.constant 0 : index
    %7 = vector.load %arg3[%c1, %c0_7] : memref<2x32xf32, #tpu.memory_space<vmem>>, vector<1x32xf32>
    %cst_8 = arith.constant dense<0.000000e+00> : vector<8xf32>
    %8 = vector.multi_reduction <add>, %5, %cst_8 [1] : vector<8x32xf32> to vector<8xf32>
    %9 = vector.shape_cast %8 : vector<8xf32> to vector<8x1xf32>
    %cst_9 = arith.constant 3.200000e+01 : f32
    %10 = vector.broadcast %cst_9 : f32 to vector<8x1xf32>
    %11 = arith.divf %9, %10 : vector<8x1xf32>
    %12 = vector.broadcast %11 : vector<8x1xf32> to vector<8x32xf32>
    %13 = arith.subf %5, %12 : vector<8x32xf32>
    %14 = arith.mulf %13, %13 : vector<8x32xf32>
    %cst_10 = arith.constant dense<0.000000e+00> : vector<8xf32>
    %15 = vector.multi_reduction <add>, %14, %cst_10 [1] : vector<8x32xf32> to vector<8xf32>
    %16 = vector.shape_cast %15 : vector<8xf32> to vector<8x1xf32>
    %cst_11 = arith.constant 3.200000e+01 : f32
    %17 = vector.broadcast %cst_11 : f32 to vector<8x1xf32>
    %18 = arith.divf %16, %17 : vector<8x1xf32>
    %19 = vector.broadcast %11 : vector<8x1xf32> to vector<8x32xf32>
    %20 = arith.subf %5, %19 : vector<8x32xf32>
    %cst_12 = arith.constant 9.99999974E-6 : f32
    %21 = vector.broadcast %cst_12 : f32 to vector<8x1xf32>
    %22 = arith.addf %18, %21 : vector<8x1xf32>
    %23 = math.rsqrt %22 : vector<8x1xf32>
    %24 = vector.broadcast %23 : vector<8x1xf32> to vector<8x32xf32>
    %25 = arith.mulf %20, %24 : vector<8x32xf32>
    %26 = vector.broadcast %6 : vector<1x32xf32> to vector<8x32xf32>
    %27 = arith.mulf %25, %26 : vector<8x32xf32>
    %28 = vector.broadcast %7 : vector<1x32xf32> to vector<8x32xf32>
    %29 = arith.addf %27, %28 : vector<8x32xf32>
    %c0_13 = arith.constant 0 : index
    %c0_14 = arith.constant 0 : index
    %30 = vector.load %arg4[%c0_13, %c0_14] : memref<8x32xf32, #tpu.memory_space<vmem>>, vector<8x32xf32>
    %31 = arith.addf %29, %30 : vector<8x32xf32>
    %c0_15 = arith.constant 0 : index
    %c0_16 = arith.constant 0 : index
    %32 = vector.load %arg5[%c0_15, %c0_16] : memref<8x32xf32, #tpu.memory_space<vmem>>, vector<8x32xf32>
    tpu.vector_store %arg5[%c0_15, %c0_16], %31 {strides = array<i32>} : memref<8x32xf32, #tpu.memory_space<vmem>>, vector<8x32xf32>,
    return
  }
}

module attributes {stable_mosaic.version = 11 : i64} {
  func.func @_head_kernel(%arg0: memref<16x32xf32, #tpu.memory_space<vmem>>, %arg1: memref<2x32xf32, #tpu.memory_space<vmem>>, %arg2: memref<32x10xf32, #tpu.memory_space<vmem>>, %arg3: memref<16x10xf32, #tpu.memory_space<vmem>>) attributes {dimension_semantics = [], scalar_prefetch = 0 : i64, scratch_operands = 0 : i64, tpu.core_type = #tpu.core_type<tc>} {
    %c0 = arith.constant 0 : index
    %c0_0 = arith.constant 0 : index
    %0 = vector.load %arg0[%c0, %c0_0] : memref<16x32xf32, #tpu.memory_space<vmem>>, vector<16x32xf32>
    %c0_1 = arith.constant 0 : index
    %c0_2 = arith.constant 0 : index
    %1 = vector.load %arg1[%c0_1, %c0_2] : memref<2x32xf32, #tpu.memory_space<vmem>>, vector<1x32xf32>
    %c1 = arith.constant 1 : index
    %c0_3 = arith.constant 0 : index
    %2 = vector.load %arg1[%c1, %c0_3] : memref<2x32xf32, #tpu.memory_space<vmem>>, vector<1x32xf32>
    %cst = arith.constant dense<0.000000e+00> : vector<16xf32>
    %3 = vector.multi_reduction <add>, %0, %cst [1] : vector<16x32xf32> to vector<16xf32>
    %4 = vector.shape_cast %3 : vector<16xf32> to vector<16x1xf32>
    %cst_4 = arith.constant 3.200000e+01 : f32
    %5 = vector.broadcast %cst_4 : f32 to vector<16x1xf32>
    %6 = arith.divf %4, %5 : vector<16x1xf32>
    %7 = vector.broadcast %6 : vector<16x1xf32> to vector<16x32xf32>
    %8 = arith.subf %0, %7 : vector<16x32xf32>
    %9 = arith.mulf %8, %8 : vector<16x32xf32>
    %cst_5 = arith.constant dense<0.000000e+00> : vector<16xf32>
    %10 = vector.multi_reduction <add>, %9, %cst_5 [1] : vector<16x32xf32> to vector<16xf32>
    %11 = vector.shape_cast %10 : vector<16xf32> to vector<16x1xf32>
    %cst_6 = arith.constant 3.200000e+01 : f32
    %12 = vector.broadcast %cst_6 : f32 to vector<16x1xf32>
    %13 = arith.divf %11, %12 : vector<16x1xf32>
    %14 = vector.broadcast %6 : vector<16x1xf32> to vector<16x32xf32>
    %15 = arith.subf %0, %14 : vector<16x32xf32>
    %cst_7 = arith.constant 9.99999974E-6 : f32
    %16 = vector.broadcast %cst_7 : f32 to vector<16x1xf32>
    %17 = arith.addf %13, %16 : vector<16x1xf32>
    %18 = math.rsqrt %17 : vector<16x1xf32>
    %19 = vector.broadcast %18 : vector<16x1xf32> to vector<16x32xf32>
    %20 = arith.mulf %15, %19 : vector<16x32xf32>
    %21 = vector.broadcast %1 : vector<1x32xf32> to vector<16x32xf32>
    %22 = arith.mulf %20, %21 : vector<16x32xf32>
    %23 = vector.broadcast %2 : vector<1x32xf32> to vector<16x32xf32>
    %24 = arith.addf %22, %23 : vector<16x32xf32>
    %c0_8 = arith.constant 0 : index
    %c0_9 = arith.constant 0 : index
    %25 = vector.load %arg2[%c0_8, %c0_9] : memref<32x10xf32, #tpu.memory_space<vmem>>, vector<32x10xf32>
    %cst_10 = arith.constant dense<0.000000e+00> : vector<16x10xf32>
    %26 = tpu.matmul %24, %25, %cst_10 {dimension_numbers = #tpu.dot_dimension_numbers<[1], [0], [0], [1], [0, 0, 1, 1], [], []>} : vector<16x32xf32>, vector<32x10xf32>, vector<16x10xf32> -> vector<16x10xf32>
    %cst_11 = arith.constant dense<0xFF800000> : vector<16xf32>
    %27 = vector.multi_reduction <maximumf>, %26, %cst_11 [1] : vector<16x10xf32> to vector<16xf32>
    %28 = vector.shape_cast %27 : vector<16xf32> to vector<16x1xf32>
    %29 = vector.broadcast %28 : vector<16x1xf32> to vector<16x10xf32>
    %30 = arith.subf %26, %29 : vector<16x10xf32>
    %31 = math.exp %30 : vector<16x10xf32>
    %32 = vector.broadcast %28 : vector<16x1xf32> to vector<16x10xf32>
    %33 = arith.subf %26, %32 : vector<16x10xf32>
    %cst_12 = arith.constant dense<0.000000e+00> : vector<16xf32>
    %34 = vector.multi_reduction <add>, %31, %cst_12 [1] : vector<16x10xf32> to vector<16xf32>
    %35 = vector.shape_cast %34 : vector<16xf32> to vector<16x1xf32>
    %36 = math.log %35 : vector<16x1xf32>
    %37 = vector.broadcast %36 : vector<16x1xf32> to vector<16x10xf32>
    %38 = arith.subf %33, %37 : vector<16x10xf32>
    %c0_13 = arith.constant 0 : index
    %c0_14 = arith.constant 0 : index
    %39 = vector.load %arg3[%c0_13, %c0_14] : memref<16x10xf32, #tpu.memory_space<vmem>>, vector<16x10xf32>
    tpu.vector_store %arg3[%c0_13, %c0_14], %38 {strides = array<i32>} : memref<16x10xf32, #tpu.memory_space<vmem>>, vector<16x10xf32>,
    return
  }
}

module attributes {stable_mosaic.version = 11 : i64} {
  func.func @_dec_layer_kernel(%arg0: i32, %arg1: memref<2xi32, #tpu.memory_space<smem>>, %arg2: memref<1x8x32xf32, #tpu.memory_space<vmem>>, %arg3: memref<1x4x32xf32, #tpu.memory_space<vmem>>, %arg4: memref<6x32xf32, #tpu.memory_space<vmem>>, %arg5: memref<32x96xf32, #tpu.memory_space<vmem>>, %arg6: memref<1x96xf32, #tpu.memory_space<vmem>>, %arg7: memref<32x32xf32, #tpu.memory_space<vmem>>, %arg8: memref<1x32xf32, #tpu.memory_space<vmem>>, %arg9: memref<32x32xf32, #tpu.memory_space<vmem>>, %arg10: memref<1x32xf32, #tpu.memory_space<vmem>>, %arg11: memref<32x64xf32, #tpu.memory_space<vmem>>, %arg12: memref<1x64xf32, #tpu.memory_space<vmem>>, %arg13: memref<32x32xf32, #tpu.memory_space<vmem>>, %arg14: memref<1x32xf32, #tpu.memory_space<vmem>>, %arg15: memref<32x64xf32, #tpu.memory_space<vmem>>, %arg16: memref<1x64xf32, #tpu.memory_space<vmem>>, %arg17: memref<64x32xf32, #tpu.memory_space<vmem>>, %arg18: memref<1x32xf32, #tpu.memory_space<vmem>>, %arg19: memref<1x8x32xf32, #tpu.memory_space<vmem>>) attributes {dimension_semantics = [#tpu.dimension_semantics<parallel>], iteration_bounds = array<i64: 2>, scalar_prefetch = 1 : i64, scratch_operands = 0 : i64, tpu.core_type = #tpu.core_type<tc>, window_params = [{transform_indices = @transform_0, window_bounds = array<i64: 1, 8, 32>}, {transform_indices = @transform_1, window_bounds = array<i64: 1, 4, 32>}, {pipeline_mode = #tpu.pipeline_mode<synchronous>, transform_indices = @transform_2, window_bounds = array<i64: 6, 32>}, {pipeline_mode = #tpu.pipeline_mode<synchronous>, transform_indices = @transform_3, window_bounds = array<i64: 32, 96>}, {pipeline_mode = #tpu.pipeline_mode<synchronous>, transform_indices = @transform_4, window_bounds = array<i64: 1, 96>}, {pipeline_mode = #tpu.pipeline_mode<synchronous>, transform_indices = @transform_5, window_bounds = array<i64: 32, 32>}, {pipeline_mode = #tpu.pipeline_mode<synchronous>, transform_indices = @transform_6, window_bounds = array<i64: 1, 32>}, {pipeline_mode = #tpu.pipeline_mode<synchronous>, transform_indices = @transform_7, window_bounds = array<i64: 32, 32>}, {pipeline_mode = #tpu.pipeline_mode<synchronous>, transform_indices = @transform_8, window_bounds = array<i64: 1, 32>}, {pipeline_mode = #tpu.pipeline_mode<synchronous>, transform_indices = @transform_9, window_bounds = array<i64: 32, 64>}, {pipeline_mode = #tpu.pipeline_mode<synchronous>, transform_indices = @transform_10, window_bounds = array<i64: 1, 64>}, {pipeline_mode = #tpu.pipeline_mode<synchronous>, transform_indices = @transform_11, window_bounds = array<i64: 32, 32>}, {pipeline_mode = #tpu.pipeline_mode<synchronous>, transform_indices = @transform_12, window_bounds = array<i64: 1, 32>}, {pipeline_mode = #tpu.pipeline_mode<synchronous>, transform_indices = @transform_13, window_bounds = array<i64: 32, 64>}, {pipeline_mode = #tpu.pipeline_mode<synchronous>, transform_indices = @transform_14, window_bounds = array<i64: 1, 64>}, {pipeline_mode = #tpu.pipeline_mode<synchronous>, transform_indices = @transform_15, window_bounds = array<i64: 64, 32>}, {pipeline_mode = #tpu.pipeline_mode<synchronous>, transform_indices = @transform_16, window_bounds = array<i64: 1, 32>}, {transform_indices = @transform_17, window_bounds = array<i64: 1, 8, 32>}]} {
    %c0 = arith.constant 0 : index
    %c0_0 = arith.constant 0 : index
    %c0_1 = arith.constant 0 : index
    %0 = vector.load %arg2[%c0, %c0_0, %c0_1] : memref<1x8x32xf32, #tpu.memory_space<vmem>>, vector<1x8x32xf32>
    %1 = vector.shape_cast %0 : vector<1x8x32xf32> to vector<8x32xf32>
    %c0_2 = arith.constant 0 : index
    %c0_3 = arith.constant 0 : index
    %c0_4 = arith.constant 0 : index
    %2 = vector.load %arg3[%c0_2, %c0_3, %c0_4] : memref<1x4x32xf32, #tpu.memory_space<vmem>>, vector<1x4x32xf32>
    %3 = vector.shape_cast %2 : vector<1x4x32xf32> to vector<4x32xf32>
    %4 = arith.index_cast %arg0 : i32 to index
    %5 = memref.load %arg1[%4] : memref<2xi32, #tpu.memory_space<smem>>
    %6 = tpu.iota {dimensions = array<i32: 0>} : vector<8x8xi32>
    %7 = tpu.iota {dimensions = array<i32: 1>} : vector<8x8xi32>
    %8 = arith.cmpi sge, %6, %7 : vector<8x8xi32>
    %cst = arith.constant 0.000000e+00 : f32
    %cst_5 = arith.constant -1.000000e+09 : f32
    %9 = vector.broadcast %cst : f32 to vector<8x8xf32>
    %10 = vector.broadcast %cst_5 : f32 to vector<8x8xf32>
    %11 = arith.select %8, %9, %10 : vector<8x8xi1>, vector<8x8xf32>
    %12 = tpu.iota {dimensions = array<i32: 1>} : vector<8x4xi32>
    %13 = vector.broadcast %5 : i32 to vector<8x4xi32>
    %14 = arith.cmpi slt, %12, %13 : vector<8x4xi32>
    %cst_6 = arith.constant 0.000000e+00 : f32
    %cst_7 = arith.constant -1.000000e+09 : f32
    %15 = vector.broadcast %cst_6 : f32 to vector<8x4xf32>
    %16 = vector.broadcast %cst_7 : f32 to vector<8x4xf32>
    %17 = arith.select %14, %15, %16 : vector<8x4xi1>, vector<8x4xf32>
    %c0_8 = arith.constant 0 : index
    %c0_9 = arith.constant 0 : index
    %18 = vector.load %arg4[%c0_8, %c0_9] : memref<6x32xf32, #tpu.memory_space<vmem>>, vector<1x32xf32>
    %c1 = arith.constant 1 : index
    %c0_10 = arith.constant 0 : index
    %19 = vector.load %arg4[%c1, %c0_10] : memref<6x32xf32, #tpu.memory_space<vmem>>, vector<1x32xf32>
    %cst_11 = arith.constant dense<0.000000e+00> : vector<8xf32>
    %20 = vector.multi_reduction <add>, %1, %cst_11 [1] : vector<8x32xf32> to vector<8xf32>
    %21 = vector.shape_cast %20 : vector<8xf32> to vector<8x1xf32>
    %cst_12 = arith.constant 3.200000e+01 : f32
    %22 = vector.broadcast %cst_12 : f32 to vector<8x1xf32>
    %23 = arith.divf %21, %22 : vector<8x1xf32>
    %24 = vector.broadcast %23 : vector<8x1xf32> to vector<8x32xf32>
    %25 = arith.subf %1, %24 : vector<8x32xf32>
    %26 = arith.mulf %25, %25 : vector<8x32xf32>
    %cst_13 = arith.constant dense<0.000000e+00> : vector<8xf32>
    %27 = vector.multi_reduction <add>, %26, %cst_13 [1] : vector<8x32xf32> to vector<8xf32>
    %28 = vector.shape_cast %27 : vector<8xf32> to vector<8x1xf32>
    %cst_14 = arith.constant 3.200000e+01 : f32
    %29 = vector.broadcast %cst_14 : f32 to vector<8x1xf32>
    %30 = arith.divf %28, %29 : vector<8x1xf32>
    %31 = vector.broadcast %23 : vector<8x1xf32> to vector<8x32xf32>
    %32 = arith.subf %1, %31 : vector<8x32xf32>
    %cst_15 = arith.constant 9.99999974E-6 : f32
    %33 = vector.broadcast %cst_15 : f32 to vector<8x1xf32>
    %34 = arith.addf %30, %33 : vector<8x1xf32>
    %35 = math.rsqrt %34 : vector<8x1xf32>
    %36 = vector.broadcast %35 : vector<8x1xf32> to vector<8x32xf32>
    %37 = arith.mulf %32, %36 : vector<8x32xf32>
    %38 = vector.broadcast %18 : vector<1x32xf32> to vector<8x32xf32>
    %39 = arith.mulf %37, %38 : vector<8x32xf32>
    %40 = vector.broadcast %19 : vector<1x32xf32> to vector<8x32xf32>
    %41 = arith.addf %39, %40 : vector<8x32xf32>
    %c0_16 = arith.constant 0 : index
    %c0_17 = arith.constant 0 : index
    %42 = vector.load %arg5[%c0_16, %c0_17] : memref<32x96xf32, #tpu.memory_space<vmem>>, vector<32x96xf32>
    %cst_18 = arith.constant dense<0.000000e+00> : vector<8x96xf32>
    %43 = tpu.matmul %41, %42, %cst_18 {dimension_numbers = #tpu.dot_dimension_numbers<[1], [0], [0], [1], [0, 0, 1, 1], [], []>} : vector<8x32xf32>, vector<32x96xf32>, vector<8x96xf32> -> vector<8x96xf32>
    %c0_19 = arith.constant 0 : index
    %c0_20 = arith.constant 0 : index
    %44 = vector.load %arg6[%c0_19, %c0_20] : memref<1x96xf32, #tpu.memory_space<vmem>>, vector<1x96xf32>
    %45 = vector.broadcast %44 : vector<1x96xf32> to vector<8x96xf32>
    %46 = arith.addf %43, %45 : vector<8x96xf32>
    %47 = vector.extract_strided_slice %46 {offsets = [0, 0], sizes = [8, 32], strides = [1, 1]} : vector<8x96xf32> to vector<8x32xf32>
    %48 = vector.extract_strided_slice %46 {offsets = [0, 32], sizes = [8, 32], strides = [1, 1]} : vector<8x96xf32> to vector<8x32xf32>
    %49 = vector.extract_strided_slice %46 {offsets = [0, 64], sizes = [8, 32], strides = [1, 1]} : vector<8x96xf32> to vector<8x32xf32>
    %50 = vector.extract_strided_slice %47 {offsets = [0, 0], sizes = [8, 8], strides = [1, 1]} : vector<8x32xf32> to vector<8x8xf32>
    %51 = vector.extract_strided_slice %48 {offsets = [0, 0], sizes = [8, 8], strides = [1, 1]} : vector<8x32xf32> to vector<8x8xf32>
    %52 = vector.extract_strided_slice %49 {offsets = [0, 0], sizes = [8, 8], strides = [1, 1]} : vector<8x32xf32> to vector<8x8xf32>
    %cst_21 = arith.constant dense<0.000000e+00> : vector<8x8xf32>
    %53 = tpu.matmul %50, %51, %cst_21 {dimension_numbers = #tpu.dot_dimension_numbers<[1], [1], [0], [0], [0, 0, 1, 0], [], []>} : vector<8x8xf32>, vector<8x8xf32>, vector<8x8xf32> -> vector<8x8xf32>
    %cst_22 = arith.constant 0.353553385 : f32
    %54 = vector.broadcast %cst_22 : f32 to vector<8x8xf32>
    %55 = arith.mulf %53, %54 : vector<8x8xf32>
    %56 = arith.addf %55, %11 : vector<8x8xf32>
    %cst_23 = arith.constant dense<0xFF800000> : vector<8xf32>
    %57 = vector.multi_reduction <maximumf>, %56, %cst_23 [1] : vector<8x8xf32> to vector<8xf32>
    %58 = vector.shape_cast %57 : vector<8xf32> to vector<8x1xf32>
    %59 = vector.broadcast %58 : vector<8x1xf32> to vector<8x8xf32>
    %60 = arith.subf %56, %59 : vector<8x8xf32>
    %61 = math.exp %60 : vector<8x8xf32>
    %cst_24 = arith.constant dense<0.000000e+00> : vector<8xf32>
    %62 = vector.multi_reduction <add>, %61, %cst_24 [1] : vector<8x8xf32> to vector<8xf32>
    %63 = vector.shape_cast %62 : vector<8xf32> to vector<8x1xf32>
    %64 = tpu.reciprocal %63 {approx = true} : vector<8x1xf32> -> vector<8x1xf32>
    %65 = vector.broadcast %64 : vector<8x1xf32> to vector<8x8xf32>
    %66 = arith.mulf %61, %65 : vector<8x8xf32>
    %cst_25 = arith.constant dense<0.000000e+00> : vector<8x8xf32>
    %67 = tpu.matmul %66, %52, %cst_25 {dimension_numbers = #tpu.dot_dimension_numbers<[1], [0], [0], [1], [0, 0, 1, 1], [], []>} : vector<8x8xf32>, vector<8x8xf32>, vector<8x8xf32> -> vector<8x8xf32>
    %68 = vector.extract_strided_slice %47 {offsets = [0, 8], sizes = [8, 8], strides = [1, 1]} : vector<8x32xf32> to vector<8x8xf32>
    %69 = vector.extract_strided_slice %48 {offsets = [0, 8], sizes = [8, 8], strides = [1, 1]} : vector<8x32xf32> to vector<8x8xf32>
    %70 = vector.extract_strided_slice %49 {offsets = [0, 8], sizes = [8, 8], strides = [1, 1]} : vector<8x32xf32> to vector<8x8xf32>
    %cst_26 = arith.constant dense<0.000000e+00> : vector<8x8xf32>
    %71 = tpu.matmul %68, %69, %cst_26 {dimension_numbers = #tpu.dot_dimension_numbers<[1], [1], [0], [0], [0, 0, 1, 0], [], []>} : vector<8x8xf32>, vector<8x8xf32>, vector<8x8xf32> -> vector<8x8xf32>
    %cst_27 = arith.constant 0.353553385 : f32
    %72 = vector.broadcast %cst_27 : f32 to vector<8x8xf32>
    %73 = arith.mulf %71, %72 : vector<8x8xf32>
    %74 = arith.addf %73, %11 : vector<8x8xf32>
    %cst_28 = arith.constant dense<0xFF800000> : vector<8xf32>
    %75 = vector.multi_reduction <maximumf>, %74, %cst_28 [1] : vector<8x8xf32> to vector<8xf32>
    %76 = vector.shape_cast %75 : vector<8xf32> to vector<8x1xf32>
    %77 = vector.broadcast %76 : vector<8x1xf32> to vector<8x8xf32>
    %78 = arith.subf %74, %77 : vector<8x8xf32>
    %79 = math.exp %78 : vector<8x8xf32>
    %cst_29 = arith.constant dense<0.000000e+00> : vector<8xf32>
    %80 = vector.multi_reduction <add>, %79, %cst_29 [1] : vector<8x8xf32> to vector<8xf32>
    %81 = vector.shape_cast %80 : vector<8xf32> to vector<8x1xf32>
    %82 = tpu.reciprocal %81 {approx = true} : vector<8x1xf32> -> vector<8x1xf32>
    %83 = vector.broadcast %82 : vector<8x1xf32> to vector<8x8xf32>
    %84 = arith.mulf %79, %83 : vector<8x8xf32>
    %cst_30 = arith.constant dense<0.000000e+00> : vector<8x8xf32>
    %85 = tpu.matmul %84, %70, %cst_30 {dimension_numbers = #tpu.dot_dimension_numbers<[1], [0], [0], [1], [0, 0, 1, 1], [], []>} : vector<8x8xf32>, vector<8x8xf32>, vector<8x8xf32> -> vector<8x8xf32>
    %86 = vector.extract_strided_slice %47 {offsets = [0, 16], sizes = [8, 8], strides = [1, 1]} : vector<8x32xf32> to vector<8x8xf32>
    %87 = vector.extract_strided_slice %48 {offsets = [0, 16], sizes = [8, 8], strides = [1, 1]} : vector<8x32xf32> to vector<8x8xf32>
    %88 = vector.extract_strided_slice %49 {offsets = [0, 16], sizes = [8, 8], strides = [1, 1]} : vector<8x32xf32> to vector<8x8xf32>
    %cst_31 = arith.constant dense<0.000000e+00> : vector<8x8xf32>
    %89 = tpu.matmul %86, %87, %cst_31 {dimension_numbers = #tpu.dot_dimension_numbers<[1], [1], [0], [0], [0, 0, 1, 0], [], []>} : vector<8x8xf32>, vector<8x8xf32>, vector<8x8xf32> -> vector<8x8xf32>
    %cst_32 = arith.constant 0.353553385 : f32
    %90 = vector.broadcast %cst_32 : f32 to vector<8x8xf32>
    %91 = arith.mulf %89, %90 : vector<8x8xf32>
    %92 = arith.addf %91, %11 : vector<8x8xf32>
    %cst_33 = arith.constant dense<0xFF800000> : vector<8xf32>
    %93 = vector.multi_reduction <maximumf>, %92, %cst_33 [1] : vector<8x8xf32> to vector<8xf32>
    %94 = vector.shape_cast %93 : vector<8xf32> to vector<8x1xf32>
    %95 = vector.broadcast %94 : vector<8x1xf32> to vector<8x8xf32>
    %96 = arith.subf %92, %95 : vector<8x8xf32>
    %97 = math.exp %96 : vector<8x8xf32>
    %cst_34 = arith.constant dense<0.000000e+00> : vector<8xf32>
    %98 = vector.multi_reduction <add>, %97, %cst_34 [1] : vector<8x8xf32> to vector<8xf32>
    %99 = vector.shape_cast %98 : vector<8xf32> to vector<8x1xf32>
    %100 = tpu.reciprocal %99 {approx = true} : vector<8x1xf32> -> vector<8x1xf32>
    %101 = vector.broadcast %100 : vector<8x1xf32> to vector<8x8xf32>
    %102 = arith.mulf %97, %101 : vector<8x8xf32>
    %cst_35 = arith.constant dense<0.000000e+00> : vector<8x8xf32>
    %103 = tpu.matmul %102, %88, %cst_35 {dimension_numbers = #tpu.dot_dimension_numbers<[1], [0], [0], [1], [0, 0, 1, 1], [], []>} : vector<8x8xf32>, vector<8x8xf32>, vector<8x8xf32> -> vector<8x8xf32>
    %104 = vector.extract_strided_slice %47 {offsets = [0, 24], sizes = [8, 8], strides = [1, 1]} : vector<8x32xf32> to vector<8x8xf32>
    %105 = vector.extract_strided_slice %48 {offsets = [0, 24], sizes = [8, 8], strides = [1, 1]} : vector<8x32xf32> to vector<8x8xf32>
    %106 = vector.extract_strided_slice %49 {offsets = [0, 24], sizes = [8, 8], strides = [1, 1]} : vector<8x32xf32> to vector<8x8xf32>
    %cst_36 = arith.constant dense<0.000000e+00> : vector<8x8xf32>
    %107 = tpu.matmul %104, %105, %cst_36 {dimension_numbers = #tpu.dot_dimension_numbers<[1], [1], [0], [0], [0, 0, 1, 0], [], []>} : vector<8x8xf32>, vector<8x8xf32>, vector<8x8xf32> -> vector<8x8xf32>
    %cst_37 = arith.constant 0.353553385 : f32
    %108 = vector.broadcast %cst_37 : f32 to vector<8x8xf32>
    %109 = arith.mulf %107, %108 : vector<8x8xf32>
    %110 = arith.addf %109, %11 : vector<8x8xf32>
    %cst_38 = arith.constant dense<0xFF800000> : vector<8xf32>
    %111 = vector.multi_reduction <maximumf>, %110, %cst_38 [1] : vector<8x8xf32> to vector<8xf32>
    %112 = vector.shape_cast %111 : vector<8xf32> to vector<8x1xf32>
    %113 = vector.broadcast %112 : vector<8x1xf32> to vector<8x8xf32>
    %114 = arith.subf %110, %113 : vector<8x8xf32>
    %115 = math.exp %114 : vector<8x8xf32>
    %cst_39 = arith.constant dense<0.000000e+00> : vector<8xf32>
    %116 = vector.multi_reduction <add>, %115, %cst_39 [1] : vector<8x8xf32> to vector<8xf32>
    %117 = vector.shape_cast %116 : vector<8xf32> to vector<8x1xf32>
    %118 = tpu.reciprocal %117 {approx = true} : vector<8x1xf32> -> vector<8x1xf32>
    %119 = vector.broadcast %118 : vector<8x1xf32> to vector<8x8xf32>
    %120 = arith.mulf %115, %119 : vector<8x8xf32>
    %cst_40 = arith.constant dense<0.000000e+00> : vector<8x8xf32>
    %121 = tpu.matmul %120, %106, %cst_40 {dimension_numbers = #tpu.dot_dimension_numbers<[1], [0], [0], [1], [0, 0, 1, 1], [], []>} : vector<8x8xf32>, vector<8x8xf32>, vector<8x8xf32> -> vector<8x8xf32>
    %122 = tpu.concatenate %67, %85, %103, %121 in 1 : vector<8x8xf32>, vector<8x8xf32>, vector<8x8xf32>, vector<8x8xf32> -> vector<8x32xf32>
    %c0_41 = arith.constant 0 : index
    %c0_42 = arith.constant 0 : index
    %123 = vector.load %arg7[%c0_41, %c0_42] : memref<32x32xf32, #tpu.memory_space<vmem>>, vector<32x32xf32>
    %cst_43 = arith.constant dense<0.000000e+00> : vector<8x32xf32>
    %124 = tpu.matmul %122, %123, %cst_43 {dimension_numbers = #tpu.dot_dimension_numbers<[1], [0], [0], [1], [0, 0, 1, 1], [], []>} : vector<8x32xf32>, vector<32x32xf32>, vector<8x32xf32> -> vector<8x32xf32>
    %125 = arith.addf %1, %124 : vector<8x32xf32>
    %c0_44 = arith.constant 0 : index
    %c0_45 = arith.constant 0 : index
    %126 = vector.load %arg8[%c0_44, %c0_45] : memref<1x32xf32, #tpu.memory_space<vmem>>, vector<1x32xf32>
    %127 = vector.broadcast %126 : vector<1x32xf32> to vector<8x32xf32>
    %128 = arith.addf %125, %127 : vector<8x32xf32>
    %c2 = arith.constant 2 : index
    %c0_46 = arith.constant 0 : index
    %129 = vector.load %arg4[%c2, %c0_46] : memref<6x32xf32, #tpu.memory_space<vmem>>, vector<1x32xf32>
    %c3 = arith.constant 3 : index
    %c0_47 = arith.constant 0 : index
    %130 = vector.load %arg4[%c3, %c0_47] : memref<6x32xf32, #tpu.memory_space<vmem>>, vector<1x32xf32>
    %cst_48 = arith.constant dense<0.000000e+00> : vector<8xf32>
    %131 = vector.multi_reduction <add>, %128, %cst_48 [1] : vector<8x32xf32> to vector<8xf32>
    %132 = vector.shape_cast %131 : vector<8xf32> to vector<8x1xf32>
    %cst_49 = arith.constant 3.200000e+01 : f32
    %133 = vector.broadcast %cst_49 : f32 to vector<8x1xf32>
    %134 = arith.divf %132, %133 : vector<8x1xf32>
    %135 = vector.broadcast %134 : vector<8x1xf32> to vector<8x32xf32>
    %136 = arith.subf %128, %135 : vector<8x32xf32>
    %137 = arith.mulf %136, %136 : vector<8x32xf32>
    %cst_50 = arith.constant dense<0.000000e+00> : vector<8xf32>
    %138 = vector.multi_reduction <add>, %137, %cst_50 [1] : vector<8x32xf32> to vector<8xf32>
    %139 = vector.shape_cast %138 : vector<8xf32> to vector<8x1xf32>
    %cst_51 = arith.constant 3.200000e+01 : f32
    %140 = vector.broadcast %cst_51 : f32 to vector<8x1xf32>
    %141 = arith.divf %139, %140 : vector<8x1xf32>
    %142 = vector.broadcast %134 : vector<8x1xf32> to vector<8x32xf32>
    %143 = arith.subf %128, %142 : vector<8x32xf32>
    %cst_52 = arith.constant 9.99999974E-6 : f32
    %144 = vector.broadcast %cst_52 : f32 to vector<8x1xf32>
    %145 = arith.addf %141, %144 : vector<8x1xf32>
    %146 = math.rsqrt %145 : vector<8x1xf32>
    %147 = vector.broadcast %146 : vector<8x1xf32> to vector<8x32xf32>
    %148 = arith.mulf %143, %147 : vector<8x32xf32>
    %149 = vector.broadcast %129 : vector<1x32xf32> to vector<8x32xf32>
    %150 = arith.mulf %148, %149 : vector<8x32xf32>
    %151 = vector.broadcast %130 : vector<1x32xf32> to vector<8x32xf32>
    %152 = arith.addf %150, %151 : vector<8x32xf32>
    %c0_53 = arith.constant 0 : index
    %c0_54 = arith.constant 0 : index
    %153 = vector.load %arg9[%c0_53, %c0_54] : memref<32x32xf32, #tpu.memory_space<vmem>>, vector<32x32xf32>
    %cst_55 = arith.constant dense<0.000000e+00> : vector<8x32xf32>
    %154 = tpu.matmul %152, %153, %cst_55 {dimension_numbers = #tpu.dot_dimension_numbers<[1], [0], [0], [1], [0, 0, 1, 1], [], []>} : vector<8x32xf32>, vector<32x32xf32>, vector<8x32xf32> -> vector<8x32xf32>
    %c0_56 = arith.constant 0 : index
    %c0_57 = arith.constant 0 : index
    %155 = vector.load %arg10[%c0_56, %c0_57] : memref<1x32xf32, #tpu.memory_space<vmem>>, vector<1x32xf32>
    %156 = vector.broadcast %155 : vector<1x32xf32> to vector<8x32xf32>
    %157 = arith.addf %154, %156 : vector<8x32xf32>
    %c0_58 = arith.constant 0 : index
    %c0_59 = arith.constant 0 : index
    %158 = vector.load %arg11[%c0_58, %c0_59] : memref<32x64xf32, #tpu.memory_space<vmem>>, vector<32x64xf32>
    %cst_60 = arith.constant dense<0.000000e+00> : vector<4x64xf32>
    %159 = tpu.matmul %3, %158, %cst_60 {dimension_numbers = #tpu.dot_dimension_numbers<[1], [0], [0], [1], [0, 0, 1, 1], [], []>} : vector<4x32xf32>, vector<32x64xf32>, vector<4x64xf32> -> vector<4x64xf32>
    %c0_61 = arith.constant 0 : index
    %c0_62 = arith.constant 0 : index
    %160 = vector.load %arg12[%c0_61, %c0_62] : memref<1x64xf32, #tpu.memory_space<vmem>>, vector<1x64xf32>
    %161 = vector.broadcast %160 : vector<1x64xf32> to vector<4x64xf32>
    %162 = arith.addf %159, %161 : vector<4x64xf32>
    %163 = vector.extract_strided_slice %162 {offsets = [0, 0], sizes = [4, 32], strides = [1, 1]} : vector<4x64xf32> to vector<4x32xf32>
    %164 = vector.extract_strided_slice %162 {offsets = [0, 32], sizes = [4, 32], strides = [1, 1]} : vector<4x64xf32> to vector<4x32xf32>
    %165 = vector.extract_strided_slice %157 {offsets = [0, 0], sizes = [8, 8], strides = [1, 1]} : vector<8x32xf32> to vector<8x8xf32>
    %166 = vector.extract_strided_slice %163 {offsets = [0, 0], sizes = [4, 8], strides = [1, 1]} : vector<4x32xf32> to vector<4x8xf32>
    %167 = vector.extract_strided_slice %164 {offsets = [0, 0], sizes = [4, 8], strides = [1, 1]} : vector<4x32xf32> to vector<4x8xf32>
    %cst_63 = arith.constant dense<0.000000e+00> : vector<8x4xf32>
    %168 = tpu.matmul %165, %166, %cst_63 {dimension_numbers = #tpu.dot_dimension_numbers<[1], [1], [0], [0], [0, 0, 1, 0], [], []>} : vector<8x8xf32>, vector<4x8xf32>, vector<8x4xf32> -> vector<8x4xf32>
    %cst_64 = arith.constant 0.353553385 : f32
    %169 = vector.broadcast %cst_64 : f32 to vector<8x4xf32>
    %170 = arith.mulf %168, %169 : vector<8x4xf32>
    %171 = arith.addf %170, %17 : vector<8x4xf32>
    %cst_65 = arith.constant dense<0xFF800000> : vector<8xf32>
    %172 = vector.multi_reduction <maximumf>, %171, %cst_65 [1] : vector<8x4xf32> to vector<8xf32>
    %173 = vector.shape_cast %172 : vector<8xf32> to vector<8x1xf32>
    %174 = vector.broadcast %173 : vector<8x1xf32> to vector<8x4xf32>
    %175 = arith.subf %171, %174 : vector<8x4xf32>
    %176 = math.exp %175 : vector<8x4xf32>
    %cst_66 = arith.constant dense<0.000000e+00> : vector<8xf32>
    %177 = vector.multi_reduction <add>, %176, %cst_66 [1] : vector<8x4xf32> to vector<8xf32>
    %178 = vector.shape_cast %177 : vector<8xf32> to vector<8x1xf32>
    %179 = tpu.reciprocal %178 {approx = true} : vector<8x1xf32> -> vector<8x1xf32>
    %180 = vector.broadcast %179 : vector<8x1xf32> to vector<8x4xf32>
    %181 = arith.mulf %176, %180 : vector<8x4xf32>
    %cst_67 = arith.constant dense<0.000000e+00> : vector<8x8xf32>
    %182 = tpu.matmul %181, %167, %cst_67 {dimension_numbers = #tpu.dot_dimension_numbers<[1], [0], [0], [1], [0, 0, 1, 1], [], []>} : vector<8x4xf32>, vector<4x8xf32>, vector<8x8xf32> -> vector<8x8xf32>
    %183 = vector.extract_strided_slice %157 {offsets = [0, 8], sizes = [8, 8], strides = [1, 1]} : vector<8x32xf32> to vector<8x8xf32>
    %184 = vector.extract_strided_slice %163 {offsets = [0, 8], sizes = [4, 8], strides = [1, 1]} : vector<4x32xf32> to vector<4x8xf32>
    %185 = vector.extract_strided_slice %164 {offsets = [0, 8], sizes = [4, 8], strides = [1, 1]} : vector<4x32xf32> to vector<4x8xf32>
    %cst_68 = arith.constant dense<0.000000e+00> : vector<8x4xf32>
    %186 = tpu.matmul %183, %184, %cst_68 {dimension_numbers = #tpu.dot_dimension_numbers<[1], [1], [0], [0], [0, 0, 1, 0], [], []>} : vector<8x8xf32>, vector<4x8xf32>, vector<8x4xf32> -> vector<8x4xf32>
    %cst_69 = arith.constant 0.353553385 : f32
    %187 = vector.broadcast %cst_69 : f32 to vector<8x4xf32>
    %188 = arith.mulf %186, %187 : vector<8x4xf32>
    %189 = arith.addf %188, %17 : vector<8x4xf32>
    %cst_70 = arith.constant dense<0xFF800000> : vector<8xf32>
    %190 = vector.multi_reduction <maximumf>, %189, %cst_70 [1] : vector<8x4xf32> to vector<8xf32>
    %191 = vector.shape_cast %190 : vector<8xf32> to vector<8x1xf32>
    %192 = vector.broadcast %191 : vector<8x1xf32> to vector<8x4xf32>
    %193 = arith.subf %189, %192 : vector<8x4xf32>
    %194 = math.exp %193 : vector<8x4xf32>
    %cst_71 = arith.constant dense<0.000000e+00> : vector<8xf32>
    %195 = vector.multi_reduction <add>, %194, %cst_71 [1] : vector<8x4xf32> to vector<8xf32>
    %196 = vector.shape_cast %195 : vector<8xf32> to vector<8x1xf32>
    %197 = tpu.reciprocal %196 {approx = true} : vector<8x1xf32> -> vector<8x1xf32>
    %198 = vector.broadcast %197 : vector<8x1xf32> to vector<8x4xf32>
    %199 = arith.mulf %194, %198 : vector<8x4xf32>
    %cst_72 = arith.constant dense<0.000000e+00> : vector<8x8xf32>
    %200 = tpu.matmul %199, %185, %cst_72 {dimension_numbers = #tpu.dot_dimension_numbers<[1], [0], [0], [1], [0, 0, 1, 1], [], []>} : vector<8x4xf32>, vector<4x8xf32>, vector<8x8xf32> -> vector<8x8xf32>
    %201 = vector.extract_strided_slice %157 {offsets = [0, 16], sizes = [8, 8], strides = [1, 1]} : vector<8x32xf32> to vector<8x8xf32>
    %202 = vector.extract_strided_slice %163 {offsets = [0, 16], sizes = [4, 8], strides = [1, 1]} : vector<4x32xf32> to vector<4x8xf32>
    %203 = vector.extract_strided_slice %164 {offsets = [0, 16], sizes = [4, 8], strides = [1, 1]} : vector<4x32xf32> to vector<4x8xf32>
    %cst_73 = arith.constant dense<0.000000e+00> : vector<8x4xf32>
    %204 = tpu.matmul %201, %202, %cst_73 {dimension_numbers = #tpu.dot_dimension_numbers<[1], [1], [0], [0], [0, 0, 1, 0], [], []>} : vector<8x8xf32>, vector<4x8xf32>, vector<8x4xf32> -> vector<8x4xf32>
    %cst_74 = arith.constant 0.353553385 : f32
    %205 = vector.broadcast %cst_74 : f32 to vector<8x4xf32>
    %206 = arith.mulf %204, %205 : vector<8x4xf32>
    %207 = arith.addf %206, %17 : vector<8x4xf32>
    %cst_75 = arith.constant dense<0xFF800000> : vector<8xf32>
    %208 = vector.multi_reduction <maximumf>, %207, %cst_75 [1] : vector<8x4xf32> to vector<8xf32>
    %209 = vector.shape_cast %208 : vector<8xf32> to vector<8x1xf32>
    %210 = vector.broadcast %209 : vector<8x1xf32> to vector<8x4xf32>
    %211 = arith.subf %207, %210 : vector<8x4xf32>
    %212 = math.exp %211 : vector<8x4xf32>
    %cst_76 = arith.constant dense<0.000000e+00> : vector<8xf32>
    %213 = vector.multi_reduction <add>, %212, %cst_76 [1] : vector<8x4xf32> to vector<8xf32>
    %214 = vector.shape_cast %213 : vector<8xf32> to vector<8x1xf32>
    %215 = tpu.reciprocal %214 {approx = true} : vector<8x1xf32> -> vector<8x1xf32>
    %216 = vector.broadcast %215 : vector<8x1xf32> to vector<8x4xf32>
    %217 = arith.mulf %212, %216 : vector<8x4xf32>
    %cst_77 = arith.constant dense<0.000000e+00> : vector<8x8xf32>
    %218 = tpu.matmul %217, %203, %cst_77 {dimension_numbers = #tpu.dot_dimension_numbers<[1], [0], [0], [1], [0, 0, 1, 1], [], []>} : vector<8x4xf32>, vector<4x8xf32>, vector<8x8xf32> -> vector<8x8xf32>
    %219 = vector.extract_strided_slice %157 {offsets = [0, 24], sizes = [8, 8], strides = [1, 1]} : vector<8x32xf32> to vector<8x8xf32>
    %220 = vector.extract_strided_slice %163 {offsets = [0, 24], sizes = [4, 8], strides = [1, 1]} : vector<4x32xf32> to vector<4x8xf32>
    %221 = vector.extract_strided_slice %164 {offsets = [0, 24], sizes = [4, 8], strides = [1, 1]} : vector<4x32xf32> to vector<4x8xf32>
    %cst_78 = arith.constant dense<0.000000e+00> : vector<8x4xf32>
    %222 = tpu.matmul %219, %220, %cst_78 {dimension_numbers = #tpu.dot_dimension_numbers<[1], [1], [0], [0], [0, 0, 1, 0], [], []>} : vector<8x8xf32>, vector<4x8xf32>, vector<8x4xf32> -> vector<8x4xf32>
    %cst_79 = arith.constant 0.353553385 : f32
    %223 = vector.broadcast %cst_79 : f32 to vector<8x4xf32>
    %224 = arith.mulf %222, %223 : vector<8x4xf32>
    %225 = arith.addf %224, %17 : vector<8x4xf32>
    %cst_80 = arith.constant dense<0xFF800000> : vector<8xf32>
    %226 = vector.multi_reduction <maximumf>, %225, %cst_80 [1] : vector<8x4xf32> to vector<8xf32>
    %227 = vector.shape_cast %226 : vector<8xf32> to vector<8x1xf32>
    %228 = vector.broadcast %227 : vector<8x1xf32> to vector<8x4xf32>
    %229 = arith.subf %225, %228 : vector<8x4xf32>
    %230 = math.exp %229 : vector<8x4xf32>
    %cst_81 = arith.constant dense<0.000000e+00> : vector<8xf32>
    %231 = vector.multi_reduction <add>, %230, %cst_81 [1] : vector<8x4xf32> to vector<8xf32>
    %232 = vector.shape_cast %231 : vector<8xf32> to vector<8x1xf32>
    %233 = tpu.reciprocal %232 {approx = true} : vector<8x1xf32> -> vector<8x1xf32>
    %234 = vector.broadcast %233 : vector<8x1xf32> to vector<8x4xf32>
    %235 = arith.mulf %230, %234 : vector<8x4xf32>
    %cst_82 = arith.constant dense<0.000000e+00> : vector<8x8xf32>
    %236 = tpu.matmul %235, %221, %cst_82 {dimension_numbers = #tpu.dot_dimension_numbers<[1], [0], [0], [1], [0, 0, 1, 1], [], []>} : vector<8x4xf32>, vector<4x8xf32>, vector<8x8xf32> -> vector<8x8xf32>
    %237 = tpu.concatenate %182, %200, %218, %236 in 1 : vector<8x8xf32>, vector<8x8xf32>, vector<8x8xf32>, vector<8x8xf32> -> vector<8x32xf32>
    %c0_83 = arith.constant 0 : index
    %c0_84 = arith.constant 0 : index
    %238 = vector.load %arg13[%c0_83, %c0_84] : memref<32x32xf32, #tpu.memory_space<vmem>>, vector<32x32xf32>
    %cst_85 = arith.constant dense<0.000000e+00> : vector<8x32xf32>
    %239 = tpu.matmul %237, %238, %cst_85 {dimension_numbers = #tpu.dot_dimension_numbers<[1], [0], [0], [1], [0, 0, 1, 1], [], []>} : vector<8x32xf32>, vector<32x32xf32>, vector<8x32xf32> -> vector<8x32xf32>
    %240 = arith.addf %128, %239 : vector<8x32xf32>
    %c0_86 = arith.constant 0 : index
    %c0_87 = arith.constant 0 : index
    %241 = vector.load %arg14[%c0_86, %c0_87] : memref<1x32xf32, #tpu.memory_space<vmem>>, vector<1x32xf32>
    %242 = vector.broadcast %241 : vector<1x32xf32> to vector<8x32xf32>
    %243 = arith.addf %240, %242 : vector<8x32xf32>
    %c4 = arith.constant 4 : index
    %c0_88 = arith.constant 0 : index
    %244 = vector.load %arg4[%c4, %c0_88] : memref<6x32xf32, #tpu.memory_space<vmem>>, vector<1x32xf32>
    %c5 = arith.constant 5 : index
    %c0_89 = arith.constant 0 : index
    %245 = vector.load %arg4[%c5, %c0_89] : memref<6x32xf32, #tpu.memory_space<vmem>>, vector<1x32xf32>
    %cst_90 = arith.constant dense<0.000000e+00> : vector<8xf32>
    %246 = vector.multi_reduction <add>, %243, %cst_90 [1] : vector<8x32xf32> to vector<8xf32>
    %247 = vector.shape_cast %246 : vector<8xf32> to vector<8x1xf32>
    %cst_91 = arith.constant 3.200000e+01 : f32
    %248 = vector.broadcast %cst_91 : f32 to vector<8x1xf32>
    %249 = arith.divf %247, %248 : vector<8x1xf32>
    %250 = vector.broadcast %249 : vector<8x1xf32> to vector<8x32xf32>
    %251 = arith.subf %243, %250 : vector<8x32xf32>
    %252 = arith.mulf %251, %251 : vector<8x32xf32>
    %cst_92 = arith.constant dense<0.000000e+00> : vector<8xf32>
    %253 = vector.multi_reduction <add>, %252, %cst_92 [1] : vector<8x32xf32> to vector<8xf32>
    %254 = vector.shape_cast %253 : vector<8xf32> to vector<8x1xf32>
    %cst_93 = arith.constant 3.200000e+01 : f32
    %255 = vector.broadcast %cst_93 : f32 to vector<8x1xf32>
    %256 = arith.divf %254, %255 : vector<8x1xf32>
    %257 = vector.broadcast %249 : vector<8x1xf32> to vector<8x32xf32>
    %258 = arith.subf %243, %257 : vector<8x32xf32>
    %cst_94 = arith.constant 9.99999974E-6 : f32
    %259 = vector.broadcast %cst_94 : f32 to vector<8x1xf32>
    %260 = arith.addf %256, %259 : vector<8x1xf32>
    %261 = math.rsqrt %260 : vector<8x1xf32>
    %262 = vector.broadcast %261 : vector<8x1xf32> to vector<8x32xf32>
    %263 = arith.mulf %258, %262 : vector<8x32xf32>
    %264 = vector.broadcast %244 : vector<1x32xf32> to vector<8x32xf32>
    %265 = arith.mulf %263, %264 : vector<8x32xf32>
    %266 = vector.broadcast %245 : vector<1x32xf32> to vector<8x32xf32>
    %267 = arith.addf %265, %266 : vector<8x32xf32>
    %c0_95 = arith.constant 0 : index
    %c0_96 = arith.constant 0 : index
    %268 = vector.load %arg15[%c0_95, %c0_96] : memref<32x64xf32, #tpu.memory_space<vmem>>, vector<32x64xf32>
    %cst_97 = arith.constant dense<0.000000e+00> : vector<8x64xf32>
    %269 = tpu.matmul %267, %268, %cst_97 {dimension_numbers = #tpu.dot_dimension_numbers<[1], [0], [0], [1], [0, 0, 1, 1], [], []>} : vector<8x32xf32>, vector<32x64xf32>, vector<8x64xf32> -> vector<8x64xf32>
    %c0_98 = arith.constant 0 : index
    %c0_99 = arith.constant 0 : index
    %270 = vector.load %arg16[%c0_98, %c0_99] : memref<1x64xf32, #tpu.memory_space<vmem>>, vector<1x64xf32>
    %271 = vector.broadcast %270 : vector<1x64xf32> to vector<8x64xf32>
    %272 = arith.addf %269, %271 : vector<8x64xf32>
    %cst_100 = arith.constant 0.000000e+00 : f32
    %273 = vector.broadcast %cst_100 : f32 to vector<8x64xf32>
    %274 = arith.maximumf %272, %273 : vector<8x64xf32>
    %c0_101 = arith.constant 0 : index
    %c0_102 = arith.constant 0 : index
    %275 = vector.load %arg17[%c0_101, %c0_102] : memref<64x32xf32, #tpu.memory_space<vmem>>, vector<64x32xf32>
    %cst_103 = arith.constant dense<0.000000e+00> : vector<8x32xf32>
    %276 = tpu.matmul %274, %275, %cst_103 {dimension_numbers = #tpu.dot_dimension_numbers<[1], [0], [0], [1], [0, 0, 1, 1], [], []>} : vector<8x64xf32>, vector<64x32xf32>, vector<8x32xf32> -> vector<8x32xf32>
    %c0_104 = arith.constant 0 : index
    %c0_105 = arith.constant 0 : index
    %277 = vector.load %arg18[%c0_104, %c0_105] : memref<1x32xf32, #tpu.memory_space<vmem>>, vector<1x32xf32>
    %278 = vector.broadcast %277 : vector<1x32xf32> to vector<8x32xf32>
    %279 = arith.addf %276, %278 : vector<8x32xf32>
    %280 = arith.addf %243, %279 : vector<8x32xf32>
    %c0_106 = arith.constant 0 : index
    %c0_107 = arith.constant 0 : index
    %c0_108 = arith.constant 0 : index
    %281 = vector.load %arg19[%c0_106, %c0_107, %c0_108] : memref<1x8x32xf32, #tpu.memory_space<vmem>>, vector<1x8x32xf32>
    %282 = vector.shape_cast %281 : vector<1x8x32xf32> to vector<8x32xf32>
    %283 = vector.shape_cast %280 : vector<8x32xf32> to vector<1x8x32xf32>
    tpu.vector_store %arg19[%c0_106, %c0_107, %c0_108], %283 {strides = array<i32>} : memref<1x8x32xf32, #tpu.memory_space<vmem>>, vector<1x8x32xf32>,
    return
  }
  func.func @transform_0(%arg0: i32, %arg1: memref<2xi32, #tpu.memory_space<smem>>) -> (i32, i32, i32) {
    %c0_i32 = arith.constant 0 : i32
    %c0_i32_0 = arith.constant 0 : i32
    %c0_i32_1 = arith.constant 0 : i32
    return %arg0, %c0_i32, %c0_i32_0 : i32, i32, i32
  }
  func.func @transform_1(%arg0: i32, %arg1: memref<2xi32, #tpu.memory_space<smem>>) -> (i32, i32, i32) {
    %c0_i32 = arith.constant 0 : i32
    %c0_i32_0 = arith.constant 0 : i32
    %c0_i32_1 = arith.constant 0 : i32
    return %arg0, %c0_i32, %c0_i32_0 : i32, i32, i32
  }
  func.func @transform_2(%arg0: i32, %arg1: memref<2xi32, #tpu.memory_space<smem>>) -> (i32, i32) {
    %c0_i32 = arith.constant 0 : i32
    %c0_i32_0 = arith.constant 0 : i32
    %c0_i32_1 = arith.constant 0 : i32
    return %c0_i32, %c0_i32_0 : i32, i32
  }
  func.func @transform_3(%arg0: i32, %arg1: memref<2xi32, #tpu.memory_space<smem>>) -> (i32, i32) {
    %c0_i32 = arith.constant 0 : i32
    %c0_i32_0 = arith.constant 0 : i32
    %c0_i32_1 = arith.constant 0 : i32
    return %c0_i32, %c0_i32_0 : i32, i32
  }
  func.func @transform_4(%arg0: i32, %arg1: memref<2xi32, #tpu.memory_space<smem>>) -> (i32, i32) {
    %c0_i32 = arith.constant 0 : i32
    %c0_i32_0 = arith.constant 0 : i32
    %c0_i32_1 = arith.constant 0 : i32
    return %c0_i32, %c0_i32_0 : i32, i32
  }
  func.func @transform_5(%arg0: i32, %arg1: memref<2xi32, #tpu.memory_space<smem>>) -> (i32, i32) {
    %c0_i32 = arith.constant 0 : i32
    %c0_i32_0 = arith.constant 0 : i32
    %c0_i32_1 = arith.constant 0 : i32
    return %c0_i32, %c0_i32_0 : i32, i32
  }
  func.func @transform_6(%arg0: i32, %arg1: memref<2xi32, #tpu.memory_space<smem>>) -> (i32, i32) {
    %c0_i32 = arith.constant 0 : i32
    %c0_i32_0 = arith.constant 0 : i32
    %c0_i32_1 = arith.constant 0 : i32
    return %c0_i32, %c0_i32_0 : i32, i32
  }
  func.func @transform_7(%arg0: i32, %arg1: memref<2xi32, #tpu.memory_space<smem>>) -> (i32, i32) {
    %c0_i32 = arith.constant 0 : i32
    %c0_i32_0 = arith.constant 0 : i32
    %c0_i32_1 = arith.constant 0 : i32
    return %c0_i32, %c0_i32_0 : i32, i32
  }
  func.func @transform_8(%arg0: i32, %arg1: memref<2xi32, #tpu.memory_space<smem>>) -> (i32, i32) {
    %c0_i32 = arith.constant 0 : i32
    %c0_i32_0 = arith.constant 0 : i32
    %c0_i32_1 = arith.constant 0 : i32
    return %c0_i32, %c0_i32_0 : i32, i32
  }
  func.func @transform_9(%arg0: i32, %arg1: memref<2xi32, #tpu.memory_space<smem>>) -> (i32, i32) {
    %c0_i32 = arith.constant 0 : i32
    %c0_i32_0 = arith.constant 0 : i32
    %c0_i32_1 = arith.constant 0 : i32
    return %c0_i32, %c0_i32_0 : i32, i32
  }
  func.func @transform_10(%arg0: i32, %arg1: memref<2xi32, #tpu.memory_space<smem>>) -> (i32, i32) {
    %c0_i32 = arith.constant 0 : i32
    %c0_i32_0 = arith.constant 0 : i32
    %c0_i32_1 = arith.constant 0 : i32
    return %c0_i32, %c0_i32_0 : i32, i32
  }
  func.func @transform_11(%arg0: i32, %arg1: memref<2xi32, #tpu.memory_space<smem>>) -> (i32, i32) {
    %c0_i32 = arith.constant 0 : i32
    %c0_i32_0 = arith.constant 0 : i32
    %c0_i32_1 = arith.constant 0 : i32
    return %c0_i32, %c0_i32_0 : i32, i32
  }
  func.func @transform_12(%arg0: i32, %arg1: memref<2xi32, #tpu.memory_space<smem>>) -> (i32, i32) {
    %c0_i32 = arith.constant 0 : i32
    %c0_i32_0 = arith.constant 0 : i32
    %c0_i32_1 = arith.constant 0 : i32
    return %c0_i32, %c0_i32_0 : i32, i32
  }
  func.func @transform_13(%arg0: i32, %arg1: memref<2xi32, #tpu.memory_space<smem>>) -> (i32, i32) {
    %c0_i32 = arith.constant 0 : i32
    %c0_i32_0 = arith.constant 0 : i32
    %c0_i32_1 = arith.constant 0 : i32
    return %c0_i32, %c0_i32_0 : i32, i32
  }
  func.func @transform_14(%arg0: i32, %arg1: memref<2xi32, #tpu.memory_space<smem>>) -> (i32, i32) {
    %c0_i32 = arith.constant 0 : i32
    %c0_i32_0 = arith.constant 0 : i32
    %c0_i32_1 = arith.constant 0 : i32
    return %c0_i32, %c0_i32_0 : i32, i32
  }
  func.func @transform_15(%arg0: i32, %arg1: memref<2xi32, #tpu.memory_space<smem>>) -> (i32, i32) {
    %c0_i32 = arith.constant 0 : i32
    %c0_i32_0 = arith.constant 0 : i32
    %c0_i32_1 = arith.constant 0 : i32
    return %c0_i32, %c0_i32_0 : i32, i32
  }
  func.func @transform_16(%arg0: i32, %arg1: memref<2xi32, #tpu.memory_space<smem>>) -> (i32, i32) {
    %c0_i32 = arith.constant 0 : i32
    %c0_i32_0 = arith.constant 0 : i32
    %c0_i32_1 = arith.constant 0 : i32
    return %c0_i32, %c0_i32_0 : i32, i32
  }
  func.func @transform_17(%arg0: i32, %arg1: memref<2xi32, #tpu.memory_space<smem>>) -> (i32, i32, i32) {
    %c0_i32 = arith.constant 0 : i32
    %c0_i32_0 = arith.constant 0 : i32
    %c0_i32_1 = arith.constant 0 : i32
    return %arg0, %c0_i32, %c0_i32_0 : i32, i32, i32
  }
}

</mosaic_0001>

<bundles_post_ra>
// kernel: _speech_transformer_forward.7
= control target key start
LH: loop header
LB: loop body
LE: loop exit
PB: predicated region body
PF: predicated region fallthrough
CT: control target
= control target key end

     0   :  { %vm277_vm0 = vcmask 1040384   ;;  %vm84_vm1 = vcmask 72704   ;;  %vm618_vm2 = vcmask 64512   ;;  %s1366_s1 = inlined_call_operand.vmem [shape: f32[9,8], index: 1, kind: input, shape index: {}]   ;;  %s1367_s0 = inlined_call_operand.vmem [shape: f32[512,9], index: 0, kind: input, shape index: {}]   ;;  %s1368_s2 = inlined_call_operand.vmem [shape: f32[1,8], index: 2, kind: input, shape index: {}]   ;;  %s1369_s3 = inlined_call_operand.vmem [shape: f32[512,8], index: 3, kind: output, shape index: {}]  }
   0x1   :  { %v79_v0 = vld [vmem:[%s1366_s1 + $0x8] sm:$0x1]  ;;  %v78_v1 = vld [vmem:[%s1366_s1] sm:$0xff]  ;;  %v48_v10 = vld [vmem:[%s1367_s0 + $0x110] sm:$0xff] }
   0x2   :  { %753 = vmatpush.msk.msra.mxu2 %vm277_vm0, %v79_v0  ;;  %754 = vmatpush.msk.msra.mxu3 %vm277_vm0, %v79_v0  ;;  %v46_v2 = vld [vmem:[%s1367_s0 + $0x100] sm:$0xff]  ;;  %v47_v6 = vld [vmem:[%s1367_s0 + $0x108] sm:$0xff]  ;;  %v64_v11 = vld [vmem:[%s1367_s0 + $0x190] sm:$0xff] }
   0x3   :  { %v62_v3 = vld [vmem:[%s1367_s0 + $0x180] sm:$0xff]  ;;  %687 = vmatpush.msk.msra.mxu0 %vm277_vm0, %v79_v0  ;;  %752 = vmatpush.msk.msra.mxu1 %vm277_vm0, %v79_v0  ;;  %v63_v7 = vld [vmem:[%s1367_s0 + $0x188] sm:$0xff]  ;;  %v16_v12 = vld [vmem:[%s1367_s0 + $0x10] sm:$0xff] }
   0x4   :  { %756 = vmatpush.msra.mxu2 %v78_v1  ;;  %757 = vmatpush.msra.mxu3 %v78_v1  ;;  %v14_v4 = vld [vmem:[%s1367_s0] sm:$0xff]  ;;  %v15_v8 = vld [vmem:[%s1367_s0 + $0x8] sm:$0xff]  ;;  %v32_v13 = vld [vmem:[%s1367_s0 + $0x90] sm:$0xff] }
   0x5   :  { %v30_v5 = vld [vmem:[%s1367_s0 + $0x80] sm:$0xff]  ;;  %720 = vmatmul.msk.f32.vlgmr.msra.gmra.mxu2 %vm84_vm1, %v46_v2  ;;  %736 = vmatmul.msk.f32.vlgmr.msra.gmra.mxu3 %vm84_vm1, %v62_v3  ;;  %v31_v9 = vld [vmem:[%s1367_s0 + $0x88] sm:$0xff]  ;;  %v49_v14 = vld [vmem:[%s1367_s0 + $0x118] sm:$0xff] }
   0x6   :  { %296 = vmatpush.msra.mxu0 %v78_v1  ;;  %755 = vmatpush.msra.mxu1 %v78_v1  ;;  %v65_v15 = vld [vmem:[%s1367_s0 + $0x198] sm:$0xff]  ;;  %v50_v18 = vld [vmem:[%s1367_s0 + $0x120] sm:$0xff]  ;;  %v51_v22 = vld [vmem:[%s1367_s0 + $0x128] sm:$0xff] }
   0x7   :  { %688 = vmatmul.msk.f32.vlgmr.msra.gmra.mxu0 %vm84_vm1, %v14_v4  ;;  %704 = vmatmul.msk.f32.vlgmr.msra.gmra.mxu1 %vm84_vm1, %v30_v5  ;;  %v17_v16 = vld [vmem:[%s1367_s0 + $0x18] sm:$0xff]  ;;  %v66_v19 = vld [vmem:[%s1367_s0 + $0x1a0] sm:$0xff]  ;;  %v67_v23 = vld [vmem:[%s1367_s0 + $0x1a8] sm:$0xff] }
   0x8   :  { %v33_v17 = vld [vmem:[%s1367_s0 + $0x98] sm:$0xff]  ;;  %v18_v20 = vld [vmem:[%s1367_s0 + $0x20] sm:$0xff]  ;;  %v19_v24 = vld [vmem:[%s1367_s0 + $0x28] sm:$0xff] }
   0x9   :  { %v34_v21 = vld [vmem:[%s1367_s0 + $0xa0] sm:$0xff]  ;;  %v35_v25 = vld [vmem:[%s1367_s0 + $0xa8] sm:$0xff]  ;;  %v52_v26 = vld [vmem:[%s1367_s0 + $0x130] sm:$0xff] }
   0xa   :  { %v68_v27 = vld [vmem:[%s1367_s0 + $0x1b0] sm:$0xff]  ;;  %v53_v30 = vld [vmem:[%s1367_s0 + $0x138] sm:$0xff]  ;;  %v54_v34 = vld [vmem:[%s1367_s0 + $0x140] sm:$0xff] }
   0xb   :  { %v20_v28 = vld [vmem:[%s1367_s0 + $0x30] sm:$0xff]  ;;  %v69_v31 = vld [vmem:[%s1367_s0 + $0x1b8] sm:$0xff]  ;;  %v70_v35 = vld [vmem:[%s1367_s0 + $0x1c0] sm:$0xff] }
   0xc   :  { %v36_v29 = vld [vmem:[%s1367_s0 + $0xb0] sm:$0xff]  ;;  %v21_v32 = vld [vmem:[%s1367_s0 + $0x38] sm:$0xff]  ;;  %v22_v36 = vld [vmem:[%s1367_s0 + $0x40] sm:$0xff] }
   0xd   :  { %721 = vmatmul.msk.f32.gmra.mxu2 %vm84_vm1, %v47_v6  ;;  %737 = vmatmul.msk.f32.gmra.mxu3 %vm84_vm1, %v63_v7  ;;  %v37_v33 = vld [vmem:[%s1367_s0 + $0xb8] sm:$0xff]  ;;  %v38_v37 = vld [vmem:[%s1367_s0 + $0xc0] sm:$0xff]  ;;  %v55_v38 = vld [vmem:[%s1367_s0 + $0x148] sm:$0xff] }
   0xe   :  { %v71_v39 = vld [vmem:[%s1367_s0 + $0x1c8] sm:$0xff]  ;;  %v56_v42 = vld [vmem:[%s1367_s0 + $0x150] sm:$0xff]  ;;  %v57_v46 = vld [vmem:[%s1367_s0 + $0x158] sm:$0xff] }
   0xf   :  { %689 = vmatmul.msk.f32.gmra.mxu0 %vm84_vm1, %v15_v8  ;;  %705 = vmatmul.msk.f32.gmra.mxu1 %vm84_vm1, %v31_v9  ;;  %v23_v40 = vld [vmem:[%s1367_s0 + $0x48] sm:$0xff]  ;;  %v72_v43 = vld [vmem:[%s1367_s0 + $0x1d0] sm:$0xff]  ;;  %v73_v47 = vld [vmem:[%s1367_s0 + $0x1d8] sm:$0xff] }
  0x10   :  { %v39_v41 = vld [vmem:[%s1367_s0 + $0xc8] sm:$0xff]  ;;  %v24_v44 = vld [vmem:[%s1367_s0 + $0x50] sm:$0xff]  ;;  %v25_v48 = vld [vmem:[%s1367_s0 + $0x58] sm:$0xff] }
  0x11   :  { %v40_v45 = vld [vmem:[%s1367_s0 + $0xd0] sm:$0xff]  ;;  %v41_v49 = vld [vmem:[%s1367_s0 + $0xd8] sm:$0xff]  ;;  %v58_v50 = vld [vmem:[%s1367_s0 + $0x160] sm:$0xff] }
  0x12   :  { %v74_v51 = vld [vmem:[%s1367_s0 + $0x1e0] sm:$0xff]  ;;  %v59_v54 = vld [vmem:[%s1367_s0 + $0x168] sm:$0xff]  ;;  %v60_v58 = vld [vmem:[%s1367_s0 + $0x170] sm:$0xff] }
  0x13   :  { %v26_v52 = vld [vmem:[%s1367_s0 + $0x60] sm:$0xff]  ;;  %v75_v55 = vld [vmem:[%s1367_s0 + $0x1e8] sm:$0xff]  ;;  %v76_v59 = vld [vmem:[%s1367_s0 + $0x1f0] sm:$0xff] }
  0x14   :  { %v42_v53 = vld [vmem:[%s1367_s0 + $0xe0] sm:$0xff]  ;;  %v27_v56 = vld [vmem:[%s1367_s0 + $0x68] sm:$0xff]  ;;  %v28_v60 = vld [vmem:[%s1367_s0 + $0x70] sm:$0xff] }
  0x15   :  { %722 = vmatmul.msk.f32.gmra.mxu2 %vm84_vm1, %v48_v10  ;;  %738 = vmatmul.msk.f32.gmra.mxu3 %vm84_vm1, %v64_v11  ;;  %v43_v57 = vld [vmem:[%s1367_s0 + $0xe8] sm:$0xff]  ;;  %v44_v61 = vld [vmem:[%s1367_s0 + $0xf0] sm:$0xff]  ;;  %v61_v62 = vld [vmem:[%s1367_s0 + $0x178] sm:$0xff] }
  0x16   :  { %v77_v63 = vld [vmem:[%s1367_s0 + $0x1f8] sm:$0xff]  ;;  %v1044_v2 = vld [vmem:[%s1368_s2] ss:$0 sm:$0xff] }
  0x17   :  { %690 = vmatmul.msk.f32.gmra.mxu0 %vm84_vm1, %v16_v12  ;;  %706 = vmatmul.msk.f32.gmra.mxu1 %vm84_vm1, %v32_v13  ;;  %v29_v0 = vld [vmem:[%s1367_s0 + $0x78] sm:$0xff] }
  0x18   :  { %v45_v1 = vld [vmem:[%s1367_s0 + $0xf8] sm:$0xff] }
  0x1d   :  { %723 = vmatmul.msk.f32.gmra.mxu2 %vm84_vm1, %v49_v14  ;;  %739 = vmatmul.msk.f32.gmra.mxu3 %vm84_vm1, %v65_v15 }
  0x1f   :  { %691 = vmatmul.msk.f32.gmra.mxu0 %vm84_vm1, %v17_v16  ;;  %707 = vmatmul.msk.f32.gmra.mxu1 %vm84_vm1, %v33_v17 }
  0x25   :  { %724 = vmatmul.msk.f32.gmra.mxu2 %vm84_vm1, %v50_v18  ;;  %740 = vmatmul.msk.f32.gmra.mxu3 %vm84_vm1, %v66_v19 }
  0x27   :  { %692 = vmatmul.msk.f32.gmra.mxu0 %vm84_vm1, %v18_v20  ;;  %708 = vmatmul.msk.f32.gmra.mxu1 %vm84_vm1, %v34_v21 }
  0x2d   :  { %725 = vmatmul.msk.f32.gmra.mxu2 %vm84_vm1, %v51_v22  ;;  %741 = vmatmul.msk.f32.gmra.mxu3 %vm84_vm1, %v67_v23 }
  0x2f   :  { %693 = vmatmul.msk.f32.gmra.mxu0 %vm84_vm1, %v19_v24  ;;  %709 = vmatmul.msk.f32.gmra.mxu1 %vm84_vm1, %v35_v25 }
  0x35   :  { %726 = vmatmul.msk.f32.gmra.mxu2 %vm84_vm1, %v52_v26  ;;  %742 = vmatmul.msk.f32.gmra.mxu3 %vm84_vm1, %v68_v27 }
  0x37   :  { %694 = vmatmul.msk.f32.gmra.mxu0 %vm84_vm1, %v20_v28  ;;  %710 = vmatmul.msk.f32.gmra.mxu1 %vm84_vm1, %v36_v29 }
  0x3d   :  { %727 = vmatmul.msk.f32.gmra.mxu2 %vm84_vm1, %v53_v30  ;;  %743 = vmatmul.msk.f32.gmra.mxu3 %vm84_vm1, %v69_v31 }
  0x3f   :  { %695 = vmatmul.msk.f32.gmra.mxu0 %vm84_vm1, %v21_v32  ;;  %711 = vmatmul.msk.f32.gmra.mxu1 %vm84_vm1, %v37_v33 }
  0x45   :  { %728 = vmatmul.msk.f32.gmra.mxu2 %vm84_vm1, %v54_v34  ;;  %744 = vmatmul.msk.f32.gmra.mxu3 %vm84_vm1, %v70_v35 }
  0x47   :  { %696 = vmatmul.msk.f32.gmra.mxu0 %vm84_vm1, %v22_v36  ;;  %712 = vmatmul.msk.f32.gmra.mxu1 %vm84_vm1, %v38_v37 }
  0x4d   :  { %729 = vmatmul.msk.f32.gmra.mxu2 %vm84_vm1, %v55_v38  ;;  %745 = vmatmul.msk.f32.gmra.mxu3 %vm84_vm1, %v71_v39 }
  0x4f   :  { %697 = vmatmul.msk.f32.gmra.mxu0 %vm84_vm1, %v23_v40  ;;  %713 = vmatmul.msk.f32.gmra.mxu1 %vm84_vm1, %v39_v41 }
  0x55   :  { %730 = vmatmul.msk.f32.gmra.mxu2 %vm84_vm1, %v56_v42  ;;  %746 = vmatmul.msk.f32.gmra.mxu3 %vm84_vm1, %v72_v43 }
  0x57   :  { %698 = vmatmul.msk.f32.gmra.mxu0 %vm84_vm1, %v24_v44  ;;  %714 = vmatmul.msk.f32.gmra.mxu1 %vm84_vm1, %v40_v45 }
  0x5d   :  { %731 = vmatmul.msk.f32.gmra.mxu2 %vm84_vm1, %v57_v46  ;;  %747 = vmatmul.msk.f32.gmra.mxu3 %vm84_vm1, %v73_v47 }
  0x5f   :  { %699 = vmatmul.msk.f32.gmra.mxu0 %vm84_vm1, %v25_v48  ;;  %715 = vmatmul.msk.f32.gmra.mxu1 %vm84_vm1, %v41_v49 }
  0x65   :  { %732 = vmatmul.msk.f32.gmra.mxu2 %vm84_vm1, %v58_v50  ;;  %748 = vmatmul.msk.f32.gmra.mxu3 %vm84_vm1, %v74_v51 }
  0x67   :  { %700 = vmatmul.msk.f32.gmra.mxu0 %vm84_vm1, %v26_v52  ;;  %716 = vmatmul.msk.f32.gmra.mxu1 %vm84_vm1, %v42_v53 }
  0x6d   :  { %733 = vmatmul.msk.f32.gmra.mxu2 %vm84_vm1, %v59_v54  ;;  %749 = vmatmul.msk.f32.gmra.mxu3 %vm84_vm1, %v75_v55 }
  0x6f   :  { %701 = vmatmul.msk.f32.gmra.mxu0 %vm84_vm1, %v27_v56  ;;  %717 = vmatmul.msk.f32.gmra.mxu1 %vm84_vm1, %v43_v57 }
  0x75   :  { %734 = vmatmul.msk.f32.gmra.mxu2 %vm84_vm1, %v60_v58  ;;  %750 = vmatmul.msk.f32.gmra.mxu3 %vm84_vm1, %v76_v59 }
  0x77   :  { %702 = vmatmul.msk.f32.gmra.mxu0 %vm84_vm1, %v28_v60  ;;  %718 = vmatmul.msk.f32.gmra.mxu1 %vm84_vm1, %v44_v61 }
  0x7d   :  { %735 = vmatmul.msk.f32.gmra.mxu2 %vm84_vm1, %v61_v62  ;;  %751 = vmatmul.msk.f32.gmra.mxu3 %vm84_vm1, %v77_v63 }
  0x7f   :  { %703 = vmatmul.msk.f32.gmra.mxu0 %vm84_vm1, %v29_v0  ;;  %719 = vmatmul.msk.f32.gmra.mxu1 %vm84_vm1, %v45_v1 }
  0x84   :  { %v298_v3 = vpop.f32.mrf.mxu0  ;;  %v346_v4 = vpop.f32.mrf.mxu1 }
  0x85   :  { %v299_v5 = vadd.f32 %v1044_v2, %v298_v3  ;;  %v347_v6 = vadd.f32 %v1044_v2, %v346_v4 }
  0x87   :  { %v490_v7 = vmax.f32 %v299_v5, 0.0  ;;  %v506_v8 = vmax.f32 %v347_v6, 0.0 }
  0x88   :  { %v394_v9 = vpop.f32.mrf.mxu2  ;;  %v442_v10 = vpop.f32.mrf.mxu3 }
  0x89   :  { %v554_v11 = vmin.f32 %v490_v7, 20.0  ;;  %v570_v12 = vmin.f32 %v506_v8, 20.0  ;;  %v395_v13 = vadd.f32 %v1044_v2, %v394_v9  ;;  %v443_v14 = vadd.f32 %v1044_v2, %v442_v10 }
  0x8b   :  { %619 = vst.msk [vmem:[%s1369_s3] sm:$0xff] %vm618_vm2, %v554_v11  ;;  %v522_v15 = vmax.f32 %v395_v13, 0.0  ;;  %v538_v16 = vmax.f32 %v443_v14, 0.0 }
  0x8c   :  { %635 = vst.msk [vmem:[%s1369_s3 + $0x80] sm:$0xff] %vm618_vm2, %v570_v12  ;;  %v301_v17 = vpop.f32.mrf.mxu0  ;;  %v349_v18 = vpop.f32.mrf.mxu1 }
  0x8d   :  { %v586_v19 = vmin.f32 %v522_v15, 20.0  ;;  %v602_v20 = vmin.f32 %v538_v16, 20.0  ;;  %v302_v21 = vadd.f32 %v1044_v2, %v301_v17  ;;  %v350_v22 = vadd.f32 %v1044_v2, %v349_v18 }
  0x8f   :  { %651 = vst.msk [vmem:[%s1369_s3 + $0x100] sm:$0xff] %vm618_vm2, %v586_v19  ;;  %v491_v23 = vmax.f32 %v302_v21, 0.0  ;;  %v507_v24 = vmax.f32 %v350_v22, 0.0 }
  0x90   :  { %667 = vst.msk [vmem:[%s1369_s3 + $0x180] sm:$0xff] %vm618_vm2, %v602_v20  ;;  %v397_v25 = vpop.f32.mrf.mxu2  ;;  %v445_v26 = vpop.f32.mrf.mxu3 }
  0x91   :  { %v555_v27 = vmin.f32 %v491_v23, 20.0  ;;  %v571_v28 = vmin.f32 %v507_v24, 20.0  ;;  %v398_v29 = vadd.f32 %v1044_v2, %v397_v25  ;;  %v446_v30 = vadd.f32 %v1044_v2, %v445_v26 }
  0x93   :  { %620 = vst.msk [vmem:[%s1369_s3 + $0x8] sm:$0xff] %vm618_vm2, %v555_v27  ;;  %v523_v31 = vmax.f32 %v398_v29, 0.0  ;;  %v539_v32 = vmax.f32 %v446_v30, 0.0 }
  0x94   :  { %636 = vst.msk [vmem:[%s1369_s3 + $0x88] sm:$0xff] %vm618_vm2, %v571_v28  ;;  %v304_v33 = vpop.f32.mrf.mxu0  ;;  %v352_v34 = vpop.f32.mrf.mxu1 }
  0x95   :  { %v587_v35 = vmin.f32 %v523_v31, 20.0  ;;  %v603_v36 = vmin.f32 %v539_v32, 20.0  ;;  %v305_v37 = vadd.f32 %v1044_v2, %v304_v33  ;;  %v353_v38 = vadd.f32 %v1044_v2, %v352_v34 }
  0x97   :  { %652 = vst.msk [vmem:[%s1369_s3 + $0x108] sm:$0xff] %vm618_vm2, %v587_v35  ;;  %v492_v39 = vmax.f32 %v305_v37, 0.0  ;;  %v508_v40 = vmax.f32 %v353_v38, 0.0 }
  0x98   :  { %668 = vst.msk [vmem:[%s1369_s3 + $0x188] sm:$0xff] %vm618_vm2, %v603_v36  ;;  %v400_v41 = vpop.f32.mrf.mxu2  ;;  %v448_v42 = vpop.f32.mrf.mxu3 }
  0x99   :  { %v556_v43 = vmin.f32 %v492_v39, 20.0  ;;  %v572_v44 = vmin.f32 %v508_v40, 20.0  ;;  %v401_v45 = vadd.f32 %v1044_v2, %v400_v41  ;;  %v449_v46 = vadd.f32 %v1044_v2, %v448_v42 }
  0x9b   :  { %621 = vst.msk [vmem:[%s1369_s3 + $0x10] sm:$0xff] %vm618_vm2, %v556_v43  ;;  %v524_v47 = vmax.f32 %v401_v45, 0.0  ;;  %v540_v48 = vmax.f32 %v449_v46, 0.0 }
  0x9c   :  { %637 = vst.msk [vmem:[%s1369_s3 + $0x90] sm:$0xff] %vm618_vm2, %v572_v44  ;;  %v307_v49 = vpop.f32.mrf.mxu0  ;;  %v355_v50 = vpop.f32.mrf.mxu1 }
  0x9d   :  { %v588_v51 = vmin.f32 %v524_v47, 20.0  ;;  %v604_v52 = vmin.f32 %v540_v48, 20.0  ;;  %v308_v53 = vadd.f32 %v1044_v2, %v307_v49  ;;  %v356_v54 = vadd.f32 %v1044_v2, %v355_v50 }
  0x9f   :  { %653 = vst.msk [vmem:[%s1369_s3 + $0x110] sm:$0xff] %vm618_vm2, %v588_v51  ;;  %v493_v55 = vmax.f32 %v308_v53, 0.0  ;;  %v509_v56 = vmax.f32 %v356_v54, 0.0 }
  0xa0   :  { %669 = vst.msk [vmem:[%s1369_s3 + $0x190] sm:$0xff] %vm618_vm2, %v604_v52  ;;  %v403_v57 = vpop.f32.mrf.mxu2  ;;  %v451_v58 = vpop.f32.mrf.mxu3 }
  0xa1   :  { %v557_v59 = vmin.f32 %v493_v55, 20.0  ;;  %v573_v60 = vmin.f32 %v509_v56, 20.0  ;;  %v404_v61 = vadd.f32 %v1044_v2, %v403_v57  ;;  %v452_v62 = vadd.f32 %v1044_v2, %v451_v58 }
  0xa3   :  { %622 = vst.msk [vmem:[%s1369_s3 + $0x18] sm:$0xff] %vm618_vm2, %v557_v59  ;;  %v525_v63 = vmax.f32 %v404_v61, 0.0  ;;  %v541_v0 = vmax.f32 %v452_v62, 0.0 }
  0xa4   :  { %638 = vst.msk [vmem:[%s1369_s3 + $0x98] sm:$0xff] %vm618_vm2, %v573_v60  ;;  %v310_v1 = vpop.f32.mrf.mxu0  ;;  %v358_v3 = vpop.f32.mrf.mxu1 }
  0xa5   :  { %v589_v4 = vmin.f32 %v525_v63, 20.0  ;;  %v605_v5 = vmin.f32 %v541_v0, 20.0  ;;  %v311_v6 = vadd.f32 %v1044_v2, %v310_v1  ;;  %v359_v7 = vadd.f32 %v1044_v2, %v358_v3 }
  0xa7   :  { %654 = vst.msk [vmem:[%s1369_s3 + $0x118] sm:$0xff] %vm618_vm2, %v589_v4  ;;  %v494_v8 = vmax.f32 %v311_v6, 0.0  ;;  %v510_v9 = vmax.f32 %v359_v7, 0.0 }
  0xa8   :  { %670 = vst.msk [vmem:[%s1369_s3 + $0x198] sm:$0xff] %vm618_vm2, %v605_v5  ;;  %v406_v10 = vpop.f32.mrf.mxu2  ;;  %v454_v11 = vpop.f32.mrf.mxu3 }
  0xa9   :  { %v558_v12 = vmin.f32 %v494_v8, 20.0  ;;  %v574_v13 = vmin.f32 %v510_v9, 20.0  ;;  %v407_v14 = vadd.f32 %v1044_v2, %v406_v10  ;;  %v455_v15 = vadd.f32 %v1044_v2, %v454_v11 }
  0xab   :  { %623 = vst.msk [vmem:[%s1369_s3 + $0x20] sm:$0xff] %vm618_vm2, %v558_v12  ;;  %v526_v16 = vmax.f32 %v407_v14, 0.0  ;;  %v542_v17 = vmax.f32 %v455_v15, 0.0 }
  0xac   :  { %639 = vst.msk [vmem:[%s1369_s3 + $0xa0] sm:$0xff] %vm618_vm2, %v574_v13  ;;  %v313_v18 = vpop.f32.mrf.mxu0  ;;  %v361_v19 = vpop.f32.mrf.mxu1 }
  0xad   :  { %v590_v20 = vmin.f32 %v526_v16, 20.0  ;;  %v606_v21 = vmin.f32 %v542_v17, 20.0  ;;  %v314_v22 = vadd.f32 %v1044_v2, %v313_v18  ;;  %v362_v23 = vadd.f32 %v1044_v2, %v361_v19 }
  0xaf   :  { %655 = vst.msk [vmem:[%s1369_s3 + $0x120] sm:$0xff] %vm618_vm2, %v590_v20  ;;  %v495_v24 = vmax.f32 %v314_v22, 0.0  ;;  %v511_v25 = vmax.f32 %v362_v23, 0.0 }
  0xb0   :  { %671 = vst.msk [vmem:[%s1369_s3 + $0x1a0] sm:$0xff] %vm618_vm2, %v606_v21  ;;  %v409_v26 = vpop.f32.mrf.mxu2  ;;  %v457_v27 = vpop.f32.mrf.mxu3 }
  0xb1   :  { %v559_v28 = vmin.f32 %v495_v24, 20.0  ;;  %v575_v29 = vmin.f32 %v511_v25, 20.0  ;;  %v410_v30 = vadd.f32 %v1044_v2, %v409_v26  ;;  %v458_v31 = vadd.f32 %v1044_v2, %v457_v27 }
  0xb3   :  { %624 = vst.msk [vmem:[%s1369_s3 + $0x28] sm:$0xff] %vm618_vm2, %v559_v28  ;;  %v527_v32 = vmax.f32 %v410_v30, 0.0  ;;  %v543_v33 = vmax.f32 %v458_v31, 0.0 }
  0xb4   :  { %640 = vst.msk [vmem:[%s1369_s3 + $0xa8] sm:$0xff] %vm618_vm2, %v575_v29  ;;  %v316_v34 = vpop.f32.mrf.mxu0  ;;  %v364_v35 = vpop.f32.mrf.mxu1 }
  0xb5   :  { %v591_v36 = vmin.f32 %v527_v32, 20.0  ;;  %v607_v37 = vmin.f32 %v543_v33, 20.0  ;;  %v317_v38 = vadd.f32 %v1044_v2, %v316_v34  ;;  %v365_v39 = vadd.f32 %v1044_v2, %v364_v35 }
  0xb7   :  { %656 = vst.msk [vmem:[%s1369_s3 + $0x128] sm:$0xff] %vm618_vm2, %v591_v36  ;;  %v496_v40 = vmax.f32 %v317_v38, 0.0  ;;  %v512_v41 = vmax.f32 %v365_v39, 0.0 }
  0xb8   :  { %672 = vst.msk [vmem:[%s1369_s3 + $0x1a8] sm:$0xff] %vm618_vm2, %v607_v37  ;;  %v412_v42 = vpop.f32.mrf.mxu2  ;;  %v460_v43 = vpop.f32.mrf.mxu3 }
  0xb9   :  { %v560_v44 = vmin.f32 %v496_v40, 20.0  ;;  %v576_v45 = vmin.f32 %v512_v41, 20.0  ;;  %v413_v46 = vadd.f32 %v1044_v2, %v412_v42  ;;  %v461_v47 = vadd.f32 %v1044_v2, %v460_v43 }
  0xbb   :  { %625 = vst.msk [vmem:[%s1369_s3 + $0x30] sm:$0xff] %vm618_vm2, %v560_v44  ;;  %v528_v48 = vmax.f32 %v413_v46, 0.0  ;;  %v544_v49 = vmax.f32 %v461_v47, 0.0 }
  0xbc   :  { %641 = vst.msk [vmem:[%s1369_s3 + $0xb0] sm:$0xff] %vm618_vm2, %v576_v45  ;;  %v319_v50 = vpop.f32.mrf.mxu0  ;;  %v367_v51 = vpop.f32.mrf.mxu1 }
  0xbd   :  { %v592_v52 = vmin.f32 %v528_v48, 20.0  ;;  %v608_v53 = vmin.f32 %v544_v49, 20.0  ;;  %v320_v54 = vadd.f32 %v1044_v2, %v319_v50  ;;  %v368_v55 = vadd.f32 %v1044_v2, %v367_v51 }
  0xbf   :  { %657 = vst.msk [vmem:[%s1369_s3 + $0x130] sm:$0xff] %vm618_vm2, %v592_v52  ;;  %v497_v56 = vmax.f32 %v320_v54, 0.0  ;;  %v513_v57 = vmax.f32 %v368_v55, 0.0 }
  0xc0   :  { %673 = vst.msk [vmem:[%s1369_s3 + $0x1b0] sm:$0xff] %vm618_vm2, %v608_v53  ;;  %v415_v58 = vpop.f32.mrf.mxu2  ;;  %v463_v59 = vpop.f32.mrf.mxu3 }
  0xc1   :  { %v561_v60 = vmin.f32 %v497_v56, 20.0  ;;  %v577_v61 = vmin.f32 %v513_v57, 20.0  ;;  %v416_v62 = vadd.f32 %v1044_v2, %v415_v58  ;;  %v464_v63 = vadd.f32 %v1044_v2, %v463_v59 }
  0xc3   :  { %626 = vst.msk [vmem:[%s1369_s3 + $0x38] sm:$0xff] %vm618_vm2, %v561_v60  ;;  %v529_v0 = vmax.f32 %v416_v62, 0.0  ;;  %v545_v1 = vmax.f32 %v464_v63, 0.0 }
  0xc4   :  { %642 = vst.msk [vmem:[%s1369_s3 + $0xb8] sm:$0xff] %vm618_vm2, %v577_v61  ;;  %v322_v3 = vpop.f32.mrf.mxu0  ;;  %v370_v4 = vpop.f32.mrf.mxu1 }
  0xc5   :  { %v593_v5 = vmin.f32 %v529_v0, 20.0  ;;  %v609_v6 = vmin.f32 %v545_v1, 20.0  ;;  %v323_v7 = vadd.f32 %v1044_v2, %v322_v3  ;;  %v371_v8 = vadd.f32 %v1044_v2, %v370_v4 }
  0xc7   :  { %658 = vst.msk [vmem:[%s1369_s3 + $0x138] sm:$0xff] %vm618_vm2, %v593_v5  ;;  %v498_v9 = vmax.f32 %v323_v7, 0.0  ;;  %v514_v10 = vmax.f32 %v371_v8, 0.0 }
  0xc8   :  { %674 = vst.msk [vmem:[%s1369_s3 + $0x1b8] sm:$0xff] %vm618_vm2, %v609_v6  ;;  %v418_v11 = vpop.f32.mrf.mxu2  ;;  %v466_v12 = vpop.f32.mrf.mxu3 }
  0xc9   :  { %v562_v13 = vmin.f32 %v498_v9, 20.0  ;;  %v578_v14 = vmin.f32 %v514_v10, 20.0  ;;  %v419_v15 = vadd.f32 %v1044_v2, %v418_v11  ;;  %v467_v16 = vadd.f32 %v1044_v2, %v466_v12 }
  0xcb   :  { %627 = vst.msk [vmem:[%s1369_s3 + $0x40] sm:$0xff] %vm618_vm2, %v562_v13  ;;  %v530_v17 = vmax.f32 %v419_v15, 0.0  ;;  %v546_v18 = vmax.f32 %v467_v16, 0.0 }
  0xcc   :  { %643 = vst.msk [vmem:[%s1369_s3 + $0xc0] sm:$0xff] %vm618_vm2, %v578_v14  ;;  %v325_v19 = vpop.f32.mrf.mxu0  ;;  %v373_v20 = vpop.f32.mrf.mxu1 }
  0xcd   :  { %v594_v21 = vmin.f32 %v530_v17, 20.0  ;;  %v610_v22 = vmin.f32 %v546_v18, 20.0  ;;  %v326_v23 = vadd.f32 %v1044_v2, %v325_v19  ;;  %v374_v24 = vadd.f32 %v1044_v2, %v373_v20 }
  0xcf   :  { %659 = vst.msk [vmem:[%s1369_s3 + $0x140] sm:$0xff] %vm618_vm2, %v594_v21  ;;  %v499_v25 = vmax.f32 %v326_v23, 0.0  ;;  %v515_v26 = vmax.f32 %v374_v24, 0.0 }
  0xd0   :  { %675 = vst.msk [vmem:[%s1369_s3 + $0x1c0] sm:$0xff] %vm618_vm2, %v610_v22  ;;  %v421_v27 = vpop.f32.mrf.mxu2  ;;  %v469_v28 = vpop.f32.mrf.mxu3 }
  0xd1   :  { %v563_v29 = vmin.f32 %v499_v25, 20.0  ;;  %v579_v30 = vmin.f32 %v515_v26, 20.0  ;;  %v422_v31 = vadd.f32 %v1044_v2, %v421_v27  ;;  %v470_v32 = vadd.f32 %v1044_v2, %v469_v28 }
  0xd3   :  { %628 = vst.msk [vmem:[%s1369_s3 + $0x48] sm:$0xff] %vm618_vm2, %v563_v29  ;;  %v531_v33 = vmax.f32 %v422_v31, 0.0  ;;  %v547_v34 = vmax.f32 %v470_v32, 0.0 }
  0xd4   :  { %644 = vst.msk [vmem:[%s1369_s3 + $0xc8] sm:$0xff] %vm618_vm2, %v579_v30  ;;  %v328_v35 = vpop.f32.mrf.mxu0  ;;  %v376_v36 = vpop.f32.mrf.mxu1 }
  0xd5   :  { %v595_v37 = vmin.f32 %v531_v33, 20.0  ;;  %v611_v38 = vmin.f32 %v547_v34, 20.0  ;;  %v329_v39 = vadd.f32 %v1044_v2, %v328_v35  ;;  %v377_v40 = vadd.f32 %v1044_v2, %v376_v36 }
  0xd7   :  { %660 = vst.msk [vmem:[%s1369_s3 + $0x148] sm:$0xff] %vm618_vm2, %v595_v37  ;;  %v500_v41 = vmax.f32 %v329_v39, 0.0  ;;  %v516_v42 = vmax.f32 %v377_v40, 0.0 }
  0xd8   :  { %676 = vst.msk [vmem:[%s1369_s3 + $0x1c8] sm:$0xff] %vm618_vm2, %v611_v38  ;;  %v424_v43 = vpop.f32.mrf.mxu2  ;;  %v472_v44 = vpop.f32.mrf.mxu3 }
  0xd9   :  { %v564_v45 = vmin.f32 %v500_v41, 20.0  ;;  %v580_v46 = vmin.f32 %v516_v42, 20.0  ;;  %v425_v47 = vadd.f32 %v1044_v2, %v424_v43  ;;  %v473_v48 = vadd.f32 %v1044_v2, %v472_v44 }
  0xdb   :  { %629 = vst.msk [vmem:[%s1369_s3 + $0x50] sm:$0xff] %vm618_vm2, %v564_v45  ;;  %v532_v49 = vmax.f32 %v425_v47, 0.0  ;;  %v548_v50 = vmax.f32 %v473_v48, 0.0 }
  0xdc   :  { %645 = vst.msk [vmem:[%s1369_s3 + $0xd0] sm:$0xff] %vm618_vm2, %v580_v46  ;;  %v331_v51 = vpop.f32.mrf.mxu0  ;;  %v379_v52 = vpop.f32.mrf.mxu1 }
  0xdd   :  { %v596_v53 = vmin.f32 %v532_v49, 20.0  ;;  %v612_v54 = vmin.f32 %v548_v50, 20.0  ;;  %v332_v55 = vadd.f32 %v1044_v2, %v331_v51  ;;  %v380_v56 = vadd.f32 %v1044_v2, %v379_v52 }
  0xdf   :  { %661 = vst.msk [vmem:[%s1369_s3 + $0x150] sm:$0xff] %vm618_vm2, %v596_v53  ;;  %v501_v57 = vmax.f32 %v332_v55, 0.0  ;;  %v517_v58 = vmax.f32 %v380_v56, 0.0 }
  0xe0   :  { %677 = vst.msk [vmem:[%s1369_s3 + $0x1d0] sm:$0xff] %vm618_vm2, %v612_v54  ;;  %v427_v59 = vpop.f32.mrf.mxu2  ;;  %v475_v60 = vpop.f32.mrf.mxu3 }
  0xe1   :  { %v565_v61 = vmin.f32 %v501_v57, 20.0  ;;  %v581_v62 = vmin.f32 %v517_v58, 20.0  ;;  %v428_v63 = vadd.f32 %v1044_v2, %v427_v59  ;;  %v476_v0 = vadd.f32 %v1044_v2, %v475_v60 }
  0xe3   :  { %630 = vst.msk [vmem:[%s1369_s3 + $0x58] sm:$0xff] %vm618_vm2, %v565_v61  ;;  %v533_v1 = vmax.f32 %v428_v63, 0.0  ;;  %v549_v3 = vmax.f32 %v476_v0, 0.0 }
  0xe4   :  { %646 = vst.msk [vmem:[%s1369_s3 + $0xd8] sm:$0xff] %vm618_vm2, %v581_v62  ;;  %v334_v4 = vpop.f32.mrf.mxu0  ;;  %v382_v5 = vpop.f32.mrf.mxu1 }
  0xe5   :  { %v597_v6 = vmin.f32 %v533_v1, 20.0  ;;  %v613_v7 = vmin.f32 %v549_v3, 20.0  ;;  %v335_v8 = vadd.f32 %v1044_v2, %v334_v4  ;;  %v383_v9 = vadd.f32 %v1044_v2, %v382_v5 }
  0xe7   :  { %662 = vst.msk [vmem:[%s1369_s3 + $0x158] sm:$0xff] %vm618_vm2, %v597_v6  ;;  %v502_v10 = vmax.f32 %v335_v8, 0.0  ;;  %v518_v11 = vmax.f32 %v383_v9, 0.0 }
  0xe8   :  { %678 = vst.msk [vmem:[%s1369_s3 + $0x1d8] sm:$0xff] %vm618_vm2, %v613_v7  ;;  %v430_v12 = vpop.f32.mrf.mxu2  ;;  %v478_v13 = vpop.f32.mrf.mxu3 }
  0xe9   :  { %v566_v14 = vmin.f32 %v502_v10, 20.0  ;;  %v582_v15 = vmin.f32 %v518_v11, 20.0  ;;  %v431_v16 = vadd.f32 %v1044_v2, %v430_v12  ;;  %v479_v17 = vadd.f32 %v1044_v2, %v478_v13 }
  0xeb   :  { %631 = vst.msk [vmem:[%s1369_s3 + $0x60] sm:$0xff] %vm618_vm2, %v566_v14  ;;  %v534_v18 = vmax.f32 %v431_v16, 0.0  ;;  %v550_v19 = vmax.f32 %v479_v17, 0.0 }
  0xec   :  { %647 = vst.msk [vmem:[%s1369_s3 + $0xe0] sm:$0xff] %vm618_vm2, %v582_v15  ;;  %v337_v20 = vpop.f32.mrf.mxu0  ;;  %v385_v21 = vpop.f32.mrf.mxu1 }
  0xed   :  { %v598_v22 = vmin.f32 %v534_v18, 20.0  ;;  %v614_v23 = vmin.f32 %v550_v19, 20.0  ;;  %v338_v24 = vadd.f32 %v1044_v2, %v337_v20  ;;  %v386_v25 = vadd.f32 %v1044_v2, %v385_v21 }
  0xef   :  { %663 = vst.msk [vmem:[%s1369_s3 + $0x160] sm:$0xff] %vm618_vm2, %v598_v22  ;;  %v503_v26 = vmax.f32 %v338_v24, 0.0  ;;  %v519_v27 = vmax.f32 %v386_v25, 0.0 }
  0xf0   :  { %679 = vst.msk [vmem:[%s1369_s3 + $0x1e0] sm:$0xff] %vm618_vm2, %v614_v23  ;;  %v433_v28 = vpop.f32.mrf.mxu2  ;;  %v481_v29 = vpop.f32.mrf.mxu3 }
  0xf1   :  { %v567_v30 = vmin.f32 %v503_v26, 20.0  ;;  %v583_v31 = vmin.f32 %v519_v27, 20.0  ;;  %v434_v32 = vadd.f32 %v1044_v2, %v433_v28  ;;  %v482_v33 = vadd.f32 %v1044_v2, %v481_v29 }
  0xf3   :  { %632 = vst.msk [vmem:[%s1369_s3 + $0x68] sm:$0xff] %vm618_vm2, %v567_v30  ;;  %v535_v34 = vmax.f32 %v434_v32, 0.0  ;;  %v551_v35 = vmax.f32 %v482_v33, 0.0 }
  0xf4   :  { %648 = vst.msk [vmem:[%s1369_s3 + $0xe8] sm:$0xff] %vm618_vm2, %v583_v31  ;;  %v340_v36 = vpop.f32.mrf.mxu0  ;;  %v388_v37 = vpop.f32.mrf.mxu1 }
  0xf5   :  { %v599_v38 = vmin.f32 %v535_v34, 20.0  ;;  %v615_v39 = vmin.f32 %v551_v35, 20.0  ;;  %v341_v40 = vadd.f32 %v1044_v2, %v340_v36  ;;  %v389_v41 = vadd.f32 %v1044_v2, %v388_v37 }
  0xf7   :  { %664 = vst.msk [vmem:[%s1369_s3 + $0x168] sm:$0xff] %vm618_vm2, %v599_v38  ;;  %v504_v42 = vmax.f32 %v341_v40, 0.0  ;;  %v520_v43 = vmax.f32 %v389_v41, 0.0 }
  0xf8   :  { %680 = vst.msk [vmem:[%s1369_s3 + $0x1e8] sm:$0xff] %vm618_vm2, %v615_v39  ;;  %v436_v44 = vpop.f32.mrf.mxu2  ;;  %v484_v45 = vpop.f32.mrf.mxu3 }
  0xf9   :  { %v568_v46 = vmin.f32 %v504_v42, 20.0  ;;  %v584_v47 = vmin.f32 %v520_v43, 20.0  ;;  %v437_v48 = vadd.f32 %v1044_v2, %v436_v44  ;;  %v485_v49 = vadd.f32 %v1044_v2, %v484_v45 }
  0xfb   :  { %633 = vst.msk [vmem:[%s1369_s3 + $0x70] sm:$0xff] %vm618_vm2, %v568_v46  ;;  %v536_v50 = vmax.f32 %v437_v48, 0.0  ;;  %v552_v51 = vmax.f32 %v485_v49, 0.0 }
  0xfc   :  { %649 = vst.msk [vmem:[%s1369_s3 + $0xf0] sm:$0xff] %vm618_vm2, %v584_v47  ;;  %v343_v52 = vpop.f32.mrf.mxu0  ;;  %v391_v53 = vpop.f32.mrf.mxu1 }
  0xfd   :  { %v600_v54 = vmin.f32 %v536_v50, 20.0  ;;  %v616_v55 = vmin.f32 %v552_v51, 20.0  ;;  %v344_v56 = vadd.f32 %v1044_v2, %v343_v52  ;;  %v392_v57 = vadd.f32 %v1044_v2, %v391_v53 }
  0xff   :  { %665 = vst.msk [vmem:[%s1369_s3 + $0x170] sm:$0xff] %vm618_vm2, %v600_v54  ;;  %v505_v58 = vmax.f32 %v344_v56, 0.0  ;;  %v521_v59 = vmax.f32 %v392_v57, 0.0 }
 0x100   :  { %681 = vst.msk [vmem:[%s1369_s3 + $0x1f0] sm:$0xff] %vm618_vm2, %v616_v55  ;;  %v439_v60 = vpop.f32.mrf.mxu2  ;;  %v487_v61 = vpop.f32.mrf.mxu3 }
 0x101   :  { %v569_v62 = vmin.f32 %v505_v58, 20.0  ;;  %v585_v63 = vmin.f32 %v521_v59, 20.0  ;;  %v440_v0 = vadd.f32 %v1044_v2, %v439_v60  ;;  %v488_v1 = vadd.f32 %v1044_v2, %v487_v61 }
 0x103   :  { %634 = vst.msk [vmem:[%s1369_s3 + $0x78] sm:$0xff] %vm618_vm2, %v569_v62  ;;  %v537_v3 = vmax.f32 %v440_v0, 0.0  ;;  %v553_v4 = vmax.f32 %v488_v1, 0.0 }
 0x104   :  { %650 = vst.msk [vmem:[%s1369_s3 + $0xf8] sm:$0xff] %vm618_vm2, %v585_v63 }
 0x105   :  { %v601_v5 = vmin.f32 %v537_v3, 20.0  ;;  %v617_v6 = vmin.f32 %v553_v4, 20.0 }
 0x107   :  { %666 = vst.msk [vmem:[%s1369_s3 + $0x178] sm:$0xff] %vm618_vm2, %v601_v5 }
 0x108   :  { %682 = vst.msk [vmem:[%s1369_s3 + $0x1f8] sm:$0xff] %vm618_vm2, %v617_v6 }

// kernel: _speech_transformer_forward.8
= control target key start
LH: loop header
LB: loop body
LE: loop exit
PB: predicated region body
PF: predicated region fallthrough
CT: control target
= control target key end

     0   :  { %vm91_vm0 = vcmask 588800   ;;  %vm621_vm1 = vcmask 64512   ;;  %s1410_s1 = inlined_call_operand.vmem [shape: f32[72,8], index: 1, kind: input, shape index: {}]   ;;  %s1411_s0 = inlined_call_operand.vmem [shape: f32[512,72], index: 0, kind: input, shape index: {}]   ;;  %s1412_s2 = inlined_call_operand.vmem [shape: f32[1,8], index: 2, kind: input, shape index: {}]   ;;  %s1413_s3 = inlined_call_operand.vmem [shape: f32[512,8], index: 3, kind: output, shape index: {}]  }
   0x1   :  { %v86_v0 = vld [vmem:[%s1410_s1 + $0x40] sm:$0xff]  ;;  %v85_v1 = vld [vmem:[%s1410_s1 + $0x38] sm:$0xff]  ;;  %v84_v2 = vld [vmem:[%s1410_s1 + $0x30] sm:$0xff] }
   0x2   :  { %755 = vmatpush.msra.mxu2 %v86_v0  ;;  %756 = vmatpush.msra.mxu3 %v86_v0  ;;  %v83_v3 = vld [vmem:[%s1410_s1 + $0x28] sm:$0xff]  ;;  %v82_v4 = vld [vmem:[%s1410_s1 + $0x20] sm:$0xff]  ;;  %v81_v5 = vld [vmem:[%s1410_s1 + $0x18] sm:$0xff] }
   0x3   :  { %291 = vmatpush.msra.mxu0 %v86_v0  ;;  %754 = vmatpush.msra.mxu1 %v86_v0  ;;  %v80_v6 = vld [vmem:[%s1410_s1 + $0x10] sm:$0xff]  ;;  %v79_v7 = vld [vmem:[%s1410_s1 + $0x8] sm:$0xff]  ;;  %v78_v8 = vld [vmem:[%s1410_s1] sm:$0xff] }
   0x4   :  { %758 = vmatpush.msra.mxu2 %v85_v1  ;;  %759 = vmatpush.msra.mxu3 %v85_v1  ;;  %v46_v9 = vld [vmem:[%s1411_s0 + $0x100] sm:$0xff]  ;;  %v47_v13 = vld [vmem:[%s1411_s0 + $0x108] sm:$0xff]  ;;  %v48_v17 = vld [vmem:[%s1411_s0 + $0x110] sm:$0xff] }
   0x5   :  { %292 = vmatpush.msra.mxu0 %v85_v1  ;;  %757 = vmatpush.msra.mxu1 %v85_v1  ;;  %v62_v10 = vld [vmem:[%s1411_s0 + $0x180] sm:$0xff]  ;;  %v63_v14 = vld [vmem:[%s1411_s0 + $0x188] sm:$0xff]  ;;  %v64_v18 = vld [vmem:[%s1411_s0 + $0x190] sm:$0xff] }
   0x6   :  { %761 = vmatpush.msra.mxu2 %v84_v2  ;;  %762 = vmatpush.msra.mxu3 %v84_v2  ;;  %v14_v11 = vld [vmem:[%s1411_s0] sm:$0xff]  ;;  %v15_v15 = vld [vmem:[%s1411_s0 + $0x8] sm:$0xff]  ;;  %v16_v19 = vld [vmem:[%s1411_s0 + $0x10] sm:$0xff] }
   0x7   :  { %293 = vmatpush.msra.mxu0 %v84_v2  ;;  %760 = vmatpush.msra.mxu1 %v84_v2  ;;  %v30_v12 = vld [vmem:[%s1411_s0 + $0x80] sm:$0xff]  ;;  %v31_v16 = vld [vmem:[%s1411_s0 + $0x88] sm:$0xff]  ;;  %v32_v20 = vld [vmem:[%s1411_s0 + $0x90] sm:$0xff] }
   0x8   :  { %764 = vmatpush.msra.mxu2 %v83_v3  ;;  %765 = vmatpush.msra.mxu3 %v83_v3  ;;  %v49_v21 = vld [vmem:[%s1411_s0 + $0x118] sm:$0xff]  ;;  %v50_v25 = vld [vmem:[%s1411_s0 + $0x120] sm:$0xff]  ;;  %v51_v29 = vld [vmem:[%s1411_s0 + $0x128] sm:$0xff] }
   0x9   :  { %294 = vmatpush.msra.mxu0 %v83_v3  ;;  %763 = vmatpush.msra.mxu1 %v83_v3  ;;  %v65_v22 = vld [vmem:[%s1411_s0 + $0x198] sm:$0xff]  ;;  %v66_v26 = vld [vmem:[%s1411_s0 + $0x1a0] sm:$0xff]  ;;  %v67_v30 = vld [vmem:[%s1411_s0 + $0x1a8] sm:$0xff] }
   0xa   :  { %767 = vmatpush.msra.mxu2 %v82_v4  ;;  %768 = vmatpush.msra.mxu3 %v82_v4  ;;  %v17_v23 = vld [vmem:[%s1411_s0 + $0x18] sm:$0xff]  ;;  %v18_v27 = vld [vmem:[%s1411_s0 + $0x20] sm:$0xff]  ;;  %v19_v31 = vld [vmem:[%s1411_s0 + $0x28] sm:$0xff] }
   0xb   :  { %295 = vmatpush.msra.mxu0 %v82_v4  ;;  %766 = vmatpush.msra.mxu1 %v82_v4  ;;  %v33_v24 = vld [vmem:[%s1411_s0 + $0x98] sm:$0xff]  ;;  %v34_v28 = vld [vmem:[%s1411_s0 + $0xa0] sm:$0xff]  ;;  %v35_v32 = vld [vmem:[%s1411_s0 + $0xa8] sm:$0xff] }
   0xc   :  { %770 = vmatpush.msra.mxu2 %v81_v5  ;;  %771 = vmatpush.msra.mxu3 %v81_v5  ;;  %v52_v33 = vld [vmem:[%s1411_s0 + $0x130] sm:$0xff]  ;;  %v53_v37 = vld [vmem:[%s1411_s0 + $0x138] sm:$0xff]  ;;  %v54_v41 = vld [vmem:[%s1411_s0 + $0x140] sm:$0xff] }
   0xd   :  { %296 = vmatpush.msra.mxu0 %v81_v5  ;;  %769 = vmatpush.msra.mxu1 %v81_v5  ;;  %v68_v34 = vld [vmem:[%s1411_s0 + $0x1b0] sm:$0xff]  ;;  %v69_v38 = vld [vmem:[%s1411_s0 + $0x1b8] sm:$0xff]  ;;  %v70_v42 = vld [vmem:[%s1411_s0 + $0x1c0] sm:$0xff] }
   0xe   :  { %773 = vmatpush.msra.mxu2 %v80_v6  ;;  %774 = vmatpush.msra.mxu3 %v80_v6  ;;  %v20_v35 = vld [vmem:[%s1411_s0 + $0x30] sm:$0xff]  ;;  %v21_v39 = vld [vmem:[%s1411_s0 + $0x38] sm:$0xff]  ;;  %v22_v43 = vld [vmem:[%s1411_s0 + $0x40] sm:$0xff] }
   0xf   :  { %297 = vmatpush.msra.mxu0 %v80_v6  ;;  %772 = vmatpush.msra.mxu1 %v80_v6  ;;  %v36_v36 = vld [vmem:[%s1411_s0 + $0xb0] sm:$0xff]  ;;  %v37_v40 = vld [vmem:[%s1411_s0 + $0xb8] sm:$0xff]  ;;  %v38_v44 = vld [vmem:[%s1411_s0 + $0xc0] sm:$0xff] }
  0x10   :  { %776 = vmatpush.msra.mxu2 %v79_v7  ;;  %777 = vmatpush.msra.mxu3 %v79_v7  ;;  %v55_v45 = vld [vmem:[%s1411_s0 + $0x148] sm:$0xff]  ;;  %v56_v49 = vld [vmem:[%s1411_s0 + $0x150] sm:$0xff]  ;;  %v57_v53 = vld [vmem:[%s1411_s0 + $0x158] sm:$0xff] }
  0x11   :  { %298 = vmatpush.msra.mxu0 %v79_v7  ;;  %775 = vmatpush.msra.mxu1 %v79_v7  ;;  %v71_v46 = vld [vmem:[%s1411_s0 + $0x1c8] sm:$0xff]  ;;  %v72_v50 = vld [vmem:[%s1411_s0 + $0x1d0] sm:$0xff]  ;;  %v73_v54 = vld [vmem:[%s1411_s0 + $0x1d8] sm:$0xff] }
  0x12   :  { %779 = vmatpush.msra.mxu2 %v78_v8  ;;  %780 = vmatpush.msra.mxu3 %v78_v8  ;;  %v23_v47 = vld [vmem:[%s1411_s0 + $0x48] sm:$0xff]  ;;  %v24_v51 = vld [vmem:[%s1411_s0 + $0x50] sm:$0xff]  ;;  %v25_v55 = vld [vmem:[%s1411_s0 + $0x58] sm:$0xff] }
  0x13   :  { %722 = vmatmul.msk.f32.vlgmr.msra.gmra.mxu2 %vm91_vm0, %v46_v9  ;;  %738 = vmatmul.msk.f32.vlgmr.msra.gmra.mxu3 %vm91_vm0, %v62_v10  ;;  %v39_v48 = vld [vmem:[%s1411_s0 + $0xc8] sm:$0xff]  ;;  %v40_v52 = vld [vmem:[%s1411_s0 + $0xd0] sm:$0xff]  ;;  %v41_v56 = vld [vmem:[%s1411_s0 + $0xd8] sm:$0xff] }
  0x14   :  { %299 = vmatpush.msra.mxu0 %v78_v8  ;;  %778 = vmatpush.msra.mxu1 %v78_v8  ;;  %v58_v57 = vld [vmem:[%s1411_s0 + $0x160] sm:$0xff]  ;;  %v59_v61 = vld [vmem:[%s1411_s0 + $0x168] sm:$0xff]  ;;  %v60_v1 = vld [vmem:[%s1411_s0 + $0x170] sm:$0xff] }
  0x15   :  { %690 = vmatmul.msk.f32.vlgmr.msra.gmra.mxu0 %vm91_vm0, %v14_v11  ;;  %706 = vmatmul.msk.f32.vlgmr.msra.gmra.mxu1 %vm91_vm0, %v30_v12  ;;  %v74_v58 = vld [vmem:[%s1411_s0 + $0x1e0] sm:$0xff]  ;;  %v75_v62 = vld [vmem:[%s1411_s0 + $0x1e8] sm:$0xff]  ;;  %v76_v2 = vld [vmem:[%s1411_s0 + $0x1f0] sm:$0xff] }
  0x16   :  { %v26_v59 = vld [vmem:[%s1411_s0 + $0x60] sm:$0xff]  ;;  %v27_v63 = vld [vmem:[%s1411_s0 + $0x68] sm:$0xff]  ;;  %v28_v3 = vld [vmem:[%s1411_s0 + $0x70] sm:$0xff] }
  0x17   :  { %v42_v60 = vld [vmem:[%s1411_s0 + $0xe0] sm:$0xff]  ;;  %v43_v0 = vld [vmem:[%s1411_s0 + $0xe8] sm:$0xff]  ;;  %v44_v4 = vld [vmem:[%s1411_s0 + $0xf0] sm:$0xff] }
  0x18   :  { %v61_v5 = vld [vmem:[%s1411_s0 + $0x178] sm:$0xff]  ;;  %v1088_v9 = vld [vmem:[%s1412_s2] ss:$0 sm:$0xff] }
  0x19   :  { %v77_v6 = vld [vmem:[%s1411_s0 + $0x1f8] sm:$0xff] }
  0x1a   :  { %v29_v7 = vld [vmem:[%s1411_s0 + $0x78] sm:$0xff] }
  0x1b   :  { %723 = vmatmul.msk.f32.gmra.mxu2 %vm91_vm0, %v47_v13  ;;  %739 = vmatmul.msk.f32.gmra.mxu3 %vm91_vm0, %v63_v14  ;;  %v45_v8 = vld [vmem:[%s1411_s0 + $0xf8] sm:$0xff] }
  0x1d   :  { %691 = vmatmul.msk.f32.gmra.mxu0 %vm91_vm0, %v15_v15  ;;  %707 = vmatmul.msk.f32.gmra.mxu1 %vm91_vm0, %v31_v16 }
  0x23   :  { %724 = vmatmul.msk.f32.gmra.mxu2 %vm91_vm0, %v48_v17  ;;  %740 = vmatmul.msk.f32.gmra.mxu3 %vm91_vm0, %v64_v18 }
  0x25   :  { %692 = vmatmul.msk.f32.gmra.mxu0 %vm91_vm0, %v16_v19  ;;  %708 = vmatmul.msk.f32.gmra.mxu1 %vm91_vm0, %v32_v20 }
  0x2b   :  { %725 = vmatmul.msk.f32.gmra.mxu2 %vm91_vm0, %v49_v21  ;;  %741 = vmatmul.msk.f32.gmra.mxu3 %vm91_vm0, %v65_v22 }
  0x2d   :  { %693 = vmatmul.msk.f32.gmra.mxu0 %vm91_vm0, %v17_v23  ;;  %709 = vmatmul.msk.f32.gmra.mxu1 %vm91_vm0, %v33_v24 }
  0x33   :  { %726 = vmatmul.msk.f32.gmra.mxu2 %vm91_vm0, %v50_v25  ;;  %742 = vmatmul.msk.f32.gmra.mxu3 %vm91_vm0, %v66_v26 }
  0x35   :  { %694 = vmatmul.msk.f32.gmra.mxu0 %vm91_vm0, %v18_v27  ;;  %710 = vmatmul.msk.f32.gmra.mxu1 %vm91_vm0, %v34_v28 }
  0x3b   :  { %727 = vmatmul.msk.f32.gmra.mxu2 %vm91_vm0, %v51_v29  ;;  %743 = vmatmul.msk.f32.gmra.mxu3 %vm91_vm0, %v67_v30 }
  0x3d   :  { %695 = vmatmul.msk.f32.gmra.mxu0 %vm91_vm0, %v19_v31  ;;  %711 = vmatmul.msk.f32.gmra.mxu1 %vm91_vm0, %v35_v32 }
  0x43   :  { %728 = vmatmul.msk.f32.gmra.mxu2 %vm91_vm0, %v52_v33  ;;  %744 = vmatmul.msk.f32.gmra.mxu3 %vm91_vm0, %v68_v34 }
  0x45   :  { %696 = vmatmul.msk.f32.gmra.mxu0 %vm91_vm0, %v20_v35  ;;  %712 = vmatmul.msk.f32.gmra.mxu1 %vm91_vm0, %v36_v36 }
  0x4b   :  { %729 = vmatmul.msk.f32.gmra.mxu2 %vm91_vm0, %v53_v37  ;;  %745 = vmatmul.msk.f32.gmra.mxu3 %vm91_vm0, %v69_v38 }
  0x4d   :  { %697 = vmatmul.msk.f32.gmra.mxu0 %vm91_vm0, %v21_v39  ;;  %713 = vmatmul.msk.f32.gmra.mxu1 %vm91_vm0, %v37_v40 }
  0x53   :  { %730 = vmatmul.msk.f32.gmra.mxu2 %vm91_vm0, %v54_v41  ;;  %746 = vmatmul.msk.f32.gmra.mxu3 %vm91_vm0, %v70_v42 }
  0x55   :  { %698 = vmatmul.msk.f32.gmra.mxu0 %vm91_vm0, %v22_v43  ;;  %714 = vmatmul.msk.f32.gmra.mxu1 %vm91_vm0, %v38_v44 }
  0x5b   :  { %731 = vmatmul.msk.f32.gmra.mxu2 %vm91_vm0, %v55_v45  ;;  %747 = vmatmul.msk.f32.gmra.mxu3 %vm91_vm0, %v71_v46 }
  0x5d   :  { %699 = vmatmul.msk.f32.gmra.mxu0 %vm91_vm0, %v23_v47  ;;  %715 = vmatmul.msk.f32.gmra.mxu1 %vm91_vm0, %v39_v48 }
  0x63   :  { %732 = vmatmul.msk.f32.gmra.mxu2 %vm91_vm0, %v56_v49  ;;  %748 = vmatmul.msk.f32.gmra.mxu3 %vm91_vm0, %v72_v50 }
  0x65   :  { %700 = vmatmul.msk.f32.gmra.mxu0 %vm91_vm0, %v24_v51  ;;  %716 = vmatmul.msk.f32.gmra.mxu1 %vm91_vm0, %v40_v52 }
  0x6b   :  { %733 = vmatmul.msk.f32.gmra.mxu2 %vm91_vm0, %v57_v53  ;;  %749 = vmatmul.msk.f32.gmra.mxu3 %vm91_vm0, %v73_v54 }
  0x6d   :  { %701 = vmatmul.msk.f32.gmra.mxu0 %vm91_vm0, %v25_v55  ;;  %717 = vmatmul.msk.f32.gmra.mxu1 %vm91_vm0, %v41_v56 }
  0x73   :  { %734 = vmatmul.msk.f32.gmra.mxu2 %vm91_vm0, %v58_v57  ;;  %750 = vmatmul.msk.f32.gmra.mxu3 %vm91_vm0, %v74_v58 }
  0x75   :  { %702 = vmatmul.msk.f32.gmra.mxu0 %vm91_vm0, %v26_v59  ;;  %718 = vmatmul.msk.f32.gmra.mxu1 %vm91_vm0, %v42_v60 }
  0x7b   :  { %735 = vmatmul.msk.f32.gmra.mxu2 %vm91_vm0, %v59_v61  ;;  %751 = vmatmul.msk.f32.gmra.mxu3 %vm91_vm0, %v75_v62 }
  0x7d   :  { %703 = vmatmul.msk.f32.gmra.mxu0 %vm91_vm0, %v27_v63  ;;  %719 = vmatmul.msk.f32.gmra.mxu1 %vm91_vm0, %v43_v0 }
  0x83   :  { %736 = vmatmul.msk.f32.gmra.mxu2 %vm91_vm0, %v60_v1  ;;  %752 = vmatmul.msk.f32.gmra.mxu3 %vm91_vm0, %v76_v2 }
  0x85   :  { %704 = vmatmul.msk.f32.gmra.mxu0 %vm91_vm0, %v28_v3  ;;  %720 = vmatmul.msk.f32.gmra.mxu1 %vm91_vm0, %v44_v4 }
  0x8b   :  { %737 = vmatmul.msk.f32.gmra.mxu2 %vm91_vm0, %v61_v5  ;;  %753 = vmatmul.msk.f32.gmra.mxu3 %vm91_vm0, %v77_v6 }
  0x8d   :  { %705 = vmatmul.msk.f32.gmra.mxu0 %vm91_vm0, %v29_v7  ;;  %721 = vmatmul.msk.f32.gmra.mxu1 %vm91_vm0, %v45_v8 }
  0x92   :  { %v301_v10 = vpop.f32.mrf.mxu0  ;;  %v349_v11 = vpop.f32.mrf.mxu1 }
  0x93   :  { %v302_v12 = vadd.f32 %v1088_v9, %v301_v10  ;;  %v350_v13 = vadd.f32 %v1088_v9, %v349_v11 }
  0x95   :  { %v493_v14 = vmax.f32 %v302_v12, 0.0  ;;  %v509_v15 = vmax.f32 %v350_v13, 0.0 }
  0x96   :  { %v397_v16 = vpop.f32.mrf.mxu2  ;;  %v445_v17 = vpop.f32.mrf.mxu3 }
  0x97   :  { %v557_v18 = vmin.f32 %v493_v14, 20.0  ;;  %v573_v19 = vmin.f32 %v509_v15, 20.0  ;;  %v398_v20 = vadd.f32 %v1088_v9, %v397_v16  ;;  %v446_v21 = vadd.f32 %v1088_v9, %v445_v17 }
  0x99   :  { %622 = vst.msk [vmem:[%s1413_s3] sm:$0xff] %vm621_vm1, %v557_v18  ;;  %v525_v22 = vmax.f32 %v398_v20, 0.0  ;;  %v541_v23 = vmax.f32 %v446_v21, 0.0 }
  0x9a   :  { %638 = vst.msk [vmem:[%s1413_s3 + $0x80] sm:$0xff] %vm621_vm1, %v573_v19  ;;  %v304_v24 = vpop.f32.mrf.mxu0  ;;  %v352_v25 = vpop.f32.mrf.mxu1 }
  0x9b   :  { %v589_v26 = vmin.f32 %v525_v22, 20.0  ;;  %v605_v27 = vmin.f32 %v541_v23, 20.0  ;;  %v305_v28 = vadd.f32 %v1088_v9, %v304_v24  ;;  %v353_v29 = vadd.f32 %v1088_v9, %v352_v25 }
  0x9d   :  { %654 = vst.msk [vmem:[%s1413_s3 + $0x100] sm:$0xff] %vm621_vm1, %v589_v26  ;;  %v494_v30 = vmax.f32 %v305_v28, 0.0  ;;  %v510_v31 = vmax.f32 %v353_v29, 0.0 }
  0x9e   :  { %670 = vst.msk [vmem:[%s1413_s3 + $0x180] sm:$0xff] %vm621_vm1, %v605_v27  ;;  %v400_v32 = vpop.f32.mrf.mxu2  ;;  %v448_v33 = vpop.f32.mrf.mxu3 }
  0x9f   :  { %v558_v34 = vmin.f32 %v494_v30, 20.0  ;;  %v574_v35 = vmin.f32 %v510_v31, 20.0  ;;  %v401_v36 = vadd.f32 %v1088_v9, %v400_v32  ;;  %v449_v37 = vadd.f32 %v1088_v9, %v448_v33 }
  0xa1   :  { %623 = vst.msk [vmem:[%s1413_s3 + $0x8] sm:$0xff] %vm621_vm1, %v558_v34  ;;  %v526_v38 = vmax.f32 %v401_v36, 0.0  ;;  %v542_v39 = vmax.f32 %v449_v37, 0.0 }
  0xa2   :  { %639 = vst.msk [vmem:[%s1413_s3 + $0x88] sm:$0xff] %vm621_vm1, %v574_v35  ;;  %v307_v40 = vpop.f32.mrf.mxu0  ;;  %v355_v41 = vpop.f32.mrf.mxu1 }
  0xa3   :  { %v590_v42 = vmin.f32 %v526_v38, 20.0  ;;  %v606_v43 = vmin.f32 %v542_v39, 20.0  ;;  %v308_v44 = vadd.f32 %v1088_v9, %v307_v40  ;;  %v356_v45 = vadd.f32 %v1088_v9, %v355_v41 }
  0xa5   :  { %655 = vst.msk [vmem:[%s1413_s3 + $0x108] sm:$0xff] %vm621_vm1, %v590_v42  ;;  %v495_v46 = vmax.f32 %v308_v44, 0.0  ;;  %v511_v47 = vmax.f32 %v356_v45, 0.0 }
  0xa6   :  { %671 = vst.msk [vmem:[%s1413_s3 + $0x188] sm:$0xff] %vm621_vm1, %v606_v43  ;;  %v403_v48 = vpop.f32.mrf.mxu2  ;;  %v451_v49 = vpop.f32.mrf.mxu3 }
  0xa7   :  { %v559_v50 = vmin.f32 %v495_v46, 20.0  ;;  %v575_v51 = vmin.f32 %v511_v47, 20.0  ;;  %v404_v52 = vadd.f32 %v1088_v9, %v403_v48  ;;  %v452_v53 = vadd.f32 %v1088_v9, %v451_v49 }
  0xa9   :  { %624 = vst.msk [vmem:[%s1413_s3 + $0x10] sm:$0xff] %vm621_vm1, %v559_v50  ;;  %v527_v54 = vmax.f32 %v404_v52, 0.0  ;;  %v543_v55 = vmax.f32 %v452_v53, 0.0 }
  0xaa   :  { %640 = vst.msk [vmem:[%s1413_s3 + $0x90] sm:$0xff] %vm621_vm1, %v575_v51  ;;  %v310_v56 = vpop.f32.mrf.mxu0  ;;  %v358_v57 = vpop.f32.mrf.mxu1 }
  0xab   :  { %v591_v58 = vmin.f32 %v527_v54, 20.0  ;;  %v607_v59 = vmin.f32 %v543_v55, 20.0  ;;  %v311_v60 = vadd.f32 %v1088_v9, %v310_v56  ;;  %v359_v61 = vadd.f32 %v1088_v9, %v358_v57 }
  0xad   :  { %656 = vst.msk [vmem:[%s1413_s3 + $0x110] sm:$0xff] %vm621_vm1, %v591_v58  ;;  %v496_v62 = vmax.f32 %v311_v60, 0.0  ;;  %v512_v63 = vmax.f32 %v359_v61, 0.0 }
  0xae   :  { %672 = vst.msk [vmem:[%s1413_s3 + $0x190] sm:$0xff] %vm621_vm1, %v607_v59  ;;  %v406_v0 = vpop.f32.mrf.mxu2  ;;  %v454_v1 = vpop.f32.mrf.mxu3 }
  0xaf   :  { %v560_v2 = vmin.f32 %v496_v62, 20.0  ;;  %v576_v3 = vmin.f32 %v512_v63, 20.0  ;;  %v407_v4 = vadd.f32 %v1088_v9, %v406_v0  ;;  %v455_v5 = vadd.f32 %v1088_v9, %v454_v1 }
  0xb1   :  { %625 = vst.msk [vmem:[%s1413_s3 + $0x18] sm:$0xff] %vm621_vm1, %v560_v2  ;;  %v528_v6 = vmax.f32 %v407_v4, 0.0  ;;  %v544_v7 = vmax.f32 %v455_v5, 0.0 }
  0xb2   :  { %641 = vst.msk [vmem:[%s1413_s3 + $0x98] sm:$0xff] %vm621_vm1, %v576_v3  ;;  %v313_v8 = vpop.f32.mrf.mxu0  ;;  %v361_v10 = vpop.f32.mrf.mxu1 }
  0xb3   :  { %v592_v11 = vmin.f32 %v528_v6, 20.0  ;;  %v608_v12 = vmin.f32 %v544_v7, 20.0  ;;  %v314_v13 = vadd.f32 %v1088_v9, %v313_v8  ;;  %v362_v14 = vadd.f32 %v1088_v9, %v361_v10 }
  0xb5   :  { %657 = vst.msk [vmem:[%s1413_s3 + $0x118] sm:$0xff] %vm621_vm1, %v592_v11  ;;  %v497_v15 = vmax.f32 %v314_v13, 0.0  ;;  %v513_v16 = vmax.f32 %v362_v14, 0.0 }
  0xb6   :  { %673 = vst.msk [vmem:[%s1413_s3 + $0x198] sm:$0xff] %vm621_vm1, %v608_v12  ;;  %v409_v17 = vpop.f32.mrf.mxu2  ;;  %v457_v18 = vpop.f32.mrf.mxu3 }
  0xb7   :  { %v561_v19 = vmin.f32 %v497_v15, 20.0  ;;  %v577_v20 = vmin.f32 %v513_v16, 20.0  ;;  %v410_v21 = vadd.f32 %v1088_v9, %v409_v17  ;;  %v458_v22 = vadd.f32 %v1088_v9, %v457_v18 }
  0xb9   :  { %626 = vst.msk [vmem:[%s1413_s3 + $0x20] sm:$0xff] %vm621_vm1, %v561_v19  ;;  %v529_v23 = vmax.f32 %v410_v21, 0.0  ;;  %v545_v24 = vmax.f32 %v458_v22, 0.0 }
  0xba   :  { %642 = vst.msk [vmem:[%s1413_s3 + $0xa0] sm:$0xff] %vm621_vm1, %v577_v20  ;;  %v316_v25 = vpop.f32.mrf.mxu0  ;;  %v364_v26 = vpop.f32.mrf.mxu1 }
  0xbb   :  { %v593_v27 = vmin.f32 %v529_v23, 20.0  ;;  %v609_v28 = vmin.f32 %v545_v24, 20.0  ;;  %v317_v29 = vadd.f32 %v1088_v9, %v316_v25  ;;  %v365_v30 = vadd.f32 %v1088_v9, %v364_v26 }
  0xbd   :  { %658 = vst.msk [vmem:[%s1413_s3 + $0x120] sm:$0xff] %vm621_vm1, %v593_v27  ;;  %v498_v31 = vmax.f32 %v317_v29, 0.0  ;;  %v514_v32 = vmax.f32 %v365_v30, 0.0 }
  0xbe   :  { %674 = vst.msk [vmem:[%s1413_s3 + $0x1a0] sm:$0xff] %vm621_vm1, %v609_v28  ;;  %v412_v33 = vpop.f32.mrf.mxu2  ;;  %v460_v34 = vpop.f32.mrf.mxu3 }
  0xbf   :  { %v562_v35 = vmin.f32 %v498_v31, 20.0  ;;  %v578_v36 = vmin.f32 %v514_v32, 20.0  ;;  %v413_v37 = vadd.f32 %v1088_v9, %v412_v33  ;;  %v461_v38 = vadd.f32 %v1088_v9, %v460_v34 }
  0xc1   :  { %627 = vst.msk [vmem:[%s1413_s3 + $0x28] sm:$0xff] %vm621_vm1, %v562_v35  ;;  %v530_v39 = vmax.f32 %v413_v37, 0.0  ;;  %v546_v40 = vmax.f32 %v461_v38, 0.0 }
  0xc2   :  { %643 = vst.msk [vmem:[%s1413_s3 + $0xa8] sm:$0xff] %vm621_vm1, %v578_v36  ;;  %v319_v41 = vpop.f32.mrf.mxu0  ;;  %v367_v42 = vpop.f32.mrf.mxu1 }
  0xc3   :  { %v594_v43 = vmin.f32 %v530_v39, 20.0  ;;  %v610_v44 = vmin.f32 %v546_v40, 20.0  ;;  %v320_v45 = vadd.f32 %v1088_v9, %v319_v41  ;;  %v368_v46 = vadd.f32 %v1088_v9, %v367_v42 }
  0xc5   :  { %659 = vst.msk [vmem:[%s1413_s3 + $0x128] sm:$0xff] %vm621_vm1, %v594_v43  ;;  %v499_v47 = vmax.f32 %v320_v45, 0.0  ;;  %v515_v48 = vmax.f32 %v368_v46, 0.0 }
  0xc6   :  { %675 = vst.msk [vmem:[%s1413_s3 + $0x1a8] sm:$0xff] %vm621_vm1, %v610_v44  ;;  %v415_v49 = vpop.f32.mrf.mxu2  ;;  %v463_v50 = vpop.f32.mrf.mxu3 }
  0xc7   :  { %v563_v51 = vmin.f32 %v499_v47, 20.0  ;;  %v579_v52 = vmin.f32 %v515_v48, 20.0  ;;  %v416_v53 = vadd.f32 %v1088_v9, %v415_v49  ;;  %v464_v54 = vadd.f32 %v1088_v9, %v463_v50 }
  0xc9   :  { %628 = vst.msk [vmem:[%s1413_s3 + $0x30] sm:$0xff] %vm621_vm1, %v563_v51  ;;  %v531_v55 = vmax.f32 %v416_v53, 0.0  ;;  %v547_v56 = vmax.f32 %v464_v54, 0.0 }
  0xca   :  { %644 = vst.msk [vmem:[%s1413_s3 + $0xb0] sm:$0xff] %vm621_vm1, %v579_v52  ;;  %v322_v57 = vpop.f32.mrf.mxu0  ;;  %v370_v58 = vpop.f32.mrf.mxu1 }
  0xcb   :  { %v595_v59 = vmin.f32 %v531_v55, 20.0  ;;  %v611_v60 = vmin.f32 %v547_v56, 20.0  ;;  %v323_v61 = vadd.f32 %v1088_v9, %v322_v57  ;;  %v371_v62 = vadd.f32 %v1088_v9, %v370_v58 }
  0xcd   :  { %660 = vst.msk [vmem:[%s1413_s3 + $0x130] sm:$0xff] %vm621_vm1, %v595_v59  ;;  %v500_v63 = vmax.f32 %v323_v61, 0.0  ;;  %v516_v0 = vmax.f32 %v371_v62, 0.0 }
  0xce   :  { %676 = vst.msk [vmem:[%s1413_s3 + $0x1b0] sm:$0xff] %vm621_vm1, %v611_v60  ;;  %v418_v1 = vpop.f32.mrf.mxu2  ;;  %v466_v2 = vpop.f32.mrf.mxu3 }
  0xcf   :  { %v564_v3 = vmin.f32 %v500_v63, 20.0  ;;  %v580_v4 = vmin.f32 %v516_v0, 20.0  ;;  %v419_v5 = vadd.f32 %v1088_v9, %v418_v1  ;;  %v467_v6 = vadd.f32 %v1088_v9, %v466_v2 }
  0xd1   :  { %629 = vst.msk [vmem:[%s1413_s3 + $0x38] sm:$0xff] %vm621_vm1, %v564_v3  ;;  %v532_v7 = vmax.f32 %v419_v5, 0.0  ;;  %v548_v8 = vmax.f32 %v467_v6, 0.0 }
  0xd2   :  { %645 = vst.msk [vmem:[%s1413_s3 + $0xb8] sm:$0xff] %vm621_vm1, %v580_v4  ;;  %v325_v10 = vpop.f32.mrf.mxu0  ;;  %v373_v11 = vpop.f32.mrf.mxu1 }
  0xd3   :  { %v596_v12 = vmin.f32 %v532_v7, 20.0  ;;  %v612_v13 = vmin.f32 %v548_v8, 20.0  ;;  %v326_v14 = vadd.f32 %v1088_v9, %v325_v10  ;;  %v374_v15 = vadd.f32 %v1088_v9, %v373_v11 }
  0xd5   :  { %661 = vst.msk [vmem:[%s1413_s3 + $0x138] sm:$0xff] %vm621_vm1, %v596_v12  ;;  %v501_v16 = vmax.f32 %v326_v14, 0.0  ;;  %v517_v17 = vmax.f32 %v374_v15, 0.0 }
  0xd6   :  { %677 = vst.msk [vmem:[%s1413_s3 + $0x1b8] sm:$0xff] %vm621_vm1, %v612_v13  ;;  %v421_v18 = vpop.f32.mrf.mxu2  ;;  %v469_v19 = vpop.f32.mrf.mxu3 }
  0xd7   :  { %v565_v20 = vmin.f32 %v501_v16, 20.0  ;;  %v581_v21 = vmin.f32 %v517_v17, 20.0  ;;  %v422_v22 = vadd.f32 %v1088_v9, %v421_v18  ;;  %v470_v23 = vadd.f32 %v1088_v9, %v469_v19 }
  0xd9   :  { %630 = vst.msk [vmem:[%s1413_s3 + $0x40] sm:$0xff] %vm621_vm1, %v565_v20  ;;  %v533_v24 = vmax.f32 %v422_v22, 0.0  ;;  %v549_v25 = vmax.f32 %v470_v23, 0.0 }
  0xda   :  { %646 = vst.msk [vmem:[%s1413_s3 + $0xc0] sm:$0xff] %vm621_vm1, %v581_v21  ;;  %v328_v26 = vpop.f32.mrf.mxu0  ;;  %v376_v27 = vpop.f32.mrf.mxu1 }
  0xdb   :  { %v597_v28 = vmin.f32 %v533_v24, 20.0  ;;  %v613_v29 = vmin.f32 %v549_v25, 20.0  ;;  %v329_v30 = vadd.f32 %v1088_v9, %v328_v26  ;;  %v377_v31 = vadd.f32 %v1088_v9, %v376_v27 }
  0xdd   :  { %662 = vst.msk [vmem:[%s1413_s3 + $0x140] sm:$0xff] %vm621_vm1, %v597_v28  ;;  %v502_v32 = vmax.f32 %v329_v30, 0.0  ;;  %v518_v33 = vmax.f32 %v377_v31, 0.0 }
  0xde   :  { %678 = vst.msk [vmem:[%s1413_s3 + $0x1c0] sm:$0xff] %vm621_vm1, %v613_v29  ;;  %v424_v34 = vpop.f32.mrf.mxu2  ;;  %v472_v35 = vpop.f32.mrf.mxu3 }
  0xdf   :  { %v566_v36 = vmin.f32 %v502_v32, 20.0  ;;  %v582_v37 = vmin.f32 %v518_v33, 20.0  ;;  %v425_v38 = vadd.f32 %v1088_v9, %v424_v34  ;;  %v473_v39 = vadd.f32 %v1088_v9, %v472_v35 }
  0xe1   :  { %631 = vst.msk [vmem:[%s1413_s3 + $0x48] sm:$0xff] %vm621_vm1, %v566_v36  ;;  %v534_v40 = vmax.f32 %v425_v38, 0.0  ;;  %v550_v41 = vmax.f32 %v473_v39, 0.0 }
  0xe2   :  { %647 = vst.msk [vmem:[%s1413_s3 + $0xc8] sm:$0xff] %vm621_vm1, %v582_v37  ;;  %v331_v42 = vpop.f32.mrf.mxu0  ;;  %v379_v43 = vpop.f32.mrf.mxu1 }
  0xe3   :  { %v598_v44 = vmin.f32 %v534_v40, 20.0  ;;  %v614_v45 = vmin.f32 %v550_v41, 20.0  ;;  %v332_v46 = vadd.f32 %v1088_v9, %v331_v42  ;;  %v380_v47 = vadd.f32 %v1088_v9, %v379_v43 }
  0xe5   :  { %663 = vst.msk [vmem:[%s1413_s3 + $0x148] sm:$0xff] %vm621_vm1, %v598_v44  ;;  %v503_v48 = vmax.f32 %v332_v46, 0.0  ;;  %v519_v49 = vmax.f32 %v380_v47, 0.0 }
  0xe6   :  { %679 = vst.msk [vmem:[%s1413_s3 + $0x1c8] sm:$0xff] %vm621_vm1, %v614_v45  ;;  %v427_v50 = vpop.f32.mrf.mxu2  ;;  %v475_v51 = vpop.f32.mrf.mxu3 }
  0xe7   :  { %v567_v52 = vmin.f32 %v503_v48, 20.0  ;;  %v583_v53 = vmin.f32 %v519_v49, 20.0  ;;  %v428_v54 = vadd.f32 %v1088_v9, %v427_v50  ;;  %v476_v55 = vadd.f32 %v1088_v9, %v475_v51 }
  0xe9   :  { %632 = vst.msk [vmem:[%s1413_s3 + $0x50] sm:$0xff] %vm621_vm1, %v567_v52  ;;  %v535_v56 = vmax.f32 %v428_v54, 0.0  ;;  %v551_v57 = vmax.f32 %v476_v55, 0.0 }
  0xea   :  { %648 = vst.msk [vmem:[%s1413_s3 + $0xd0] sm:$0xff] %vm621_vm1, %v583_v53  ;;  %v334_v58 = vpop.f32.mrf.mxu0  ;;  %v382_v59 = vpop.f32.mrf.mxu1 }
  0xeb   :  { %v599_v60 = vmin.f32 %v535_v56, 20.0  ;;  %v615_v61 = vmin.f32 %v551_v57, 20.0  ;;  %v335_v62 = vadd.f32 %v1088_v9, %v334_v58  ;;  %v383_v63 = vadd.f32 %v1088_v9, %v382_v59 }
  0xed   :  { %664 = vst.msk [vmem:[%s1413_s3 + $0x150] sm:$0xff] %vm621_vm1, %v599_v60  ;;  %v504_v0 = vmax.f32 %v335_v62, 0.0  ;;  %v520_v1 = vmax.f32 %v383_v63, 0.0 }
  0xee   :  { %680 = vst.msk [vmem:[%s1413_s3 + $0x1d0] sm:$0xff] %vm621_vm1, %v615_v61  ;;  %v430_v2 = vpop.f32.mrf.mxu2  ;;  %v478_v3 = vpop.f32.mrf.mxu3 }
  0xef   :  { %v568_v4 = vmin.f32 %v504_v0, 20.0  ;;  %v584_v5 = vmin.f32 %v520_v1, 20.0  ;;  %v431_v6 = vadd.f32 %v1088_v9, %v430_v2  ;;  %v479_v7 = vadd.f32 %v1088_v9, %v478_v3 }
  0xf1   :  { %633 = vst.msk [vmem:[%s1413_s3 + $0x58] sm:$0xff] %vm621_vm1, %v568_v4  ;;  %v536_v8 = vmax.f32 %v431_v6, 0.0  ;;  %v552_v10 = vmax.f32 %v479_v7, 0.0 }
  0xf2   :  { %649 = vst.msk [vmem:[%s1413_s3 + $0xd8] sm:$0xff] %vm621_vm1, %v584_v5  ;;  %v337_v11 = vpop.f32.mrf.mxu0  ;;  %v385_v12 = vpop.f32.mrf.mxu1 }
  0xf3   :  { %v600_v13 = vmin.f32 %v536_v8, 20.0  ;;  %v616_v14 = vmin.f32 %v552_v10, 20.0  ;;  %v338_v15 = vadd.f32 %v1088_v9, %v337_v11  ;;  %v386_v16 = vadd.f32 %v1088_v9, %v385_v12 }
  0xf5   :  { %665 = vst.msk [vmem:[%s1413_s3 + $0x158] sm:$0xff] %vm621_vm1, %v600_v13  ;;  %v505_v17 = vmax.f32 %v338_v15, 0.0  ;;  %v521_v18 = vmax.f32 %v386_v16, 0.0 }
  0xf6   :  { %681 = vst.msk [vmem:[%s1413_s3 + $0x1d8] sm:$0xff] %vm621_vm1, %v616_v14  ;;  %v433_v19 = vpop.f32.mrf.mxu2  ;;  %v481_v20 = vpop.f32.mrf.mxu3 }
  0xf7   :  { %v569_v21 = vmin.f32 %v505_v17, 20.0  ;;  %v585_v22 = vmin.f32 %v521_v18, 20.0  ;;  %v434_v23 = vadd.f32 %v1088_v9, %v433_v19  ;;  %v482_v24 = vadd.f32 %v1088_v9, %v481_v20 }
  0xf9   :  { %634 = vst.msk [vmem:[%s1413_s3 + $0x60] sm:$0xff] %vm621_vm1, %v569_v21  ;;  %v537_v25 = vmax.f32 %v434_v23, 0.0  ;;  %v553_v26 = vmax.f32 %v482_v24, 0.0 }
  0xfa   :  { %650 = vst.msk [vmem:[%s1413_s3 + $0xe0] sm:$0xff] %vm621_vm1, %v585_v22  ;;  %v340_v27 = vpop.f32.mrf.mxu0  ;;  %v388_v28 = vpop.f32.mrf.mxu1 }
  0xfb   :  { %v601_v29 = vmin.f32 %v537_v25, 20.0  ;;  %v617_v30 = vmin.f32 %v553_v26, 20.0  ;;  %v341_v31 = vadd.f32 %v1088_v9, %v340_v27  ;;  %v389_v32 = vadd.f32 %v1088_v9, %v388_v28 }
  0xfd   :  { %666 = vst.msk [vmem:[%s1413_s3 + $0x160] sm:$0xff] %vm621_vm1, %v601_v29  ;;  %v506_v33 = vmax.f32 %v341_v31, 0.0  ;;  %v522_v34 = vmax.f32 %v389_v32, 0.0 }
  0xfe   :  { %682 = vst.msk [vmem:[%s1413_s3 + $0x1e0] sm:$0xff] %vm621_vm1, %v617_v30  ;;  %v436_v35 = vpop.f32.mrf.mxu2  ;;  %v484_v36 = vpop.f32.mrf.mxu3 }
  0xff   :  { %v570_v37 = vmin.f32 %v506_v33, 20.0  ;;  %v586_v38 = vmin.f32 %v522_v34, 20.0  ;;  %v437_v39 = vadd.f32 %v1088_v9, %v436_v35  ;;  %v485_v40 = vadd.f32 %v1088_v9, %v484_v36 }
 0x101   :  { %635 = vst.msk [vmem:[%s1413_s3 + $0x68] sm:$0xff] %vm621_vm1, %v570_v37  ;;  %v538_v41 = vmax.f32 %v437_v39, 0.0  ;;  %v554_v42 = vmax.f32 %v485_v40, 0.0 }
 0x102   :  { %651 = vst.msk [vmem:[%s1413_s3 + $0xe8] sm:$0xff] %vm621_vm1, %v586_v38  ;;  %v343_v43 = vpop.f32.mrf.mxu0  ;;  %v391_v44 = vpop.f32.mrf.mxu1 }
 0x103   :  { %v602_v45 = vmin.f32 %v538_v41, 20.0  ;;  %v618_v46 = vmin.f32 %v554_v42, 20.0  ;;  %v344_v47 = vadd.f32 %v1088_v9, %v343_v43  ;;  %v392_v48 = vadd.f32 %v1088_v9, %v391_v44 }
 0x105   :  { %667 = vst.msk [vmem:[%s1413_s3 + $0x168] sm:$0xff] %vm621_vm1, %v602_v45  ;;  %v507_v49 = vmax.f32 %v344_v47, 0.0  ;;  %v523_v50 = vmax.f32 %v392_v48, 0.0 }
 0x106   :  { %683 = vst.msk [vmem:[%s1413_s3 + $0x1e8] sm:$0xff] %vm621_vm1, %v618_v46  ;;  %v439_v51 = vpop.f32.mrf.mxu2  ;;  %v487_v52 = vpop.f32.mrf.mxu3 }
 0x107   :  { %v571_v53 = vmin.f32 %v507_v49, 20.0  ;;  %v587_v54 = vmin.f32 %v523_v50, 20.0  ;;  %v440_v55 = vadd.f32 %v1088_v9, %v439_v51  ;;  %v488_v56 = vadd.f32 %v1088_v9, %v487_v52 }
 0x109   :  { %636 = vst.msk [vmem:[%s1413_s3 + $0x70] sm:$0xff] %vm621_vm1, %v571_v53  ;;  %v539_v57 = vmax.f32 %v440_v55, 0.0  ;;  %v555_v58 = vmax.f32 %v488_v56, 0.0 }
 0x10a   :  { %652 = vst.msk [vmem:[%s1413_s3 + $0xf0] sm:$0xff] %vm621_vm1, %v587_v54  ;;  %v346_v59 = vpop.f32.mrf.mxu0  ;;  %v394_v60 = vpop.f32.mrf.mxu1 }
 0x10b   :  { %v603_v61 = vmin.f32 %v539_v57, 20.0  ;;  %v619_v62 = vmin.f32 %v555_v58, 20.0  ;;  %v347_v63 = vadd.f32 %v1088_v9, %v346_v59  ;;  %v395_v0 = vadd.f32 %v1088_v9, %v394_v60 }
 0x10d   :  { %668 = vst.msk [vmem:[%s1413_s3 + $0x170] sm:$0xff] %vm621_vm1, %v603_v61  ;;  %v508_v1 = vmax.f32 %v347_v63, 0.0  ;;  %v524_v2 = vmax.f32 %v395_v0, 0.0 }
 0x10e   :  { %684 = vst.msk [vmem:[%s1413_s3 + $0x1f0] sm:$0xff] %vm621_vm1, %v619_v62  ;;  %v442_v3 = vpop.f32.mrf.mxu2  ;;  %v490_v4 = vpop.f32.mrf.mxu3 }
 0x10f   :  { %v572_v5 = vmin.f32 %v508_v1, 20.0  ;;  %v588_v6 = vmin.f32 %v524_v2, 20.0  ;;  %v443_v7 = vadd.f32 %v1088_v9, %v442_v3  ;;  %v491_v8 = vadd.f32 %v1088_v9, %v490_v4 }
 0x111   :  { %637 = vst.msk [vmem:[%s1413_s3 + $0x78] sm:$0xff] %vm621_vm1, %v572_v5  ;;  %v540_v10 = vmax.f32 %v443_v7, 0.0  ;;  %v556_v11 = vmax.f32 %v491_v8, 0.0 }
 0x112   :  { %653 = vst.msk [vmem:[%s1413_s3 + $0xf8] sm:$0xff] %vm621_vm1, %v588_v6 }
 0x113   :  { %v604_v12 = vmin.f32 %v540_v10, 20.0  ;;  %v620_v13 = vmin.f32 %v556_v11, 20.0 }
 0x115   :  { %669 = vst.msk [vmem:[%s1413_s3 + $0x178] sm:$0xff] %vm621_vm1, %v604_v12 }
 0x116   :  { %685 = vst.msk [vmem:[%s1413_s3 + $0x1f8] sm:$0xff] %vm621_vm1, %v620_v13 }

// kernel: _speech_transformer_forward.9
= control target key start
LH: loop header
LB: loop body
LE: loop exit
PB: predicated region body
PF: predicated region fallthrough
CT: control target
= control target key end

     0   :  { %vm43_vm0 = vcmask 588800   ;;  %vm189_vm1 = vcmask 130048   ;;  %s450_s1 = inlined_call_operand.vmem [shape: f32[72,16], index: 1, kind: input, shape index: {}]   ;;  %s451_s2 = inlined_call_operand.vmem [shape: f32[1,16], index: 2, kind: input, shape index: {}]   ;;  %s452_s0 = inlined_call_operand.vmem [shape: f32[128,72], index: 0, kind: input, shape index: {}]   ;;  %s453_s3 = inlined_call_operand.vmem [shape: f32[128,16], index: 3, kind: output, shape index: {}]  }
   0x1   :  { %v38_v0 = vld [vmem:[%s450_s1 + $0x40] sm:$0xff]  ;;  %v37_v1 = vld [vmem:[%s450_s1 + $0x38] sm:$0xff]  ;;  %v36_v2 = vld [vmem:[%s450_s1 + $0x30] sm:$0xff] }
   0x2   :  { %227 = vmatpush.msra.mxu2 %v38_v0  ;;  %228 = vmatpush.msra.mxu3 %v38_v0  ;;  %v35_v3 = vld [vmem:[%s450_s1 + $0x28] sm:$0xff]  ;;  %v34_v4 = vld [vmem:[%s450_s1 + $0x20] sm:$0xff]  ;;  %v33_v5 = vld [vmem:[%s450_s1 + $0x18] sm:$0xff] }
   0x3   :  { %99 = vmatpush.msra.mxu0 %v38_v0  ;;  %226 = vmatpush.msra.mxu1 %v38_v0  ;;  %v32_v6 = vld [vmem:[%s450_s1 + $0x10] sm:$0xff]  ;;  %v31_v7 = vld [vmem:[%s450_s1 + $0x8] sm:$0xff]  ;;  %v30_v8 = vld [vmem:[%s450_s1] sm:$0xff] }
   0x4   :  { %230 = vmatpush.msra.mxu2 %v37_v1  ;;  %231 = vmatpush.msra.mxu3 %v37_v1  ;;  %v22_v9 = vld [vmem:[%s452_s0 + $0x40] sm:$0xff]  ;;  %v23_v13 = vld [vmem:[%s452_s0 + $0x48] sm:$0xff]  ;;  %v24_v17 = vld [vmem:[%s452_s0 + $0x50] sm:$0xff] }
   0x5   :  { %100 = vmatpush.msra.mxu0 %v37_v1  ;;  %229 = vmatpush.msra.mxu1 %v37_v1  ;;  %v26_v10 = vld [vmem:[%s452_s0 + $0x60] sm:$0xff]  ;;  %v27_v14 = vld [vmem:[%s452_s0 + $0x68] sm:$0xff]  ;;  %v28_v18 = vld [vmem:[%s452_s0 + $0x70] sm:$0xff] }
   0x6   :  { %233 = vmatpush.msra.mxu2 %v36_v2  ;;  %234 = vmatpush.msra.mxu3 %v36_v2  ;;  %v14_v11 = vld [vmem:[%s452_s0] sm:$0xff]  ;;  %v15_v15 = vld [vmem:[%s452_s0 + $0x8] sm:$0xff]  ;;  %v16_v19 = vld [vmem:[%s452_s0 + $0x10] sm:$0xff] }
   0x7   :  { %101 = vmatpush.msra.mxu0 %v36_v2  ;;  %232 = vmatpush.msra.mxu1 %v36_v2  ;;  %v18_v12 = vld [vmem:[%s452_s0 + $0x20] sm:$0xff]  ;;  %v19_v16 = vld [vmem:[%s452_s0 + $0x28] sm:$0xff]  ;;  %v20_v20 = vld [vmem:[%s452_s0 + $0x30] sm:$0xff] }
   0x8   :  { %236 = vmatpush.msra.mxu2 %v35_v3  ;;  %237 = vmatpush.msra.mxu3 %v35_v3  ;;  %v25_v21 = vld [vmem:[%s452_s0 + $0x58] sm:$0xff]  ;;  %v368_v25 = vld [vmem:[%s451_s2] ss:$0 sm:$0xff] }
   0x9   :  { %102 = vmatpush.msra.mxu0 %v35_v3  ;;  %235 = vmatpush.msra.mxu1 %v35_v3  ;;  %v29_v22 = vld [vmem:[%s452_s0 + $0x78] sm:$0xff] }
   0xa   :  { %239 = vmatpush.msra.mxu2 %v34_v4  ;;  %240 = vmatpush.msra.mxu3 %v34_v4  ;;  %v17_v23 = vld [vmem:[%s452_s0 + $0x18] sm:$0xff] }
   0xb   :  { %103 = vmatpush.msra.mxu0 %v34_v4  ;;  %238 = vmatpush.msra.mxu1 %v34_v4  ;;  %v21_v24 = vld [vmem:[%s452_s0 + $0x38] sm:$0xff] }
   0xc   :  { %242 = vmatpush.msra.mxu2 %v33_v5  ;;  %243 = vmatpush.msra.mxu3 %v33_v5 }
   0xd   :  { %104 = vmatpush.msra.mxu0 %v33_v5  ;;  %241 = vmatpush.msra.mxu1 %v33_v5 }
   0xe   :  { %245 = vmatpush.msra.mxu2 %v32_v6  ;;  %246 = vmatpush.msra.mxu3 %v32_v6 }
   0xf   :  { %105 = vmatpush.msra.mxu0 %v32_v6  ;;  %244 = vmatpush.msra.mxu1 %v32_v6 }
  0x10   :  { %248 = vmatpush.msra.mxu2 %v31_v7  ;;  %249 = vmatpush.msra.mxu3 %v31_v7 }
  0x11   :  { %106 = vmatpush.msra.mxu0 %v31_v7  ;;  %247 = vmatpush.msra.mxu1 %v31_v7 }
  0x12   :  { %251 = vmatpush.msra.mxu2 %v30_v8  ;;  %252 = vmatpush.msra.mxu3 %v30_v8 }
  0x13   :  { %218 = vmatmul.msk.f32.vlgmr.msra.gmra.mxu2 %vm43_vm0, %v22_v9  ;;  %222 = vmatmul.msk.f32.vlgmr.msra.gmra.mxu3 %vm43_vm0, %v26_v10 }
  0x14   :  { %107 = vmatpush.msra.mxu0 %v30_v8  ;;  %250 = vmatpush.msra.mxu1 %v30_v8 }
  0x15   :  { %210 = vmatmul.msk.f32.vlgmr.msra.gmra.mxu0 %vm43_vm0, %v14_v11  ;;  %214 = vmatmul.msk.f32.vlgmr.msra.gmra.mxu1 %vm43_vm0, %v18_v12 }
  0x1b   :  { %219 = vmatmul.msk.f32.gmra.mxu2 %vm43_vm0, %v23_v13  ;;  %223 = vmatmul.msk.f32.gmra.mxu3 %vm43_vm0, %v27_v14 }
  0x1d   :  { %211 = vmatmul.msk.f32.gmra.mxu0 %vm43_vm0, %v15_v15  ;;  %215 = vmatmul.msk.f32.gmra.mxu1 %vm43_vm0, %v19_v16 }
  0x23   :  { %220 = vmatmul.msk.f32.gmra.mxu2 %vm43_vm0, %v24_v17  ;;  %224 = vmatmul.msk.f32.gmra.mxu3 %vm43_vm0, %v28_v18 }
  0x25   :  { %212 = vmatmul.msk.f32.gmra.mxu0 %vm43_vm0, %v16_v19  ;;  %216 = vmatmul.msk.f32.gmra.mxu1 %vm43_vm0, %v20_v20 }
  0x2b   :  { %221 = vmatmul.msk.f32.gmra.mxu2 %vm43_vm0, %v25_v21  ;;  %225 = vmatmul.msk.f32.gmra.mxu3 %vm43_vm0, %v29_v22 }
  0x2d   :  { %213 = vmatmul.msk.f32.gmra.mxu0 %vm43_vm0, %v17_v23  ;;  %217 = vmatmul.msk.f32.gmra.mxu1 %vm43_vm0, %v21_v24 }
  0x92   :  { %v109_v26 = vpop.f32.mrf.mxu0  ;;  %v121_v27 = vpop.f32.mrf.mxu1 }
  0x93   :  { %v110_v28 = vadd.f32 %v368_v25, %v109_v26  ;;  %v122_v29 = vadd.f32 %v368_v25, %v121_v27 }
  0x95   :  { %v157_v30 = vmax.f32 %v110_v28, 0.0  ;;  %v161_v31 = vmax.f32 %v122_v29, 0.0 }
  0x96   :  { %v133_v32 = vpop.f32.mrf.mxu2  ;;  %v145_v33 = vpop.f32.mrf.mxu3 }
  0x97   :  { %v173_v34 = vmin.f32 %v157_v30, 20.0  ;;  %v177_v35 = vmin.f32 %v161_v31, 20.0  ;;  %v134_v36 = vadd.f32 %v368_v25, %v133_v32  ;;  %v146_v37 = vadd.f32 %v368_v25, %v145_v33 }
  0x99   :  { %190 = vst.msk [vmem:[%s453_s3] sm:$0xff] %vm189_vm1, %v173_v34  ;;  %v165_v38 = vmax.f32 %v134_v36, 0.0  ;;  %v169_v39 = vmax.f32 %v146_v37, 0.0 }
  0x9a   :  { %194 = vst.msk [vmem:[%s453_s3 + $0x20] sm:$0xff] %vm189_vm1, %v177_v35  ;;  %v112_v40 = vpop.f32.mrf.mxu0  ;;  %v124_v41 = vpop.f32.mrf.mxu1 }
  0x9b   :  { %v181_v42 = vmin.f32 %v165_v38, 20.0  ;;  %v185_v43 = vmin.f32 %v169_v39, 20.0  ;;  %v113_v44 = vadd.f32 %v368_v25, %v112_v40  ;;  %v125_v45 = vadd.f32 %v368_v25, %v124_v41 }
  0x9d   :  { %198 = vst.msk [vmem:[%s453_s3 + $0x40] sm:$0xff] %vm189_vm1, %v181_v42  ;;  %v158_v46 = vmax.f32 %v113_v44, 0.0  ;;  %v162_v47 = vmax.f32 %v125_v45, 0.0 }
  0x9e   :  { %202 = vst.msk [vmem:[%s453_s3 + $0x60] sm:$0xff] %vm189_vm1, %v185_v43  ;;  %v136_v48 = vpop.f32.mrf.mxu2  ;;  %v148_v49 = vpop.f32.mrf.mxu3 }
  0x9f   :  { %v174_v50 = vmin.f32 %v158_v46, 20.0  ;;  %v178_v51 = vmin.f32 %v162_v47, 20.0  ;;  %v137_v52 = vadd.f32 %v368_v25, %v136_v48  ;;  %v149_v53 = vadd.f32 %v368_v25, %v148_v49 }
  0xa1   :  { %191 = vst.msk [vmem:[%s453_s3 + $0x8] sm:$0xff] %vm189_vm1, %v174_v50  ;;  %v166_v54 = vmax.f32 %v137_v52, 0.0  ;;  %v170_v55 = vmax.f32 %v149_v53, 0.0 }
  0xa2   :  { %195 = vst.msk [vmem:[%s453_s3 + $0x28] sm:$0xff] %vm189_vm1, %v178_v51  ;;  %v115_v56 = vpop.f32.mrf.mxu0  ;;  %v127_v57 = vpop.f32.mrf.mxu1 }
  0xa3   :  { %v182_v58 = vmin.f32 %v166_v54, 20.0  ;;  %v186_v59 = vmin.f32 %v170_v55, 20.0  ;;  %v116_v60 = vadd.f32 %v368_v25, %v115_v56  ;;  %v128_v61 = vadd.f32 %v368_v25, %v127_v57 }
  0xa5   :  { %199 = vst.msk [vmem:[%s453_s3 + $0x48] sm:$0xff] %vm189_vm1, %v182_v58  ;;  %v159_v62 = vmax.f32 %v116_v60, 0.0  ;;  %v163_v63 = vmax.f32 %v128_v61, 0.0 }
  0xa6   :  { %203 = vst.msk [vmem:[%s453_s3 + $0x68] sm:$0xff] %vm189_vm1, %v186_v59  ;;  %v139_v0 = vpop.f32.mrf.mxu2  ;;  %v151_v1 = vpop.f32.mrf.mxu3 }
  0xa7   :  { %v175_v2 = vmin.f32 %v159_v62, 20.0  ;;  %v179_v3 = vmin.f32 %v163_v63, 20.0  ;;  %v140_v4 = vadd.f32 %v368_v25, %v139_v0  ;;  %v152_v5 = vadd.f32 %v368_v25, %v151_v1 }
  0xa9   :  { %192 = vst.msk [vmem:[%s453_s3 + $0x10] sm:$0xff] %vm189_vm1, %v175_v2  ;;  %v167_v6 = vmax.f32 %v140_v4, 0.0  ;;  %v171_v7 = vmax.f32 %v152_v5, 0.0 }
  0xaa   :  { %196 = vst.msk [vmem:[%s453_s3 + $0x30] sm:$0xff] %vm189_vm1, %v179_v3  ;;  %v118_v8 = vpop.f32.mrf.mxu0  ;;  %v130_v9 = vpop.f32.mrf.mxu1 }
  0xab   :  { %v183_v10 = vmin.f32 %v167_v6, 20.0  ;;  %v187_v11 = vmin.f32 %v171_v7, 20.0  ;;  %v119_v12 = vadd.f32 %v368_v25, %v118_v8  ;;  %v131_v13 = vadd.f32 %v368_v25, %v130_v9 }
  0xad   :  { %200 = vst.msk [vmem:[%s453_s3 + $0x50] sm:$0xff] %vm189_vm1, %v183_v10  ;;  %v160_v14 = vmax.f32 %v119_v12, 0.0  ;;  %v164_v15 = vmax.f32 %v131_v13, 0.0 }
  0xae   :  { %204 = vst.msk [vmem:[%s453_s3 + $0x70] sm:$0xff] %vm189_vm1, %v187_v11  ;;  %v142_v16 = vpop.f32.mrf.mxu2  ;;  %v154_v17 = vpop.f32.mrf.mxu3 }
  0xaf   :  { %v176_v18 = vmin.f32 %v160_v14, 20.0  ;;  %v180_v19 = vmin.f32 %v164_v15, 20.0  ;;  %v143_v20 = vadd.f32 %v368_v25, %v142_v16  ;;  %v155_v21 = vadd.f32 %v368_v25, %v154_v17 }
  0xb1   :  { %193 = vst.msk [vmem:[%s453_s3 + $0x18] sm:$0xff] %vm189_vm1, %v176_v18  ;;  %v168_v22 = vmax.f32 %v143_v20, 0.0  ;;  %v172_v23 = vmax.f32 %v155_v21, 0.0 }
  0xb2   :  { %197 = vst.msk [vmem:[%s453_s3 + $0x38] sm:$0xff] %vm189_vm1, %v180_v19 }
  0xb3   :  { %v184_v24 = vmin.f32 %v168_v22, 20.0  ;;  %v188_v26 = vmin.f32 %v172_v23, 20.0 }
  0xb5   :  { %201 = vst.msk [vmem:[%s453_s3 + $0x58] sm:$0xff] %vm189_vm1, %v184_v24 }
  0xb6   :  { %205 = vst.msk [vmem:[%s453_s3 + $0x78] sm:$0xff] %vm189_vm1, %v188_v26 }

// kernel: custom-call.2
= control target key start
LH: loop header
LB: loop body
LE: loop exit
PB: predicated region body
PF: predicated region fallthrough
CT: control target
= control target key end

     0   :  { %s6_s0 = inlined_call_operand.vmem [shape: f32[2,7,10], index: 0, kind: output, shape index: {}]  }

// kernel: _speech_transformer_forward.10
= control target key start
LH: loop header
LB: loop body
LE: loop exit
PB: predicated region body
PF: predicated region fallthrough
CT: control target
= control target key end

     0   :  { %vm68_vm0 = vcmask 130048   ;;  %s635_s1 = inlined_call_operand.vmem [shape: f32[144,16], index: 1, kind: input, shape index: {}]   ;;  %s636_s0 = inlined_call_operand.vmem [shape: f32[128,144], index: 0, kind: input, shape index: {}]   ;;  %s637_s2 = inlined_call_operand.vmem [shape: f32[1,16], index: 2, kind: input, shape index: {}]   ;;  %s638_s3 = inlined_call_operand.vmem [shape: f32[128,16], index: 3, kind: output, shape index: {}]  }
   0x1   :  { %v61_v0 = vld [vmem:[%s635_s1 + $0x78] sm:$0xff]  ;;  %v376_v1 = vld [vmem:[%s635_s1 + $0x88] sm:$0xff]  ;;  %v60_v2 = vld [vmem:[%s635_s1 + $0x70] sm:$0xff] }
   0x2   :  { %117 = vmatpush.msra.mxu0 %v61_v0  ;;  %315 = vmatpush.msra.mxu2 %v61_v0  ;;  %v384_v3 = vld [vmem:[%s635_s1 + $0x80] sm:$0xff]  ;;  %v15_v4 = vld [vmem:[%s636_s0 + $0x8] sm:$0xff]  ;;  %v57_v7 = vld [vmem:[%s635_s1 + $0x58] sm:$0xff] }
   0x3   :  { %316 = vmatpush.msra.mxu3 %v61_v0  ;;  %196 = vmatpush.msra.mxu1 %v376_v1  ;;  %v59_v5 = vld [vmem:[%s635_s1 + $0x68] sm:$0xff]  ;;  %v58_v6 = vld [vmem:[%s635_s1 + $0x60] sm:$0xff]  ;;  %v56_v8 = vld [vmem:[%s635_s1 + $0x50] sm:$0xff] }
   0x4   :  { %118 = vmatpush.msra.mxu0 %v60_v2  ;;  %317 = vmatpush.msra.mxu2 %v60_v2  ;;  %v17_v9 = vld [vmem:[%s636_s0 + $0x18] sm:$0xff]  ;;  %v55_v10 = vld [vmem:[%s635_s1 + $0x48] sm:$0xff]  ;;  %v54_v11 = vld [vmem:[%s635_s1 + $0x40] sm:$0xff] }
   0x5   :  { %318 = vmatpush.msra.mxu3 %v60_v2  ;;  %197 = vmatpush.msra.mxu1 %v384_v3  ;;  %v53_v12 = vld [vmem:[%s635_s1 + $0x38] sm:$0xff]  ;;  %v52_v13 = vld [vmem:[%s635_s1 + $0x30] sm:$0xff]  ;;  %v19_v14 = vld [vmem:[%s636_s0 + $0x28] sm:$0xff] }
   0x6   :  { %299 = vmatmul.msk.f32.vlgmr.msra.gmra.mxu1 %vm68_vm0, %v15_v4  ;;  %119 = vmatpush.msra.mxu0 %v59_v5  ;;  %v51_v15 = vld [vmem:[%s635_s1 + $0x28] sm:$0xff]  ;;  %v50_v16 = vld [vmem:[%s635_s1 + $0x20] sm:$0xff]  ;;  %v49_v17 = vld [vmem:[%s635_s1 + $0x18] sm:$0xff] }
   0x7   :  { %319 = vmatpush.msra.mxu2 %v59_v5  ;;  %320 = vmatpush.msra.mxu3 %v59_v5  ;;  %v48_v18 = vld [vmem:[%s635_s1 + $0x10] sm:$0xff]  ;;  %v21_v19 = vld [vmem:[%s636_s0 + $0x38] sm:$0xff]  ;;  %v47_v20 = vld [vmem:[%s635_s1 + $0x8] sm:$0xff] }
   0x8   :  { %120 = vmatpush.msra.mxu0 %v58_v6  ;;  %v46_v21 = vld [vmem:[%s635_s1] sm:$0xff]  ;;  %v28_v23 = vld [vmem:[%s636_s0 + $0x70] sm:$0xff]  ;;  %v23_v25 = vld [vmem:[%s636_s0 + $0x48] sm:$0xff] }
   0x9   :  { %321 = vmatpush.msra.mxu2 %v58_v6  ;;  %322 = vmatpush.msra.mxu3 %v58_v6  ;;  %v14_v22 = vld [vmem:[%s636_s0] sm:$0xff]  ;;  %v44_v24 = vld [vmem:[%s636_s0 + $0xf0] sm:$0xff]  ;;  %v35_v28 = vld [vmem:[%s636_s0 + $0xa8] sm:$0xff] }
   0xa   :  { %121 = vmatpush.msra.mxu0 %v57_v7  ;;  %v16_v26 = vld [vmem:[%s636_s0 + $0x10] sm:$0xff]  ;;  %v30_v27 = vld [vmem:[%s636_s0 + $0x80] sm:$0xff]  ;;  %v25_v29 = vld [vmem:[%s636_s0 + $0x58] sm:$0xff] }
   0xb   :  { %323 = vmatpush.msra.mxu2 %v57_v7  ;;  %324 = vmatpush.msra.mxu3 %v57_v7  ;;  %v18_v30 = vld [vmem:[%s636_s0 + $0x20] sm:$0xff]  ;;  %v32_v31 = vld [vmem:[%s636_s0 + $0x90] sm:$0xff]  ;;  %v37_v32 = vld [vmem:[%s636_s0 + $0xb8] sm:$0xff] }
   0xc   :  { %122 = vmatpush.msra.mxu0 %v56_v8  ;;  %v27_v33 = vld [vmem:[%s636_s0 + $0x68] sm:$0xff]  ;;  %v20_v34 = vld [vmem:[%s636_s0 + $0x30] sm:$0xff]  ;;  %v34_v35 = vld [vmem:[%s636_s0 + $0xa0] sm:$0xff] }
   0xd   :  { %325 = vmatpush.msra.mxu2 %v56_v8  ;;  %326 = vmatpush.msra.mxu3 %v56_v8  ;;  %v39_v36 = vld [vmem:[%s636_s0 + $0xc8] sm:$0xff]  ;;  %v29_v37 = vld [vmem:[%s636_s0 + $0x78] sm:$0xff]  ;;  %v22_v38 = vld [vmem:[%s636_s0 + $0x40] sm:$0xff] }
   0xe   :  { %300 = vmatmul.msk.f32.gmra.mxu1 %vm68_vm0, %v17_v9  ;;  %123 = vmatpush.msra.mxu0 %v55_v10  ;;  %v36_v39 = vld [vmem:[%s636_s0 + $0xb0] sm:$0xff]  ;;  %v41_v40 = vld [vmem:[%s636_s0 + $0xd8] sm:$0xff]  ;;  %v31_v41 = vld [vmem:[%s636_s0 + $0x88] sm:$0xff] }
   0xf   :  { %327 = vmatpush.msra.mxu2 %v55_v10  ;;  %328 = vmatpush.msra.mxu3 %v55_v10  ;;  %v24_v42 = vld [vmem:[%s636_s0 + $0x50] sm:$0xff]  ;;  %v38_v43 = vld [vmem:[%s636_s0 + $0xc0] sm:$0xff]  ;;  %v43_v44 = vld [vmem:[%s636_s0 + $0xe8] sm:$0xff] }
  0x10   :  { %124 = vmatpush.msra.mxu0 %v54_v11  ;;  %v33_v45 = vld [vmem:[%s636_s0 + $0x98] sm:$0xff]  ;;  %v26_v46 = vld [vmem:[%s636_s0 + $0x60] sm:$0xff]  ;;  %v40_v47 = vld [vmem:[%s636_s0 + $0xd0] sm:$0xff] }
  0x11   :  { %329 = vmatpush.msra.mxu2 %v54_v11  ;;  %330 = vmatpush.msra.mxu3 %v54_v11  ;;  %v45_v48 = vld [vmem:[%s636_s0 + $0xf8] sm:$0xff]  ;;  %v42_v49 = vld [vmem:[%s636_s0 + $0xe0] sm:$0xff] }
  0x12   :  { %125 = vmatpush.msra.mxu0 %v53_v12  ;;  %v547_v54 = vld [vmem:[%s637_s2] ss:$0 sm:$0xff] }
  0x13   :  { %331 = vmatpush.msra.mxu2 %v53_v12  ;;  %332 = vmatpush.msra.mxu3 %v53_v12 }
  0x14   :  { %126 = vmatpush.msra.mxu0 %v52_v13 }
  0x15   :  { %333 = vmatpush.msra.mxu2 %v52_v13  ;;  %334 = vmatpush.msra.mxu3 %v52_v13 }
  0x16   :  { %301 = vmatmul.msk.f32.gmra.mxu1 %vm68_vm0, %v19_v14  ;;  %127 = vmatpush.msra.mxu0 %v51_v15 }
  0x17   :  { %335 = vmatpush.msra.mxu2 %v51_v15  ;;  %336 = vmatpush.msra.mxu3 %v51_v15 }
  0x18   :  { %128 = vmatpush.msra.mxu0 %v50_v16 }
  0x19   :  { %337 = vmatpush.msra.mxu2 %v50_v16  ;;  %338 = vmatpush.msra.mxu3 %v50_v16 }
  0x1a   :  { %129 = vmatpush.msra.mxu0 %v49_v17 }
  0x1b   :  { %339 = vmatpush.msra.mxu2 %v49_v17  ;;  %340 = vmatpush.msra.mxu3 %v49_v17 }
  0x1c   :  { %130 = vmatpush.msra.mxu0 %v48_v18 }
  0x1d   :  { %341 = vmatpush.msra.mxu2 %v48_v18  ;;  %342 = vmatpush.msra.mxu3 %v48_v18 }
  0x1e   :  { %302 = vmatmul.msk.f32.gmra.mxu1 %vm68_vm0, %v21_v19  ;;  %131 = vmatpush.msra.mxu0 %v47_v20 }
  0x1f   :  { %343 = vmatpush.msra.mxu2 %v47_v20  ;;  %344 = vmatpush.msra.mxu3 %v47_v20 }
  0x20   :  { %132 = vmatpush.msra.mxu0 %v46_v21 }
  0x21   :  { %345 = vmatpush.msra.mxu2 %v46_v21  ;;  %346 = vmatpush.msra.mxu3 %v46_v21 }
  0x22   :  { %133 = vmatmul.f32.vlgmr.msra.gmra.mxu0 %v14_v22  ;;  %154 = vmatmul.f32.vlgmr.msra.gmra.mxu2 %v28_v23 }
  0x23   :  { %178 = vmatmul.f32.vlgmr.msra.gmra.mxu3 %v44_v24 }
  0x24   :  { %347 = vmatpush.msrb.mxu3 %v376_v1 }
  0x26   :  { %303 = vmatmul.msk.f32.gmra.mxu1 %vm68_vm0, %v23_v25  ;;  %348 = vmatpush.msrb.mxu3 %v384_v3 }
  0x2a   :  { %136 = vmatmul.f32.gmra.mxu0 %v16_v26  ;;  %157 = vmatmul.f32.gmra.mxu2 %v30_v27 }
  0x2b   :  { %309 = vmatmul.msk.f32.vlgmr.msrb.gmra.mxu3 %vm68_vm0, %v35_v28 }
  0x2e   :  { %304 = vmatmul.msk.f32.gmra.mxu1 %vm68_vm0, %v25_v29 }
  0x32   :  { %139 = vmatmul.f32.gmra.mxu0 %v18_v30  ;;  %160 = vmatmul.f32.gmra.mxu2 %v32_v31 }
  0x33   :  { %310 = vmatmul.msk.f32.gmra.mxu3 %vm68_vm0, %v37_v32 }
  0x36   :  { %305 = vmatmul.msk.f32.gmra.mxu1 %vm68_vm0, %v27_v33 }
  0x3a   :  { %142 = vmatmul.f32.gmra.mxu0 %v20_v34  ;;  %163 = vmatmul.f32.gmra.mxu2 %v34_v35 }
  0x3b   :  { %311 = vmatmul.msk.f32.gmra.mxu3 %vm68_vm0, %v39_v36 }
  0x3e   :  { %306 = vmatmul.msk.f32.gmra.mxu1 %vm68_vm0, %v29_v37 }
  0x42   :  { %145 = vmatmul.f32.gmra.mxu0 %v22_v38  ;;  %166 = vmatmul.f32.gmra.mxu2 %v36_v39 }
  0x43   :  { %312 = vmatmul.msk.f32.gmra.mxu3 %vm68_vm0, %v41_v40 }
  0x46   :  { %307 = vmatmul.msk.f32.gmra.mxu1 %vm68_vm0, %v31_v41 }
  0x4a   :  { %148 = vmatmul.f32.gmra.mxu0 %v24_v42  ;;  %169 = vmatmul.f32.gmra.mxu2 %v38_v43 }
  0x4b   :  { %313 = vmatmul.msk.f32.gmra.mxu3 %vm68_vm0, %v43_v44 }
  0x4e   :  { %308 = vmatmul.msk.f32.gmra.mxu1 %vm68_vm0, %v33_v45 }
  0x52   :  { %151 = vmatmul.f32.gmra.mxu0 %v26_v46  ;;  %172 = vmatmul.f32.gmra.mxu2 %v40_v47 }
  0x53   :  { %314 = vmatmul.msk.f32.gmra.mxu3 %vm68_vm0, %v45_v48 }
  0x5a   :  { %175 = vmatmul.f32.gmra.mxu2 %v42_v49 }
  0x83   :  { %v199_v50 = vpop.f32.mrf.mxu1 }
  0x8b   :  { %v202_v51 = vpop.f32.mrf.mxu1 }
  0x93   :  { %v205_v52 = vpop.f32.mrf.mxu1 }
  0x9b   :  { %v208_v53 = vpop.f32.mrf.mxu1 }
  0x9f   :  { %v134_v55 = vpop.f32.mrf.mxu0 }
  0xa0   :  { %v135_v56 = vadd.f32 %v547_v54, %v134_v55 }
  0xa2   :  { %v200_v57 = vadd.f32 %v199_v50, %v135_v56 }
  0xa3   :  { %v211_v58 = vpop.f32.mrf.mxu1 }
  0xa4   :  { %v247_v59 = vmax.f32 %v200_v57, 0.0 }
  0xa5   :  { %v155_v60 = vpop.f32.mrf.mxu2 }
  0xa6   :  { %v263_v61 = vmin.f32 %v247_v59, 20.0  ;;  %v550_v62 = vpop.f32.mrf.mxu3  ;;  %v156_v17 = vadd.f32 %v547_v54, %v155_v60 }
  0xa7   :  { %v137_v63 = vpop.f32.mrf.mxu0 }
  0xa8   :  { %279 = vst.msk [vmem:[%s638_s3] sm:$0xff] %vm68_vm0, %v263_v61  ;;  %v138_v0 = vadd.f32 %v547_v54, %v137_v63 }
  0xaa   :  { %v203_v1 = vadd.f32 %v202_v51, %v138_v0 }
  0xab   :  { %v214_v2 = vpop.f32.mrf.mxu1 }
  0xac   :  { %v248_v3 = vmax.f32 %v203_v1, 0.0 }
  0xad   :  { %v158_v4 = vpop.f32.mrf.mxu2 }
  0xae   :  { %v264_v5 = vmin.f32 %v248_v3, 20.0  ;;  %v229_v6 = vpop.f32.mrf.mxu3  ;;  %v159_v31 = vadd.f32 %v547_v54, %v158_v4 }
  0xaf   :  { %v140_v7 = vpop.f32.mrf.mxu0 }
  0xb0   :  { %280 = vst.msk [vmem:[%s638_s3 + $0x8] sm:$0xff] %vm68_vm0, %v264_v5  ;;  %v141_v8 = vadd.f32 %v547_v54, %v140_v7  ;;  %v180_v5 = vadd.f32 %v547_v54, %v550_v62 }
  0xb2   :  { %v206_v9 = vadd.f32 %v205_v52, %v141_v8 }
  0xb3   :  { %v562_v10 = vpop.f32.mrf.mxu1 }
  0xb4   :  { %v249_v11 = vmax.f32 %v206_v9, 0.0 }
  0xb5   :  { %v161_v12 = vpop.f32.mrf.mxu2 }
  0xb6   :  { %v265_v13 = vmin.f32 %v249_v11, 20.0  ;;  %v232_v14 = vpop.f32.mrf.mxu3  ;;  %v162_v47 = vadd.f32 %v547_v54, %v161_v12 }
  0xb7   :  { %v143_v15 = vpop.f32.mrf.mxu0 }
  0xb8   :  { %281 = vst.msk [vmem:[%s638_s3 + $0x10] sm:$0xff] %vm68_vm0, %v265_v13  ;;  %v144_v16 = vadd.f32 %v547_v54, %v143_v15 }
  0xba   :  { %v209_v18 = vadd.f32 %v208_v53, %v144_v16 }
  0xbb   :  { %v220_v19 = vpop.f32.mrf.mxu1 }
  0xbc   :  { %v250_v20 = vmax.f32 %v209_v18, 0.0  ;;  %v221_v21 = vadd.f32 %v220_v19, %v156_v17 }
  0xbd   :  { %v164_v22 = vpop.f32.mrf.mxu2 }
  0xbe   :  { %v266_v23 = vmin.f32 %v250_v20, 20.0  ;;  %v254_v24 = vmax.f32 %v221_v21, 0.0  ;;  %v165_v25 = vadd.f32 %v547_v54, %v164_v22  ;;  %v235_v26 = vpop.f32.mrf.mxu3 }
  0xbf   :  { %v146_v27 = vpop.f32.mrf.mxu0 }
  0xc0   :  { %282 = vst.msk [vmem:[%s638_s3 + $0x18] sm:$0xff] %vm68_vm0, %v266_v23  ;;  %v270_v28 = vmin.f32 %v254_v24, 20.0  ;;  %v230_v29 = vadd.f32 %v229_v6, %v165_v25  ;;  %v147_v30 = vadd.f32 %v547_v54, %v146_v27 }
  0xc2   :  { %286 = vst.msk [vmem:[%s638_s3 + $0x38] sm:$0xff] %vm68_vm0, %v270_v28  ;;  %v257_v32 = vmax.f32 %v230_v29, 0.0  ;;  %v212_v33 = vadd.f32 %v211_v58, %v147_v30 }
  0xc3   :  { %v223_v34 = vpop.f32.mrf.mxu1 }
  0xc4   :  { %v273_v35 = vmin.f32 %v257_v32, 20.0  ;;  %v251_v36 = vmax.f32 %v212_v33, 0.0  ;;  %v224_v37 = vadd.f32 %v223_v34, %v159_v31 }
  0xc5   :  { %v167_v38 = vpop.f32.mrf.mxu2 }
  0xc6   :  { %289 = vst.msk [vmem:[%s638_s3 + $0x50] sm:$0xff] %vm68_vm0, %v273_v35  ;;  %v267_v39 = vmin.f32 %v251_v36, 20.0  ;;  %v255_v40 = vmax.f32 %v224_v37, 0.0  ;;  %v168_v41 = vadd.f32 %v547_v54, %v167_v38  ;;  %v238_v42 = vpop.f32.mrf.mxu3 }
  0xc7   :  { %v149_v43 = vpop.f32.mrf.mxu0 }
  0xc8   :  { %283 = vst.msk [vmem:[%s638_s3 + $0x20] sm:$0xff] %vm68_vm0, %v267_v39  ;;  %v271_v44 = vmin.f32 %v255_v40, 20.0  ;;  %v233_v45 = vadd.f32 %v232_v14, %v168_v41  ;;  %v150_v46 = vadd.f32 %v547_v54, %v149_v43 }
  0xca   :  { %287 = vst.msk [vmem:[%s638_s3 + $0x40] sm:$0xff] %vm68_vm0, %v271_v44  ;;  %v258_v48 = vmax.f32 %v233_v45, 0.0  ;;  %v215_v49 = vadd.f32 %v214_v2, %v150_v46 }
  0xcb   :  { %v226_v50 = vpop.f32.mrf.mxu1 }
  0xcc   :  { %v274_v51 = vmin.f32 %v258_v48, 20.0  ;;  %v252_v52 = vmax.f32 %v215_v49, 0.0  ;;  %v227_v53 = vadd.f32 %v226_v50, %v162_v47 }
  0xcd   :  { %v170_v55 = vpop.f32.mrf.mxu2 }
  0xce   :  { %290 = vst.msk [vmem:[%s638_s3 + $0x58] sm:$0xff] %vm68_vm0, %v274_v51  ;;  %v268_v56 = vmin.f32 %v252_v52, 20.0  ;;  %v256_v57 = vmax.f32 %v227_v53, 0.0  ;;  %v171_v58 = vadd.f32 %v547_v54, %v170_v55  ;;  %v241_v59 = vpop.f32.mrf.mxu3 }
  0xcf   :  { %v152_v60 = vpop.f32.mrf.mxu0 }
  0xd0   :  { %284 = vst.msk [vmem:[%s638_s3 + $0x28] sm:$0xff] %vm68_vm0, %v268_v56  ;;  %v272_v61 = vmin.f32 %v256_v57, 20.0  ;;  %v236_v63 = vadd.f32 %v235_v26, %v171_v58  ;;  %v153_v0 = vadd.f32 %v547_v54, %v152_v60 }
  0xd2   :  { %288 = vst.msk [vmem:[%s638_s3 + $0x48] sm:$0xff] %vm68_vm0, %v272_v61  ;;  %v259_v1 = vmax.f32 %v236_v63, 0.0  ;;  %v218_v2 = vadd.f32 %v562_v10, %v153_v0 }
  0xd4   :  { %v275_v3 = vmin.f32 %v259_v1, 20.0  ;;  %v253_v4 = vmax.f32 %v218_v2, 0.0 }
  0xd5   :  { %v173_v6 = vpop.f32.mrf.mxu2 }
  0xd6   :  { %291 = vst.msk [vmem:[%s638_s3 + $0x60] sm:$0xff] %vm68_vm0, %v275_v3  ;;  %v269_v7 = vmin.f32 %v253_v4, 20.0  ;;  %v174_v8 = vadd.f32 %v547_v54, %v173_v6  ;;  %v244_v9 = vpop.f32.mrf.mxu3 }
  0xd7   :  { %v245_v11 = vadd.f32 %v244_v9, %v180_v5 }
  0xd8   :  { %285 = vst.msk [vmem:[%s638_s3 + $0x30] sm:$0xff] %vm68_vm0, %v269_v7  ;;  %v239_v10 = vadd.f32 %v238_v42, %v174_v8 }
  0xd9   :  { %v262_v12 = vmax.f32 %v245_v11, 0.0 }
  0xda   :  { %v260_v13 = vmax.f32 %v239_v10, 0.0 }
  0xdb   :  { %v278_v62 = vmin.f32 %v262_v12, 20.0 }
  0xdc   :  { %v276_v14 = vmin.f32 %v260_v13, 20.0 }
  0xdd   :  { %294 = vst.msk [vmem:[%s638_s3 + $0x78] sm:$0xff] %vm68_vm0, %v278_v62  ;;  %v176_v15 = vpop.f32.mrf.mxu2 }
  0xde   :  { %292 = vst.msk [vmem:[%s638_s3 + $0x68] sm:$0xff] %vm68_vm0, %v276_v14  ;;  %v177_v16 = vadd.f32 %v547_v54, %v176_v15 }
  0xe0   :  { %v242_v17 = vadd.f32 %v241_v59, %v177_v16 }
  0xe2   :  { %v261_v18 = vmax.f32 %v242_v17, 0.0 }
  0xe4   :  { %v277_v19 = vmin.f32 %v261_v18, 20.0 }
  0xe6   :  { %293 = vst.msk [vmem:[%s638_s3 + $0x70] sm:$0xff] %vm68_vm0, %v277_v19 }

// kernel: _speech_transformer_forward.11
= control target key start
LH: loop header
LB: loop body
LE: loop exit
PB: predicated region body
PF: predicated region fallthrough
CT: control target
= control target key end

     0   :  { %vm33_vm0 = vcmask 523264   ;;  %vm59_vm1 = vcmask 261120   ;;  %v109_v13 = vmov 32.0   ;;  %s185_s1 = inlined_call_operand.vmem [shape: f32[64,32], index: 1, kind: input, shape index: {}]   ;;  %s186_s2 = inlined_call_operand.vmem [shape: f32[1,32], index: 2, kind: input, shape index: {}]   ;;  %s187_s0 = inlined_call_operand.vmem [shape: f32[8,64], index: 0, kind: input, shape index: {}]   ;;  %s188_s3 = inlined_call_operand.vmem [shape: f32[2,32], index: 3, kind: input, shape index: {}]   ;;  %s189_s4 = inlined_call_operand.vmem [shape: f32[8,32], index: 4, kind: input, shape index: {}]   ;;  %s190_s5 = inlined_call_operand.vmem [shape: f32[8,32], index: 5, kind: output, shape index: {}]  }
   0x1   :  { %v28_v0 = vld [vmem:[%s185_s1 + $0x38] sm:$0xff]  ;;  %v27_v1 = vld [vmem:[%s185_s1 + $0x30] sm:$0xff]  ;;  %v26_v2 = vld [vmem:[%s185_s1 + $0x28] sm:$0xff]  ;;  %105 = vrcp.f32 %v109_v13 }
   0x2   :  { %45 = vmatpush.msra.mxu0 %v28_v0  ;;  %v25_v3 = vld [vmem:[%s185_s1 + $0x20] sm:$0xff]  ;;  %v24_v4 = vld [vmem:[%s185_s1 + $0x18] sm:$0xff]  ;;  %v23_v5 = vld [vmem:[%s185_s1 + $0x10] sm:$0xff] }
   0x3   :  { %v22_v6 = vld [vmem:[%s185_s1 + $0x8] sm:$0xff]  ;;  %v21_v7 = vld [vmem:[%s185_s1] sm:$0xff] }
   0x4   :  { %46 = vmatpush.msra.mxu0 %v27_v1  ;;  %v20_v8 = vld [vmem:[%s187_s0] sm:$0xff] }
   0x5   :  { %v102_v9 = vld [vmem:[%s186_s2] ss:$0 sm:$0xff]  ;;  %v104_v36 = vld [vmem:[%s188_s3 + $0x1] ss:$0 sm:$0xff] }
   0x6   :  { %47 = vmatpush.msra.mxu0 %v26_v2  ;;  %v103_v34 = vld [vmem:[%s188_s3] ss:$0 sm:$0xff] }
   0x7   :  { %v106_v14 = vpop.eup %105  ;;  %v93_v39 = vld [vmem:[%s189_s4] sm:$0xff] }
   0x8   :  { %48 = vmatpush.msra.mxu0 %v25_v3  ;;  %v64_v15 = vmul.f32 32.0, %v106_v14  ;;  %vm68_vm2 = vweird.f32 %v106_v14 }
   0xa   :  { %49 = vmatpush.msra.mxu0 %v24_v4  ;;  %v65_v16 = vsub.f32 1.0, %v64_v15 }
   0xc   :  { %50 = vmatpush.msra.mxu0 %v23_v5  ;;  %v66_v17 = vmul.f32 %v106_v14, %v65_v16 }
   0xe   :  { %51 = vmatpush.msra.mxu0 %v22_v6  ;;  %v67_v18 = vadd.f32 %v106_v14, %v66_v17 }
  0x10   :  { %52 = vmatpush.msra.mxu0 %v21_v7  ;;  %v69_v19 = vsel %vm68_vm2, %v106_v14, %v67_v18 }
  0x11   :  { %100 = vmatmul.msk.f32.vlgmr.msra.gmra.mxu0 %vm33_vm0, %v20_v8 }
  0x8e   :  { %v54_v10 = vpop.f32.mrf.mxu0 }
  0x8f   :  { %v55_v11 = vadd.f32 %v102_v9, %v54_v10 }
  0x91   :  { %v60_v12 = vsel %vm59_vm1, %v55_v11, 0.0 }
  0x92   :  { %61 = vadd.xlane.f32.xlu0 %v60_v12 }
 0x105   :  { %v62_v20 = vpop.xlane.xlu0 %61 }
 0x106   :  { %v70_v21 = vmul.f32 %v69_v19, %v62_v20 }
 0x108   :  { %v71_v22 = vsub.f32 %v55_v11, %v70_v21 }
 0x10a   :  { %v72_v23 = vmul.f32 %v71_v22, %v71_v22 }
 0x10c   :  { %v73_v24 = vsel %vm59_vm1, %v72_v23, 0.0 }
 0x10d   :  { %74 = vadd.xlane.f32.xlu0 %v73_v24 }
 0x180   :  { %v75_v25 = vpop.xlane.xlu0 %74 }
 0x181   :  { %v76_v26 = vmul.f32 %v75_v25, %v69_v19 }
 0x183   :  { %v77_v27 = vadd.f32 1e-05, %v76_v26 }
 0x185   :  { %107 = vrsqrt.f32 %v77_v27  ;;  %vm84_vm4 = vweird.f32 %v77_v27 }
 0x18b   :  { %v108_v28 = vpop.eup %107 }
 0x18c   :  { %v79_v29 = vmul.f32 %v108_v28, %v77_v27  ;;  %vm85_vm3 = vweird.f32 %v108_v28 }
 0x18d   :  { %vm86_vm5 = vmor %vm84_vm4, %vm85_vm3 }
 0x18e   :  { %v80_v30 = vmul.f32 %v108_v28, %v79_v29 }
 0x190   :  { %v81_v31 = vmul.f32 0.5, %v80_v30 }
 0x192   :  { %v82_v32 = vsub.f32 1.5, %v81_v31 }
 0x194   :  { %v83_v33 = vmul.f32 %v108_v28, %v82_v32 }
 0x196   :  { %v87_v35 = vsel %vm86_vm5, %v108_v28, %v83_v33 }
 0x197   :  { %v88_v37 = vmul.f32 %v87_v35, %v71_v22 }
 0x199   :  { %v90_v38 = vmul.f32 %v103_v34, %v88_v37 }
 0x19b   :  { %v92_v40 = vadd.f32 %v104_v36, %v90_v38 }
 0x19d   :  { %v94_v41 = vadd.f32 %v93_v39, %v92_v40 }
 0x19f   :  { %95 = vst.msk [vmem:[%s190_s5] sm:$0xff] %vm59_vm1, %v94_v41 }

// kernel: closed_call.57
= control target key start
LH: loop header
LB: loop body
LE: loop exit
PB: predicated region body
PF: predicated region fallthrough
CT: control target
= control target key end

     0   :  { %vm18_vm0 = vcmask 261120   ;;  %v163_v4 = vmov 32.0   ;;  %vm109_vm8 = vcmask 80896   ;;  %s226_s0 = inlined_call_operand.vmem [shape: f32[16,32], index: 0, kind: input, shape index: {}]   ;;  %s227_s1 = inlined_call_operand.vmem [shape: f32[2,32], index: 1, kind: input, shape index: {}]   ;;  %s228_s2 = inlined_call_operand.vmem [shape: f32[32,10], index: 2, kind: input, shape index: {}]   ;;  %s229_s3 = inlined_call_operand.vmem [shape: f32[16,10], index: 3, kind: output, shape index: {}]  }
   0x1   :  { %v14_v0 = vld [vmem:[%s226_s0] sm:$0xff]  ;;  %v15_v2 = vld [vmem:[%s226_s0 + $0x8] sm:$0xff]  ;;  %149 = vrcp.f32 %v163_v4  ;;  %v79_v21 = vld [vmem:[%s228_s2 + $0x18] sm:$0xff] }
   0x2   :  { %v19_v1 = vsel %vm18_vm0, %v14_v0, 0.0  ;;  %v22_v3 = vsel %vm18_vm0, %v15_v2, 0.0  ;;  %98 = vmatpush.msra.mxu0 %v79_v21  ;;  %142 = vmatpush.msra.mxu1 %v79_v21  ;;  %v78_v22 = vld [vmem:[%s228_s2 + $0x10] sm:$0xff]  ;;  %v77_v23 = vld [vmem:[%s228_s2 + $0x8] sm:$0xff]  ;;  %v76_v24 = vld [vmem:[%s228_s2] sm:$0xff] }
   0x3   :  { %20 = vadd.xlane.f32.xlu0 %v19_v1  ;;  %v147_v39 = vld [vmem:[%s227_s1] ss:$0 sm:$0xff]  ;;  %v148_v43 = vld [vmem:[%s227_s1 + $0x1] ss:$0 sm:$0xff] }
   0x4   :  { %99 = vmatpush.msra.mxu0 %v78_v22  ;;  %143 = vmatpush.msra.mxu1 %v78_v22 }
   0x6   :  { %100 = vmatpush.msra.mxu0 %v77_v23  ;;  %144 = vmatpush.msra.mxu1 %v77_v23 }
   0x7   :  { %v150_v5 = vpop.eup %149 }
   0x8   :  { %v26_v6 = vmul.f32 32.0, %v150_v5  ;;  %vm30_vm1 = vweird.f32 %v150_v5  ;;  %101 = vmatpush.msra.mxu0 %v76_v24  ;;  %145 = vmatpush.msra.mxu1 %v76_v24 }
   0xa   :  { %v27_v7 = vsub.f32 1.0, %v26_v6 }
   0xb   :  { %23 = vadd.xlane.f32.xlu0 %v22_v3 }
   0xc   :  { %v28_v8 = vmul.f32 %v150_v5, %v27_v7 }
   0xe   :  { %v29_v9 = vadd.f32 %v150_v5, %v28_v8 }
  0x10   :  { %v31_v10 = vsel %vm30_vm1, %v150_v5, %v29_v9 }
  0x76   :  { %v21_v11 = vpop.xlane.xlu0 %20 }
  0x77   :  { %v32_v12 = vmul.f32 %v31_v10, %v21_v11 }
  0x79   :  { %v34_v13 = vsub.f32 %v14_v0, %v32_v12 }
  0x7b   :  { %v36_v14 = vmul.f32 %v34_v13, %v34_v13 }
  0x7d   :  { %v38_v15 = vsel %vm18_vm0, %v36_v14, 0.0 }
  0x7e   :  { %39 = vadd.xlane.f32.xlu1 %v38_v15  ;;  %v24_v16 = vpop.xlane.xlu0 %23 }
  0x7f   :  { %v33_v17 = vmul.f32 %v31_v10, %v24_v16 }
  0x81   :  { %v35_v18 = vsub.f32 %v15_v2, %v33_v17 }
  0x83   :  { %v37_v19 = vmul.f32 %v35_v18, %v35_v18 }
  0x85   :  { %v41_v20 = vsel %vm18_vm0, %v37_v19, 0.0 }
  0x86   :  { %42 = vadd.xlane.f32.xlu1 %v41_v20 }
  0xf1   :  { %v40_v25 = vpop.xlane.xlu1 %39 }
  0xf2   :  { %v44_v26 = vmul.f32 %v40_v25, %v31_v10 }
  0xf4   :  { %v46_v27 = vadd.f32 1e-05, %v44_v26 }
  0xf6   :  { %151 = vrsqrt.f32 %v46_v27  ;;  %vm54_vm3 = vweird.f32 %v46_v27 }
  0xf9   :  { %v43_v28 = vpop.xlane.xlu1 %42 }
  0xfa   :  { %v45_v29 = vmul.f32 %v43_v28, %v31_v10 }
  0xfc   :  { %v152_v30 = vpop.eup %151  ;;  %v47_v31 = vadd.f32 1e-05, %v45_v29 }
  0xfd   :  { %v49_v32 = vmul.f32 %v152_v30, %v46_v27  ;;  %vm55_vm2 = vweird.f32 %v152_v30 }
  0xfe   :  { %153 = vrsqrt.f32 %v47_v31  ;;  %vm56_vm4 = vmor %vm54_vm3, %vm55_vm2  ;;  %vm64_vm6 = vweird.f32 %v47_v31 }
  0xff   :  { %v50_v33 = vmul.f32 %v152_v30, %v49_v32 }
 0x101   :  { %v51_v34 = vmul.f32 0.5, %v50_v33 }
 0x103   :  { %v52_v35 = vsub.f32 1.5, %v51_v34 }
 0x104   :  { %v154_v36 = vpop.eup %153 }
 0x105   :  { %v53_v37 = vmul.f32 %v152_v30, %v52_v35  ;;  %v59_v38 = vmul.f32 %v154_v36, %v47_v31  ;;  %vm65_vm5 = vweird.f32 %v154_v36 }
 0x106   :  { %vm66_vm7 = vmor %vm64_vm6, %vm65_vm5 }
 0x107   :  { %v57_v40 = vsel %vm56_vm4, %v152_v30, %v53_v37  ;;  %v60_v41 = vmul.f32 %v154_v36, %v59_v38 }
 0x108   :  { %v68_v42 = vmul.f32 %v57_v40, %v34_v13 }
 0x109   :  { %v61_v44 = vmul.f32 0.5, %v60_v41 }
 0x10a   :  { %v71_v45 = vmul.f32 %v147_v39, %v68_v42 }
 0x10b   :  { %v62_v46 = vsub.f32 1.5, %v61_v44 }
 0x10c   :  { %v74_v47 = vadd.f32 %v148_v43, %v71_v45 }
 0x10d   :  { %v63_v48 = vmul.f32 %v154_v36, %v62_v46 }
 0x10e   :  { %140 = vmatmul.msk.f32.vlgmr.msra.gmra.mxu0 %vm18_vm0, %v74_v47 }
 0x10f   :  { %v67_v49 = vsel %vm66_vm7, %v154_v36, %v63_v48 }
 0x110   :  { %v69_v50 = vmul.f32 %v67_v49, %v35_v18 }
 0x112   :  { %v72_v51 = vmul.f32 %v147_v39, %v69_v50 }
 0x114   :  { %v75_v52 = vadd.f32 %v148_v43, %v72_v51 }
 0x116   :  { %141 = vmatmul.msk.f32.vlgmr.msra.gmra.mxu1 %vm18_vm0, %v75_v52 }
 0x18b   :  { %v103_v53 = vpop.f32.mrf.mxu0 }
 0x18c   :  { %v110_v54 = vsel %vm109_vm8, %v103_v53, -inf }
 0x18d   :  { %111 = vmax.xlane.f32.xlu2 %v110_v54 }
 0x193   :  { %v106_v55 = vpop.f32.mrf.mxu1 }
 0x194   :  { %v113_v56 = vsel %vm109_vm8, %v106_v55, -inf }
 0x195   :  { %114 = vmax.xlane.f32.xlu2 %v113_v56 }
 0x200   :  { %v112_v57 = vpop.xlane.xlu2 %111 }
 0x201   :  { %v116_v58 = vsub.f32 %v103_v53, %v112_v57 }
 0x203   :  { %v118_v59 = vmul.f32 1.442695, %v116_v58 }
 0x205   :  { %155 = vpow2.f32 %v118_v59 }
 0x208   :  { %v115_v60 = vpop.xlane.xlu2 %114 }
 0x209   :  { %v117_v61 = vsub.f32 %v106_v55, %v115_v60 }
 0x20b   :  { %v156_v62 = vpop.eup %155  ;;  %v120_v63 = vmul.f32 1.442695, %v117_v61 }
 0x20c   :  { %v122_v0 = vsel %vm109_vm8, %v156_v62, 0.0 }
 0x20d   :  { %157 = vpow2.f32 %v120_v63  ;;  %123 = vadd.xlane.f32.xlu0 %v122_v0 }
 0x213   :  { %v158_v1 = vpop.eup %157 }
 0x214   :  { %v125_v2 = vsel %vm109_vm8, %v158_v1, 0.0 }
 0x215   :  { %126 = vadd.xlane.f32.xlu1 %v125_v2 }
 0x280   :  { %v124_v3 = vpop.xlane.xlu0 %123 }
 0x281   :  { %159 = vlog2.f32 %v124_v3 }
 0x287   :  { %v160_v4 = vpop.eup %159 }
 0x288   :  { %v129_v5 = vmul.f32 0.6931472, %v160_v4  ;;  %v127_v6 = vpop.xlane.xlu1 %126 }
 0x289   :  { %161 = vlog2.f32 %v127_v6 }
 0x28a   :  { %v132_v7 = vsub.f32 %v116_v58, %v129_v5 }
 0x28c   :  { %134 = vst.msk [vmem:[%s229_s3] sm:$0xff] %vm109_vm8, %v132_v7 }
 0x28f   :  { %v162_v8 = vpop.eup %161 }
 0x290   :  { %v131_v9 = vmul.f32 0.6931472, %v162_v8 }
 0x292   :  { %v133_v10 = vsub.f32 %v117_v61, %v131_v9 }
 0x294   :  { %135 = vst.msk [vmem:[%s229_s3 + $0x8] sm:$0xff] %vm109_vm8, %v133_v10 }

// kernel: _speech_transformer_forward.12
= control target key start
LH: loop header
LB: loop body
LE: loop exit
PB: predicated region body
PF: predicated region fallthrough
CT: control target
= control target key end

     0   :  { %s1021_s20 = smov [#allocation3]   ;;  %s1286_s0 = inlined_call_operand.vmem [shape: s32[2], index: 0, kind: input, shape index: {}]   ;;  %s1287_s1 = inlined_call_operand.vmem [shape: f32[2,4,32], index: 1, kind: input, shape index: {}]   ;;  %s1288_s2 = inlined_call_operand.vmem [shape: f32[4,32], index: 2, kind: input, shape index: {}]   ;;  %s1289_s3 = inlined_call_operand.vmem [shape: f32[32,96], index: 3, kind: input, shape index: {}]   ;;  %s1290_s4 = inlined_call_operand.vmem [shape: f32[1,96], index: 4, kind: input, shape index: {}]   ;;  %s1291_s5 = inlined_call_operand.vmem [shape: f32[32,32], index: 5, kind: input, shape index: {}]   ;;  %s1292_s6 = inlined_call_operand.vmem [shape: f32[1,32], index: 6, kind: input, shape index: {}]   ;;  %s1293_s7 = inlined_call_operand.vmem [shape: f32[32,64], index: 7, kind: input, shape index: {}]   ;;  %s1294_s8 = inlined_call_operand.vmem [shape: f32[1,64], index: 8, kind: input, shape index: {}]   ;;  %s1295_s9 = inlined_call_operand.vmem [shape: f32[64,32], index: 9, kind: input, shape index: {}]   ;;  %s1296_s10 = inlined_call_operand.vmem [shape: f32[1,32], index: 10, kind: input, shape index: {}]   ;;  %s1297_s11 = inlined_call_operand.vmem [shape: f32[2,4,32], index: 11, kind: output, shape index: {}]  }
   0x1   :  { %s17_s19 = sshll.u32 %s1286_s0, 4  ;;  %s18_s19 = int_to_ptr.vmem [resolvable:$true] %s17_s19 }
   0x2   :  { %20 = dma.vmem_to_smem %s18_s19, 16, %s1021_s20, [#allocation2] }
   0x3   :  { %1015 = dma.done.wait [#allocation2], 16 }
   0x4   :  { %1016 = vsyncadd [#allocation2], 4294967280 }
   0x5   :  { %23 = sfence }
   0x6   :  { %s1101_s21 = smov 0  }
   0x7 LB: > { %s1107_s22 = sadd.s32 4294967295, %s1019_s21   ;;  %p919_p0 = scmp.ge.s32.totalorder %s1019_s21, 1  ;;  %s1019_s21 = sphi %s1101_s21, %s29_s21  }
   0x8   : > { %p320_p1 = scmp.lt.s32.totalorder %s1019_s21, 3 }
   0xa   : > { %p321_p2 = pnand %p919_p0, %p320_p1 }
   0xb   : > { %p356_p3 = scmp.lt.s32.totalorder (!%p321_p2), %s1107_s22, 1  ;;  %s1023_s25 = smov (!%p321_p2), 64  }
   0xc   : > { %324 = sbr.rel (%p321_p2) target bundleno = 2250 (0x8ca), region = 60  ;;  %s1025_s27 = smov (!%p321_p2), 96  }
   0xd   : > { %s1026_s28 = smov (!%p321_p2), 72   ;;  %s1027_s29 = smov (!%p321_p2), 88  }
   0xe   : > { %s365_s30 = sld [smem:[#allocation3 + %s1107_s22]] (!%p321_p2)  ;;  %s1030_s12 = smov (!%p321_p2), 80  }
   0xf   : > { %s1031_s13 = smov (!%p321_p2), 104   ;;  %s1032_s14 = smov (!%p321_p2), 112  }
  0x10   : > { %s1033_s15 = smov (!%p321_p2), 48   ;;  %s1034_s16 = smov (!%p321_p2), 8  }
  0x11   : > { %s1113_s0 = scalar_select %p356_p3, %s1107_s22, 1  ;;  %vm373_vm0 = vcmask 257024   ;;  %v1022_v2 = vmov 32.0   ;;  %v410_v14 = vld [vmem:[%s1289_s3 + $0x18] sm:$0xff]  ;;  %v409_v15 = vld [vmem:[%s1289_s3 + $0x10] sm:$0xff]  ;;  %v408_v16 = vld [vmem:[%s1289_s3 + $0x8] sm:$0xff]  ;;  %v366_v40 = vlaneseq }
  0x12   : > { %977 = vrcp.f32 %v1022_v2  ;;  %431 = vmatpush.msra.mxu0 %v410_v14  ;;  %v407_v17 = vld [vmem:[%s1289_s3] sm:$0xff]  ;;  %vm415_vm5 = vcmask 261120   ;;  %vm487_vm6 = vcmask 1043456   ;;  %vm442_vm7 = vcmask 64512   ;;  %s1029_s22 = smov 56   ;;  %s1035_s17 = smov 40  }
  0x13   : > { %s920_s23 = sshll.u32 %s1113_s0, 2  ;;  %v969_v27 = vld [vmem:[%s1288_s2] ss:$0 sm:$0xff]  ;;  %v970_v30 = vld [vmem:[%s1288_s2 + $0x1] ss:$0 sm:$0xff]  ;;  %v367_v41 = vand.u32 127, %v366_v40 }
  0x14   : > { %s359_s26 = scalar_lea.vmem %s1287_s1, %s920_s23  ;;  %432 = vmatpush.msra.mxu0 %v409_v15  ;;  %v971_v33 = vld [vmem:[%s1290_s4] ss:$0 sm:$0xff]  ;;  %v368_v42 = vstv %s365_s30  ;;  %v1028_v44 = vmov -1e+09   ;;  %vm469_vm9 = vcmask 27648   ;;  %vm483_vm10 = vcmask 31744  }
  0x15   : > { %v1121_v0 = vld [vmem:[%s359_s26] sm:$0xf]  ;;  %s1024_s26 = smov 120   ;;  %vm369_vm8 = vcmp.lt.s32.totalorder %v367_v41, %v368_v42  ;;  %s1036_s18 = smov 16   ;;  %vm727_vm11 = vcmask 130048   ;;  %vm729_vm12 = vcmask 195584  }
  0x16   : > { %v374_v1 = vsel %vm373_vm0, %v1121_v0, 0.0  ;;  %433 = vmatpush.msra.mxu0 %v408_v16  ;;  %v1167_v45 = vsel %vm369_vm8, 0.0, %v1028_v44  ;;  %s1037_s19 = smov 24   ;;  %v732_v44 = vld [vmem:[%s1291_s5 + $0x8] sm:$0xff] }
  0x17   : > { %375 = vadd.xlane.f32.xlu0 %v374_v1 }
  0x18   : > { %v978_v3 = vpop.eup %977  ;;  %434 = vmatpush.msra.mxu0 %v407_v17 }
  0x19   : > { %v378_v4 = vmul.f32 32.0, %v978_v3  ;;  %vm382_vm1 = vweird.f32 %v978_v3 }
  0x1b   : > { %v379_v5 = vsub.f32 1.0, %v378_v4 }
  0x1d   : > { %v380_v6 = vmul.f32 %v978_v3, %v379_v5 }
  0x1f   : > { %v381_v7 = vadd.f32 %v978_v3, %v380_v6 }
  0x21   : > { %v1125_v8 = vsel %vm382_vm1, %v978_v3, %v381_v7  ;;  %vm836_vm1 = vcmask 523264  }
  0x8a   : > { %v376_v9 = vpop.xlane.xlu0 %375 }
  0x8b   : > { %v384_v10 = vmul.f32 %v1125_v8, %v376_v9 }
  0x8d   : > { %v385_v11 = vsub.f32 %v1121_v0, %v384_v10 }
  0x8f   : > { %v386_v12 = vmul.f32 %v385_v11, %v385_v11 }
  0x91   : > { %v387_v13 = vsel %vm373_vm0, %v386_v12, 0.0 }
  0x92   : > { %388 = vadd.xlane.f32.xlu0 %v387_v13 }
 0x105   : > { %v389_v18 = vpop.xlane.xlu0 %388 }
 0x106   : > { %v390_v19 = vmul.f32 %v389_v18, %v1125_v8 }
 0x108   : > { %v391_v20 = vadd.f32 1e-05, %v390_v19 }
 0x10a   : > { %979 = vrsqrt.f32 %v391_v20  ;;  %vm398_vm3 = vweird.f32 %v391_v20 }
 0x110   : > { %v980_v21 = vpop.eup %979 }
 0x111   : > { %v393_v22 = vmul.f32 %v980_v21, %v391_v20  ;;  %vm399_vm2 = vweird.f32 %v980_v21 }
 0x112   : > { %vm400_vm4 = vmor %vm398_vm3, %vm399_vm2 }
 0x113   : > { %v394_v23 = vmul.f32 %v980_v21, %v393_v22 }
 0x115   : > { %v395_v24 = vmul.f32 0.5, %v394_v23 }
 0x117   : > { %v396_v25 = vsub.f32 1.5, %v395_v24 }
 0x119   : > { %v397_v26 = vmul.f32 %v980_v21, %v396_v25 }
 0x11b   : > { %v401_v28 = vsel %vm400_vm4, %v980_v21, %v397_v26 }
 0x11c   : > { %v402_v29 = vmul.f32 %v401_v28, %v385_v11 }
 0x11e   : > { %v404_v31 = vmul.f32 %v969_v27, %v402_v29 }
 0x120   : > { %v406_v32 = vadd.f32 %v970_v30, %v404_v31 }
 0x122   : > { %922 = vmatmul.msk.f32.vlgmr.msra.gmra.mxu0 %vm415_vm5, %v406_v32 }
 0x19f   : > { %v436_v34 = vpop.f32.mrf.mxu0 }
 0x1a0   : > { %v1153_v35 = vadd.f32 %v971_v33, %v436_v34 }
 0x1a2   : > { %481 = vrot.lane.b32.xlu0 %v1153_v35, %s1023_s25  ;;  %510 = vrot.lane.b32.xlu2 %v1153_v35, %s1024_s26 }
 0x1a3   : > { %440 = vrot.lane.b32.xlu1 %v1153_v35, %s1025_s27 }
 0x1aa   : > { %648 = vrot.lane.b32.xlu0 %v1153_v35, %s1026_s28 }
 0x1ab   : > { %512 = vrot.lane.b32.xlu1 %v1153_v35, %s1027_s29 }
 0x1fc   : > { %v511_v39 = vpop.permute.xlu2 %510 }
 0x214   : > { %v482_v36 = vpop.permute.xlu0 %481 }
 0x215   : > { %v441_v37 = vpop.permute.xlu1 %440  ;;  %925 = vmatpush.msk.msra.mxu2 %vm487_vm6, %v482_v36 }
 0x216   : > { %923 = vmatpush.xpose.msk.msra.mxu1 %vm442_vm7, %v441_v37 }
 0x219   : > { %924 = vmatmul.msk.f32.vlgmr.msra.gmra.mxu1 %vm442_vm7, %v1153_v35 }
 0x21c   : > { %v649_v56 = vpop.permute.xlu0 %648 }
 0x21d   : > { %v513_v38 = vpop.permute.xlu1 %512 }
 0x21e   : > { %927 = vmatpush.xpose.msk.msra.mxu3 %vm442_vm7, %v513_v38 }
 0x221   : > { %928 = vmatmul.msk.f32.vlgmr.msra.gmra.mxu3 %vm442_vm7, %v511_v39 }
 0x296   : > { %v464_v43 = vpop.f32.mrf.mxu1 }
 0x297   : > { %v467_v46 = vmul.f32 0.35355338, %v464_v43  ;;  %v733_v43 = vld [vmem:[%s1291_s5 + $0x10] sm:$0xff] }
 0x299   : > { %v468_v47 = vadd.f32 %v467_v46, %v1167_v45 }
 0x29b   : > { %v470_v48 = vsel %vm469_vm9, %v468_v47, -inf }
 0x29c   : > { %471 = vmax.xlane.f32.xlu2 %v470_v48 }
 0x2a4   : > { %v535_v49 = vpop.f32.mrf.mxu3 }
 0x2a5   : > { %v538_v50 = vmul.f32 0.35355338, %v535_v49 }
 0x2a7   : > { %v539_v51 = vadd.f32 %v538_v50, %v1167_v45 }
 0x2a9   : > { %v540_v52 = vsel %vm469_vm9, %v539_v51, -inf }
 0x2aa   : > { %541 = vmax.xlane.f32.xlu0 %v540_v52  ;;  %v972_v52 = vld [vmem:[%s1292_s6] ss:$0 sm:$0xff] }
 0x2b4   : > { %551 = vrot.lane.b32.xlu2 %v1153_v35, %s1029_s22 }
 0x2be   : > { %580 = vrot.lane.b32.xlu0 %v1153_v35, %s1030_s12 }
 0x30f   : > { %v472_v53 = vpop.xlane.xlu2 %471 }
 0x310   : > { %v473_v54 = vsub.f32 %v468_v47, %v472_v53 }
 0x312   : > { %v474_v55 = vmul.f32 1.442695, %v473_v54 }
 0x314   : > { %981 = vpow2.f32 %v474_v55 }
 0x317   : > { %v552_v57 = vpop.permute.xlu2 %551 }
 0x318   : > { %929 = vmatpush.msk.msrb.mxu2 %vm487_vm6, %v552_v57 }
 0x31a   : > { %v982_v58 = vpop.eup %981 }
 0x31b   : > { %v476_v59 = vsel %vm469_vm9, %v982_v58, 0.0 }
 0x31c   : > { %477 = vadd.xlane.f32.xlu1 %v476_v59 }
 0x31d   : > { %v542_v60 = vpop.xlane.xlu0 %541 }
 0x31e   : > { %v543_v61 = vsub.f32 %v539_v51, %v542_v60 }
 0x320   : > { %v544_v62 = vmul.f32 1.442695, %v543_v61 }
 0x322   : > { %983 = vpow2.f32 %v544_v62  ;;  %v795_v62 = vld [vmem:[%s1293_s7 + $0x18] sm:$0xff] }
 0x328   : > { %v984_v63 = vpop.eup %983 }
 0x329   : > { %v546_v1 = vsel %vm469_vm9, %v984_v63, 0.0 }
 0x32a   : > { %547 = vadd.xlane.f32.xlu0 %v546_v1  ;;  %v792_v1 = vld [vmem:[%s1293_s7] sm:$0xff] }
 0x330   : > { %v581_v2 = vpop.permute.xlu0 %580 }
 0x331   : > { %931 = vmatpush.xpose.msk.msrb.mxu1 %vm442_vm7, %v581_v2  ;;  %v831_v2 = vld [vmem:[%s1295_s9 + $0x38] sm:$0xff] }
 0x332   : > { %848 = vmatpush.msrb.mxu0 %v831_v2 }
 0x335   : > { %646 = vrot.lane.b32.xlu1 %v1153_v35, %s1031_s13  ;;  %s363_s13 = scalar_lea.vmem %s1297_s11, %s920_s23 }
 0x33e   : > { %578 = vrot.lane.b32.xlu0 %v1153_v35, %s1032_s14 }
 0x38f   : > { %v478_v3 = vpop.xlane.xlu1 %477 }
 0x390   : > { %985 = vrcp.f32 %v478_v3  ;;  %v830_v3 = vld [vmem:[%s1295_s9 + $0x30] sm:$0xff] }
 0x391   : > { %849 = vmatpush.msrb.mxu0 %v830_v3 }
 0x396   : > { %v986_v4 = vpop.eup %985 }
 0x397   : > { %v480_v5 = vmul.f32 %v986_v4, %v982_v58  ;;  %v829_v4 = vld [vmem:[%s1295_s9 + $0x28] sm:$0xff] }
 0x398   : > { %850 = vmatpush.msrb.mxu0 %v829_v4 }
 0x399   : > { %926 = vmatmul.msk.f32.vlgmr.msra.gmra.mxu2 %vm483_vm10, %v480_v5 }
 0x39a   : > { %935 = vmatpush.xpose.msk.msra.mxu2 %vm442_vm7, %v649_v56 }
 0x39d   : > { %v548_v6 = vpop.xlane.xlu0 %547 }
 0x39e   : > { %987 = vrcp.f32 %v548_v6 }
 0x3a4   : > { %v988_v7 = vpop.eup %987 }
 0x3a5   : > { %v550_v9 = vmul.f32 %v988_v7, %v984_v63  ;;  %v793_v63 = vld [vmem:[%s1293_s7 + $0x8] sm:$0xff]  ;;  %v828_v7 = vld [vmem:[%s1295_s9 + $0x20] sm:$0xff] }
 0x3a6   : > { %851 = vmatpush.msrb.mxu0 %v828_v7 }
 0x3a7   : > { %930 = vmatmul.msk.f32.vlgmr.msrb.gmra.mxu2 %vm483_vm10, %v550_v9  ;;  %v647_v10 = vpop.permute.xlu1 %646 }
 0x3af   : > { %936 = vmatmul.msk.f32.vlgmr.msra.gmra.mxu2 %vm442_vm7, %v647_v10  ;;  %v827_v10 = vld [vmem:[%s1295_s9 + $0x18] sm:$0xff] }
 0x3b0   : > { %v579_v11 = vpop.permute.xlu0 %578  ;;  %852 = vmatpush.msrb.mxu0 %v827_v10 }
 0x3b1   : > { %932 = vmatmul.msk.f32.vlgmr.msrb.gmra.mxu1 %vm442_vm7, %v579_v11 }
 0x41c   : > { %v1186_v12 = vpop.f32.mrf.mxu2 }
 0x42a   : > { %v575_v13 = vpop.f32.mrf.mxu2 }
 0x42e   : > { %v603_v14 = vpop.f32.mrf.mxu1 }
 0x42f   : > { %v606_v15 = vmul.f32 0.35355338, %v603_v14 }
 0x431   : > { %v607_v16 = vadd.f32 %v606_v15, %v1167_v45 }
 0x432   : > { %v671_v17 = vpop.f32.mrf.mxu2 }
 0x433   : > { %v674_v18 = vmul.f32 0.35355338, %v671_v17  ;;  %v608_v19 = vsel %vm469_vm9, %v607_v16, -inf }
 0x434   : > { %609 = vmax.xlane.f32.xlu2 %v608_v19  ;;  %v974_v19 = vld [vmem:[%s1288_s2 + $0x3] ss:$0 sm:$0xff] }
 0x435   : > { %v675_v20 = vadd.f32 %v674_v18, %v1167_v45  ;;  %v731_v45 = vld [vmem:[%s1291_s5] sm:$0xff] }
 0x437   : > { %v676_v21 = vsel %vm469_vm9, %v675_v20, -inf }
 0x438   : > { %677 = vmax.xlane.f32.xlu0 %v676_v21 }
 0x44c   : > { %619 = vrot.lane.b32.xlu0 %v1153_v35, %s1033_s15 }
 0x4a7   : > { %v610_v22 = vpop.xlane.xlu2 %609 }
 0x4a8   : > { %v611_v23 = vsub.f32 %v607_v16, %v610_v22  ;;  %v973_v16 = vld [vmem:[%s1288_s2 + $0x2] ss:$0 sm:$0xff]  ;;  %v826_v22 = vld [vmem:[%s1295_s9 + $0x10] sm:$0xff] }
 0x4a9   : > { %853 = vmatpush.msrb.mxu0 %v826_v22 }
 0x4aa   : > { %v612_v24 = vmul.f32 1.442695, %v611_v23  ;;  %v825_v23 = vld [vmem:[%s1295_s9 + $0x8] sm:$0xff] }
 0x4ab   : > { %v678_v25 = vpop.xlane.xlu0 %677  ;;  %854 = vmatpush.msrb.mxu0 %v825_v23 }
 0x4ac   : > { %989 = vpow2.f32 %v612_v24  ;;  %v679_v26 = vsub.f32 %v675_v20, %v678_v25  ;;  %v824_v24 = vld [vmem:[%s1295_s9] sm:$0xff] }
 0x4ad   : > { %855 = vmatpush.msrb.mxu0 %v824_v24  ;;  %v975_v25 = vld [vmem:[%s1294_s8] ss:$0 sm:$0xff] }
 0x4ae   : > { %v680_v27 = vmul.f32 1.442695, %v679_v26 }
 0x4b0   : > { %991 = vpow2.f32 %v680_v27 }
 0x4b2   : > { %v990_v28 = vpop.eup %989 }
 0x4b3   : > { %v614_v29 = vsel %vm469_vm9, %v990_v28, 0.0 }
 0x4b4   : > { %615 = vadd.xlane.f32.xlu1 %v614_v29  ;;  %v976_v29 = vld [vmem:[%s1296_s10] ss:$0 sm:$0xff] }
 0x4b6   : > { %v992_v30 = vpop.eup %991 }
 0x4b7   : > { %v682_v31 = vsel %vm469_vm9, %v992_v30, 0.0 }
 0x4b8   : > { %683 = vadd.xlane.f32.xlu2 %v682_v31 }
 0x4be   : > { %v620_v32 = vpop.permute.xlu0 %619 }
 0x4bf   : > { %933 = vmatpush.msk.msrb.mxu3 %vm487_vm6, %v620_v32 }
 0x4c1   : > { %815 = vmatpush.msra.mxu3 %v795_v62 }
 0x4cd   : > { %715 = vrot.lane.b32.xlu1 %v575_v13, %s1034_s16 }
 0x4d0   : > { %687 = vrot.lane.b32.xlu2 %v1153_v35, %s1035_s17  ;;  %v734_v35 = vld [vmem:[%s1291_s5 + $0x18] sm:$0xff] }
 0x4d1   : > { %750 = vmatpush.msra.mxu1 %v734_v35 }
 0x4d3   : > { %751 = vmatpush.msra.mxu1 %v733_v43 }
 0x4d5   : > { %752 = vmatpush.msra.mxu1 %v732_v44 }
 0x4d7   : > { %753 = vmatpush.msra.mxu1 %v731_v45 }
 0x527   : > { %v616_v33 = vpop.xlane.xlu1 %615 }
 0x528   : > { %993 = vrcp.f32 %v616_v33 }
 0x52b   : > { %v684_v34 = vpop.xlane.xlu2 %683 }
 0x52c   : > { %995 = vrcp.f32 %v684_v34 }
 0x52e   : > { %v994_v36 = vpop.eup %993 }
 0x52f   : > { %v618_v37 = vmul.f32 %v994_v36, %v990_v28 }
 0x531   : > { %934 = vmatmul.msk.f32.vlgmr.msrb.gmra.mxu3 %vm483_vm10, %v618_v37 }
 0x532   : > { %v996_v38 = vpop.eup %995 }
 0x533   : > { %v686_v39 = vmul.f32 %v996_v38, %v992_v30  ;;  %v688_v40 = vpop.permute.xlu2 %687 }
 0x534   : > { %937 = vmatpush.msk.msrb.mxu2 %vm487_vm6, %v688_v40 }
 0x535   : > { %938 = vmatmul.msk.f32.vlgmr.msrb.gmra.mxu2 %vm483_vm10, %v686_v39 }
 0x53f   : > { %v716_v47 = vpop.permute.xlu1 %715 }
 0x540   : > { %v726_v48 = vsel %vm442_vm7, %v1186_v12, %v716_v47 }
 0x5b4   : > { %v643_v41 = vpop.f32.mrf.mxu3 }
 0x5b5   : > { %719 = vrot.lane.b32.xlu0 %v643_v41, %s1036_s18 }
 0x5b8   : > { %v711_v42 = vpop.f32.mrf.mxu2 }
 0x5bd   : > { %723 = vrot.lane.b32.xlu0 %v711_v42, %s1037_s19 }
 0x627   : > { %v720_v46 = vpop.permute.xlu0 %719 }
 0x628   : > { %v728_v49 = vsel %vm727_vm11, %v726_v48, %v720_v46 }
 0x62f   : > { %v724_v50 = vpop.permute.xlu0 %723 }
 0x630   : > { %v730_v51 = vsel %vm729_vm12, %v728_v49, %v724_v50 }
 0x631   : > { %939 = vmatmul.msk.f32.vlgmr.msra.gmra.mxu1 %vm415_vm5, %v730_v51 }
 0x6ae   : > { %v755_v53 = vpop.f32.mrf.mxu1 }
 0x6af   : > { %v758_v54 = vadd.f32 %v755_v53, %v1121_v0  ;;  %v794_v0 = vld [vmem:[%s1293_s7 + $0x10] sm:$0xff] }
 0x6b0   : > { %816 = vmatpush.msra.mxu3 %v794_v0 }
 0x6b1   : > { %v1219_v55 = vadd.f32 %v972_v52, %v758_v54 }
 0x6b2   : > { %817 = vmatpush.msra.mxu3 %v793_v63 }
 0x6b3   : > { %v766_v56 = vsel %vm373_vm0, %v1219_v55, 0.0 }
 0x6b4   : > { %767 = vadd.xlane.f32.xlu2 %v766_v56  ;;  %818 = vmatpush.msra.mxu3 %v792_v1 }
 0x727   : > { %v768_v57 = vpop.xlane.xlu2 %767 }
 0x728   : > { %v769_v58 = vmul.f32 %v768_v57, %v1125_v8 }
 0x72a   : > { %v770_v59 = vsub.f32 %v1219_v55, %v769_v58 }
 0x72c   : > { %v771_v60 = vmul.f32 %v770_v59, %v770_v59 }
 0x72e   : > { %v772_v61 = vsel %vm373_vm0, %v771_v60, 0.0 }
 0x72f   : > { %773 = vadd.xlane.f32.xlu1 %v772_v61 }
 0x7a2   : > { %v774_v5 = vpop.xlane.xlu1 %773 }
 0x7a3   : > { %v775_v6 = vmul.f32 %v774_v5, %v1125_v8 }
 0x7a5   : > { %v776_v9 = vadd.f32 1e-05, %v775_v6 }
 0x7a7   : > { %997 = vrsqrt.f32 %v776_v9  ;;  %vm783_vm14 = vweird.f32 %v776_v9 }
 0x7ad   : > { %v998_v11 = vpop.eup %997 }
 0x7ae   : > { %v778_v12 = vmul.f32 %v998_v11, %v776_v9  ;;  %vm784_vm13 = vweird.f32 %v998_v11 }
 0x7af   : > { %vm785_vm15 = vmor %vm783_vm14, %vm784_vm13 }
 0x7b0   : > { %v779_v13 = vmul.f32 %v998_v11, %v778_v12 }
 0x7b2   : > { %v780_v14 = vmul.f32 0.5, %v779_v13 }
 0x7b4   : > { %v781_v15 = vsub.f32 1.5, %v780_v14 }
 0x7b6   : > { %v782_v8 = vmul.f32 %v998_v11, %v781_v15 }
 0x7b8   : > { %v786_v17 = vsel %vm785_vm15, %v998_v11, %v782_v8 }
 0x7b9   : > { %v787_v18 = vmul.f32 %v786_v17, %v770_v59 }
 0x7bb   : > { %v789_v20 = vmul.f32 %v973_v16, %v787_v18 }
 0x7bd   : > { %v791_v21 = vadd.f32 %v974_v19, %v789_v20 }
 0x7bf   : > { %940 = vmatmul.msk.f32.vlgmr.msra.gmra.mxu3 %vm415_vm5, %v791_v21 }
 0x842   : > { %v820_v26 = vpop.f32.mrf.mxu3 }
 0x843   : > { %v821_v27 = vadd.f32 %v975_v25, %v820_v26 }
 0x845   : > { %v823_v28 = vmax.f32 %v821_v27, 0.0 }
 0x847   : > { %941 = vmatmul.msk.f32.vlgmr.msrb.gmra.mxu0 %vm836_vm1, %v823_v28 }
 0x8c4   : > { %v857_v30 = vpop.f32.mrf.mxu0 }
 0x8c5   : > { %v858_v31 = vadd.f32 %v976_v29, %v857_v30 }
 0x8c7   : > { %v860_v32 = vadd.f32 %v858_v31, %v1219_v55 }
 0x8c9   : > { %861 = vst.msk [vmem:[%s363_s13] sm:$0xf] %vm373_vm0, %v860_v32 }
 0x8ca PF: > { %s29_s21 = sadd.s32 1, %s1019_s21  }
 0x8cb   : > { %p26_p4 = scmp.ge.s32.totalorder %s29_s21, 4  }
 0x8cd   :  { %28 = sbr.rel (!%p26_p4) target bundleno = 7 (0x7), region = 90 }

// kernel: closed_call.55
= control target key start
LH: loop header
LB: loop body
LE: loop exit
PB: predicated region body
PF: predicated region fallthrough
CT: control target
= control target key end

     0   :  { %s1685_s30 = smov [#allocation3]   ;;  %s2107_s0 = inlined_call_operand.vmem [shape: s32[2], index: 0, kind: input, shape index: {}]   ;;  %s2108_s1 = inlined_call_operand.vmem [shape: f32[2,8,32], index: 1, kind: input, shape index: {}]   ;;  %s2109_s2 = inlined_call_operand.vmem [shape: f32[2,4,32], index: 2, kind: input, shape index: {}]   ;;  %s2110_s3 = inlined_call_operand.vmem [shape: f32[6,32], index: 3, kind: input, shape index: {}]   ;;  %s2111_s4 = inlined_call_operand.vmem [shape: f32[32,96], index: 4, kind: input, shape index: {}]   ;;  %s2112_s5 = inlined_call_operand.vmem [shape: f32[1,96], index: 5, kind: input, shape index: {}]   ;;  %s2113_s6 = inlined_call_operand.vmem [shape: f32[32,32], index: 6, kind: input, shape index: {}]   ;;  %s2114_s7 = inlined_call_operand.vmem [shape: f32[1,32], index: 7, kind: input, shape index: {}]   ;;  %s2115_s8 = inlined_call_operand.vmem [shape: f32[32,32], index: 8, kind: input, shape index: {}]   ;;  %s2116_s9 = inlined_call_operand.vmem [shape: f32[1,32], index: 9, kind: input, shape index: {}]   ;;  %s2117_s10 = inlined_call_operand.vmem [shape: f32[32,64], index: 10, kind: input, shape index: {}]   ;;  %s2118_s11 = inlined_call_operand.vmem [shape: f32[1,64], index: 11, kind: input, shape index: {}]   ;;  %s2119_s12 = inlined_call_operand.vmem [shape: f32[32,32], index: 12, kind: input, shape index: {}]   ;;  %s2120_s13 = inlined_call_operand.vmem [shape: f32[1,32], index: 13, kind: input, shape index: {}]   ;;  %s2121_s14 = inlined_call_operand.vmem [shape: f32[32,64], index: 14, kind: input, shape index: {}]   ;;  %s2122_s15 = inlined_call_operand.vmem [shape: f32[1,64], index: 15, kind: input, shape index: {}]   ;;  %s2123_s16 = inlined_call_operand.vmem [shape: f32[64,32], index: 16, kind: input, shape index: {}]   ;;  %s2124_s17 = inlined_call_operand.vmem [shape: f32[1,32], index: 17, kind: input, shape index: {}]   ;;  %s2125_s18 = inlined_call_operand.vmem [shape: f32[2,8,32], index: 18, kind: output, shape index: {}]  }
   0x1   :  { %2139 = sst [smem:[#allocation5_spill]] %s2107_s0 }
   0x2   :  { %2140 = sst [smem:[#allocation6_spill]] %s2108_s1 }
   0x3   :  { %2141 = sst [smem:[#allocation7_spill]] %s2109_s2 }
   0x4   :  { %2142 = sst [smem:[#allocation8_spill]] %s2119_s12 }
   0x5   :  { %s2143_s29 = sld [smem:[#allocation5_spill]] }
   0xb   :  { %s24_s12 = sshll.u32 %s2143_s29, 4  ;;  %s25_s12 = int_to_ptr.vmem [resolvable:$true] %s24_s12 }
   0xc   :  { %27 = dma.vmem_to_smem %s25_s12, 16, %s1685_s30, [#allocation2] }
   0xd   :  { %1679 = dma.done.wait [#allocation2], 16 }
   0xe   :  { %1680 = vsyncadd [#allocation2], 4294967280 }
   0xf   :  { %30 = sfence }
  0x10   :  { %s1800_s0 = smov 0  }
  0x11 LB: > { %s1806_s19 = sadd.s32 4294967295, %s1683_s0   ;;  %p1544_p0 = scmp.ge.s32.totalorder %s1683_s0, 1  ;;  %s1683_s0 = sphi %s1800_s0, %s36_s0  }
  0x12   : > { %p504_p1 = scmp.lt.s32.totalorder %s1683_s0, 3 }
  0x14   : > { %p505_p2 = pnand %p1544_p0, %p504_p1 }
  0x15   : > { %p558_p3 = scmp.lt.s32.totalorder (!%p505_p2), %s1806_s19, 1  ;;  %s2144_s22 = sld [smem:[#allocation6_spill]] (!%p505_p2) }
  0x16   : > { %508 = sbr.rel (%p505_p2) target bundleno = 3163 (0xc5b), region = 88  ;;  %s2129_s25 = smov (!%p505_p2), 72  }
  0x17   : > { %s1688_s26 = smov (!%p505_p2), 120   ;;  %s2134_s27 = smov (!%p505_p2), 96  }
  0x18   : > { %s2132_s28 = smov (!%p505_p2), 80   ;;  %s2128_s29 = smov (!%p505_p2), 88  }
  0x19   : > { %s2135_s30 = smov (!%p505_p2), 104   ;;  %s2137_s20 = smov (!%p505_p2), 112  }
  0x1a   : > { %s1695_s21 = smov (!%p505_p2), 64   ;;  %s1698_s23 = smov (!%p505_p2), 48  }
  0x1b   : > { %s1812_s12 = scalar_select %p558_p3, %s1806_s19, 1  ;;  %vm584_vm0 = vcmask 261120   ;;  %v1686_v2 = vmov 32.0   ;;  %v621_v14 = vld [vmem:[%s2111_s4 + $0x18] sm:$0xff]  ;;  %v620_v15 = vld [vmem:[%s2111_s4 + $0x10] sm:$0xff]  ;;  %v619_v16 = vld [vmem:[%s2111_s4 + $0x8] sm:$0xff]  ;;  %v573_v43 = vlaneseq }
  0x1c   : > { %1623 = vrcp.f32 %v1686_v2  ;;  %641 = vmatpush.msra.mxu0 %v621_v14  ;;  %v618_v17 = vld [vmem:[%s2111_s4] sm:$0xff]  ;;  %vm652_vm5 = vcmask 64512   ;;  %v1694_v47 = vmov -1e+09   ;;  %s2130_s24 = smov 16   ;;  %vm930_vm7 = vcmask 130048  }
  0x1d   : > { %s2127_s1 = sshll.u32 %s1812_s12, 3  ;;  %v1610_v27 = vld [vmem:[%s2110_s3] ss:$0 sm:$0xff]  ;;  %v1611_v30 = vld [vmem:[%s2110_s3 + $0x1] ss:$0 sm:$0xff]  ;;  %v574_v44 = vshrl.u32 %v573_v43, 7 }
  0x1e   : > { %s561_s2 = scalar_lea.vmem %s2144_s22, %s2127_s1  ;;  %642 = vmatpush.msra.mxu0 %v620_v15  ;;  %v1612_v33 = vld [vmem:[%s2112_s5] ss:$0 sm:$0xff]  ;;  %v1877_v45 = vand.u32 127, %v573_v43  ;;  %s1696_s22 = smov 40   ;;  %v936_v43 = vld [vmem:[%s2113_s6 + $0x10] sm:$0xff]  ;;  %vm932_vm8 = vcmask 195584  }
  0x1f   : > { %v1820_v0 = vld [vmem:[%s561_s2] sm:$0xff]  ;;  %s1697_s2 = smov 56   ;;  %s1546_s1 = sshll.u32 %s1812_s12, 2  ;;  %vm1085_vm13 = vcmask 31744   ;;  %vm1102_vm14 = vcmask 1043456  }
  0x20   : > { %v585_v1 = vsel %vm584_vm0, %v1820_v0, 0.0  ;;  %643 = vmatpush.msra.mxu0 %v619_v16  ;;  %vm577_vm6 = vcmp.ge.s32.totalorder %v574_v44, %v1877_v45  ;;  %v935_v44 = vld [vmem:[%s2113_s6 + $0x8] sm:$0xff] }
  0x21   : > { %586 = vadd.xlane.f32.xlu0 %v585_v1  ;;  %v578_v48 = vsel %vm577_vm6, 0.0, %v1694_v47 }
  0x22   : > { %v1624_v3 = vpop.eup %1623  ;;  %644 = vmatpush.msra.mxu0 %v618_v17 }
  0x23   : > { %v589_v4 = vmul.f32 32.0, %v1624_v3  ;;  %vm593_vm1 = vweird.f32 %v1624_v3 }
  0x25   : > { %v590_v5 = vsub.f32 1.0, %v589_v4 }
  0x27   : > { %v591_v6 = vmul.f32 %v1624_v3, %v590_v5 }
  0x29   : > { %v592_v7 = vadd.f32 %v1624_v3, %v591_v6 }
  0x2b   : > { %v1824_v8 = vsel %vm593_vm1, %v1624_v3, %v592_v7 }
  0x94   : > { %v587_v9 = vpop.xlane.xlu0 %586 }
  0x95   : > { %v595_v10 = vmul.f32 %v1824_v8, %v587_v9 }
  0x97   : > { %v596_v11 = vsub.f32 %v1820_v0, %v595_v10 }
  0x99   : > { %v597_v12 = vmul.f32 %v596_v11, %v596_v11 }
  0x9b   : > { %v598_v13 = vsel %vm584_vm0, %v597_v12, 0.0 }
  0x9c   : > { %599 = vadd.xlane.f32.xlu0 %v598_v13 }
 0x10f   : > { %v600_v18 = vpop.xlane.xlu0 %599 }
 0x110   : > { %v601_v19 = vmul.f32 %v600_v18, %v1824_v8 }
 0x112   : > { %v602_v20 = vadd.f32 1e-05, %v601_v19 }
 0x114   : > { %1625 = vrsqrt.f32 %v602_v20  ;;  %vm609_vm3 = vweird.f32 %v602_v20 }
 0x11a   : > { %v1626_v21 = vpop.eup %1625 }
 0x11b   : > { %v604_v22 = vmul.f32 %v1626_v21, %v602_v20  ;;  %vm610_vm2 = vweird.f32 %v1626_v21 }
 0x11c   : > { %vm611_vm4 = vmor %vm609_vm3, %vm610_vm2  ;;  %vm1449_vm3 = vcmask 523264  }
 0x11d   : > { %v605_v23 = vmul.f32 %v1626_v21, %v604_v22 }
 0x11f   : > { %v606_v24 = vmul.f32 0.5, %v605_v23 }
 0x121   : > { %v607_v25 = vsub.f32 1.5, %v606_v24 }
 0x123   : > { %v608_v26 = vmul.f32 %v1626_v21, %v607_v25 }
 0x125   : > { %v612_v28 = vsel %vm611_vm4, %v1626_v21, %v608_v26 }
 0x126   : > { %v613_v29 = vmul.f32 %v612_v28, %v596_v11 }
 0x128   : > { %v615_v31 = vmul.f32 %v1610_v27, %v613_v29 }
 0x12a   : > { %v617_v32 = vadd.f32 %v1611_v30, %v615_v31 }
 0x12c   : > { %1548 = vmatmul.msk.f32.vlgmr.msra.gmra.mxu0 %vm584_vm0, %v617_v32 }
 0x1a9   : > { %v646_v34 = vpop.f32.mrf.mxu0 }
 0x1aa   : > { %v1852_v35 = vadd.f32 %v1612_v33, %v646_v34 }
 0x1ac   : > { %852 = vrot.lane.b32.xlu0 %v1852_v35, %s2129_s25  ;;  %716 = vrot.lane.b32.xlu2 %v1852_v35, %s1688_s26 }
 0x1ad   : > { %650 = vrot.lane.b32.xlu1 %v1852_v35, %s2134_s27  ;;  %s2151_s27 = smov 88  }
 0x1b4   : > { %785 = vrot.lane.b32.xlu2 %v1852_v35, %s2132_s28  ;;  %s2154_s28 = smov 24  }
 0x1b5   : > { %718 = vrot.lane.b32.xlu1 %v1852_v35, %s2128_s29  ;;  %s2145_s29 = sld [smem:[#allocation7_spill]] }
 0x1bc   : > { %850 = vrot.lane.b32.xlu2 %v1852_v35, %s2135_s30  ;;  %s2152_s30 = smov 16  }
 0x1bd   : > { %783 = vrot.lane.b32.xlu1 %v1852_v35, %s2137_s20  ;;  %s2153_s20 = smov 8  }
 0x206   : > { %v717_v36 = vpop.permute.xlu2 %716 }
 0x20e   : > { %v786_v38 = vpop.permute.xlu2 %785 }
 0x216   : > { %v851_v42 = vpop.permute.xlu2 %850 }
 0x21e   : > { %v853_v40 = vpop.permute.xlu0 %852 }
 0x21f   : > { %v651_v37 = vpop.permute.xlu1 %650 }
 0x220   : > { %1549 = vmatpush.xpose.msk.msra.mxu1 %vm652_vm5, %v651_v37 }
 0x223   : > { %1550 = vmatmul.msk.f32.vlgmr.msra.gmra.mxu1 %vm652_vm5, %v1852_v35 }
 0x224   : > { %1555 = vmatpush.xpose.msk.msrb.mxu1 %vm652_vm5, %v786_v38 }
 0x227   : > { %v719_v39 = vpop.permute.xlu1 %718 }
 0x228   : > { %1552 = vmatpush.xpose.msk.msrb.mxu0 %vm652_vm5, %v719_v39 }
 0x22b   : > { %1553 = vmatmul.msk.f32.vlgmr.msrb.gmra.mxu0 %vm652_vm5, %v717_v36 }
 0x22c   : > { %1558 = vmatpush.xpose.msk.msra.mxu0 %vm652_vm5, %v853_v40 }
 0x22f   : > { %v784_v41 = vpop.permute.xlu1 %783 }
 0x230   : > { %1556 = vmatmul.msk.f32.vlgmr.msrb.gmra.mxu1 %vm652_vm5, %v784_v41 }
 0x233   : > { %1559 = vmatmul.msk.f32.vlgmr.msra.gmra.mxu0 %vm652_vm5, %v851_v42  ;;  %v937_v42 = vld [vmem:[%s2113_s6 + $0x18] sm:$0xff] }
 0x234   : > { %953 = vmatpush.msra.mxu1 %v937_v42 }
 0x236   : > { %954 = vmatpush.msra.mxu1 %v936_v43 }
 0x238   : > { %955 = vmatpush.msra.mxu1 %v935_v44 }
 0x2a0   : > { %v674_v46 = vpop.f32.mrf.mxu1 }
 0x2a1   : > { %v677_v49 = vmul.f32 0.35355338, %v674_v46  ;;  %v934_v46 = vld [vmem:[%s2113_s6] sm:$0xff] }
 0x2a2   : > { %956 = vmatpush.msra.mxu1 %v934_v46 }
 0x2a3   : > { %v678_v50 = vadd.f32 %v677_v49, %v578_v48 }
 0x2a5   : > { %v679_v51 = vsel %vm652_vm5, %v678_v50, -inf }
 0x2a6   : > { %680 = vmax.xlane.f32.xlu1 %v679_v51 }
 0x2a8   : > { %v741_v52 = vpop.f32.mrf.mxu0 }
 0x2a9   : > { %v744_v53 = vmul.f32 0.35355338, %v741_v52 }
 0x2ab   : > { %v745_v54 = vadd.f32 %v744_v53, %v578_v48 }
 0x2ad   : > { %v808_v55 = vpop.f32.mrf.mxu1  ;;  %v746_v56 = vsel %vm652_vm5, %v745_v54, -inf }
 0x2ae   : > { %v811_v57 = vmul.f32 0.35355338, %v808_v55  ;;  %747 = vmax.xlane.f32.xlu2 %v746_v56 }
 0x2b0   : > { %v875_v58 = vpop.f32.mrf.mxu0  ;;  %v812_v59 = vadd.f32 %v811_v57, %v578_v48 }
 0x2b1   : > { %v878_v60 = vmul.f32 0.35355338, %v875_v58 }
 0x2b2   : > { %v813_v61 = vsel %vm652_vm5, %v812_v59, -inf }
 0x2b3   : > { %814 = vmax.xlane.f32.xlu0 %v813_v61  ;;  %v879_v62 = vadd.f32 %v878_v60, %v578_v48  ;;  %v1028_v60 = vld [vmem:[%s2117_s10 + $0x10] sm:$0xff] }
 0x2b5   : > { %v880_v63 = vsel %vm652_vm5, %v879_v62, -inf }
 0x2b6   : > { %881 = vmax.xlane.f32.xlu2 %v880_v63 }
 0x2bf   : > { %690 = vrot.lane.b32.xlu1 %v1852_v35, %s1695_s21  ;;  %s2131_s21 = smov 8  }
 0x319   : > { %v681_v1 = vpop.xlane.xlu1 %680 }
 0x31a   : > { %v682_v2 = vsub.f32 %v678_v50, %v681_v1 }
 0x31c   : > { %v683_v3 = vmul.f32 1.442695, %v682_v2 }
 0x31e   : > { %1627 = vpow2.f32 %v683_v3  ;;  %v1026_v3 = vld [vmem:[%s2117_s10] sm:$0xff] }
 0x321   : > { %v748_v4 = vpop.xlane.xlu2 %747 }
 0x322   : > { %v749_v5 = vsub.f32 %v745_v54, %v748_v4  ;;  %v1613_v54 = vld [vmem:[%s2114_s7] ss:$0 sm:$0xff] }
 0x324   : > { %v1628_v6 = vpop.eup %1627  ;;  %v750_v7 = vmul.f32 1.442695, %v749_v5  ;;  %v998_v5 = vld [vmem:[%s2115_s8 + $0x18] sm:$0xff] }
 0x325   : > { %v685_v9 = vsel %vm652_vm5, %v1628_v6, 0.0 }
 0x326   : > { %1629 = vpow2.f32 %v750_v7  ;;  %v815_v10 = vpop.xlane.xlu0 %814  ;;  %686 = vadd.xlane.f32.xlu1 %v685_v9  ;;  %v996_v7 = vld [vmem:[%s2115_s8 + $0x8] sm:$0xff]  ;;  %v995_v9 = vld [vmem:[%s2115_s8] sm:$0xff] }
 0x327   : > { %v816_v11 = vsub.f32 %v812_v59, %v815_v10  ;;  %v1029_v59 = vld [vmem:[%s2117_s10 + $0x18] sm:$0xff] }
 0x328   : > { %1049 = vmatpush.msrb.mxu0 %v1029_v59 }
 0x329   : > { %v817_v12 = vmul.f32 1.442695, %v816_v11  ;;  %v882_v13 = vpop.xlane.xlu2 %881 }
 0x32a   : > { %v883_v14 = vsub.f32 %v879_v62, %v882_v13  ;;  %1050 = vmatpush.msrb.mxu0 %v1028_v60 }
 0x32b   : > { %1631 = vpow2.f32 %v817_v12 }
 0x32c   : > { %v1630_v15 = vpop.eup %1629  ;;  %v884_v16 = vmul.f32 1.442695, %v883_v14 }
 0x32d   : > { %v752_v17 = vsel %vm652_vm5, %v1630_v15, 0.0 }
 0x32e   : > { %1633 = vpow2.f32 %v884_v16  ;;  %753 = vadd.xlane.f32.xlu2 %v752_v17 }
 0x331   : > { %v1632_v18 = vpop.eup %1631  ;;  %v691_v19 = vpop.permute.xlu1 %690 }
 0x332   : > { %711 = vmatpush.msra.mxu2 %v691_v19  ;;  %v819_v20 = vsel %vm652_vm5, %v1632_v18, 0.0  ;;  %v1614_v19 = vld [vmem:[%s2110_s3 + $0x2] ss:$0 sm:$0xff] }
 0x333   : > { %820 = vadd.xlane.f32.xlu0 %v819_v20 }
 0x334   : > { %v1634_v21 = vpop.eup %1633 }
 0x335   : > { %v886_v22 = vsel %vm652_vm5, %v1634_v21, 0.0 }
 0x336   : > { %887 = vadd.xlane.f32.xlu2 %v886_v22  ;;  %v1615_v22 = vld [vmem:[%s2110_s3 + $0x3] ss:$0 sm:$0xff] }
 0x33f   : > { %891 = vrot.lane.b32.xlu1 %v1852_v35, %s1696_s22  ;;  %s2133_s22 = smov 24  }
 0x347   : > { %757 = vrot.lane.b32.xlu0 %v1852_v35, %s1697_s2  ;;  %s2147_s2 = smov 104  }
 0x34e   : > { %824 = vrot.lane.b32.xlu2 %v1852_v35, %s1698_s23  ;;  %s2156_s23 = sshll.u32 %s1812_s12, 3 }
 0x399   : > { %v687_v23 = vpop.xlane.xlu1 %686 }
 0x39a   : > { %1635 = vrcp.f32 %v687_v23 }
 0x3a0   : > { %v1636_v24 = vpop.eup %1635 }
 0x3a1   : > { %v754_v25 = vpop.xlane.xlu2 %753  ;;  %v689_v26 = vmul.f32 %v1636_v24, %v1628_v6  ;;  %v997_v6 = vld [vmem:[%s2115_s8 + $0x10] sm:$0xff] }
 0x3a3   : > { %1551 = vmatmul.msk.f32.vlgmr.msra.gmra.mxu2 %vm652_vm5, %v689_v26 }
 0x3a6   : > { %v821_v27 = vpop.xlane.xlu0 %820 }
 0x3a7   : > { %1637 = vrcp.f32 %v821_v27 }
 0x3a8   : > { %1639 = vrcp.f32 %v754_v25  ;;  %v1616_v25 = vld [vmem:[%s2118_s11] ss:$0 sm:$0xff] }
 0x3a9   : > { %v888_v28 = vpop.xlane.xlu2 %887 }
 0x3aa   : > { %1641 = vrcp.f32 %v888_v28  ;;  %v1617_v28 = vld [vmem:[%s2116_s9] ss:$0 sm:$0xff] }
 0x3ad   : > { %v1638_v29 = vpop.eup %1637 }
 0x3ae   : > { %v823_v31 = vmul.f32 %v1638_v29, %v1632_v18  ;;  %v1640_v32 = vpop.eup %1639 }
 0x3af   : > { %v756_v34 = vmul.f32 %v1640_v32, %v1630_v15 }
 0x3b0   : > { %v1642_v36 = vpop.eup %1641 }
 0x3b1   : > { %v825_v30 = vpop.permute.xlu2 %824  ;;  %v892_v35 = vpop.permute.xlu1 %891  ;;  %v890_v37 = vmul.f32 %v1642_v36, %v1634_v21 }
 0x3b2   : > { %845 = vmatpush.msra.mxu3 %v825_v30 }
 0x3b3   : > { %1557 = vmatmul.msk.f32.vlgmr.msra.gmra.mxu3 %vm652_vm5, %v823_v31 }
 0x3b4   : > { %1018 = vmatpush.msrb.mxu3 %v998_v5 }
 0x3b6   : > { %1019 = vmatpush.msrb.mxu3 %v997_v6 }
 0x3b8   : > { %1020 = vmatpush.msrb.mxu3 %v996_v7 }
 0x3b9   : > { %v758_v33 = vpop.permute.xlu0 %757 }
 0x3ba   : > { %778 = vmatpush.msrb.mxu2 %v758_v33  ;;  %1021 = vmatpush.msrb.mxu3 %v995_v9 }
 0x3bb   : > { %1554 = vmatmul.msk.f32.vlgmr.msrb.gmra.mxu2 %vm652_vm5, %v756_v34 }
 0x3bc   : > { %912 = vmatpush.msra.mxu2 %v892_v35 }
 0x3c3   : > { %1560 = vmatmul.msk.f32.vlgmr.msra.gmra.mxu2 %vm652_vm5, %v890_v37 }
 0x426   : > { %v713_v38 = vpop.f32.mrf.mxu2 }
 0x436   : > { %v847_v39 = vpop.f32.mrf.mxu3 }
 0x437   : > { %922 = vrot.lane.b32.xlu1 %v847_v39, %s2130_s24  ;;  %s565_s24 = scalar_lea.vmem %s2145_s29, %s1546_s1  ;;  %s2150_s1 = smov 72  }
 0x438   : > { %v571_v4 = vld [vmem:[%s565_s24] sm:$0xf] }
 0x43e   : > { %v780_v40 = vpop.f32.mrf.mxu2 }
 0x43f   : > { %918 = vrot.lane.b32.xlu0 %v780_v40, %s2131_s21  ;;  %s2146_s21 = smov 112  }
 0x446   : > { %v914_v41 = vpop.f32.mrf.mxu2 }
 0x447   : > { %926 = vrot.lane.b32.xlu2 %v914_v41, %s2133_s22  ;;  %s2149_s22 = smov 80  }
 0x4a1   : > { %v927_v51 = vpop.permute.xlu2 %926 }
 0x4a9   : > { %v923_v49 = vpop.permute.xlu1 %922 }
 0x4b1   : > { %v919_v48 = vpop.permute.xlu0 %918 }
 0x4b2   : > { %v929_v50 = vsel %vm652_vm5, %v713_v38, %v919_v48 }
 0x4b3   : > { %v931_v52 = vsel %vm930_vm7, %v929_v50, %v923_v49 }
 0x4b4   : > { %v933_v53 = vsel %vm932_vm8, %v931_v52, %v927_v51 }
 0x4b5   : > { %1561 = vmatmul.msk.f32.vlgmr.msra.gmra.mxu1 %vm584_vm0, %v933_v53 }
 0x532   : > { %v958_v55 = vpop.f32.mrf.mxu1 }
 0x533   : > { %v961_v56 = vadd.f32 %v958_v55, %v1820_v0  ;;  %v1027_v0 = vld [vmem:[%s2117_s10 + $0x8] sm:$0xff] }
 0x534   : > { %1051 = vmatpush.msrb.mxu0 %v1027_v0 }
 0x535   : > { %v1920_v57 = vadd.f32 %v1613_v54, %v961_v56 }
 0x536   : > { %1052 = vmatpush.msrb.mxu0 %v1026_v3 }
 0x537   : > { %v969_v58 = vsel %vm584_vm0, %v1920_v57, 0.0  ;;  %1563 = vmatmul.msk.f32.vlgmr.msrb.gmra.mxu0 %vm584_vm0, %v571_v4 }
 0x538   : > { %970 = vadd.xlane.f32.xlu0 %v969_v58 }
 0x5ab   : > { %v971_v61 = vpop.xlane.xlu0 %970 }
 0x5ac   : > { %v972_v62 = vmul.f32 %v971_v61, %v1824_v8 }
 0x5ae   : > { %v973_v63 = vsub.f32 %v1920_v57, %v972_v62 }
 0x5b0   : > { %v974_v1 = vmul.f32 %v973_v63, %v973_v63 }
 0x5b2   : > { %v975_v2 = vsel %vm584_vm0, %v974_v1, 0.0 }
 0x5b3   : > { %976 = vadd.xlane.f32.xlu1 %v975_v2 }
 0x5b4   : > { %v1054_v26 = vpop.f32.mrf.mxu0 }
 0x5b5   : > { %v1967_v27 = vadd.f32 %v1616_v25, %v1054_v26 }
 0x5b7   : > { %1127 = vrot.lane.b32.xlu2 %v1967_v27, %s1688_s26  ;;  %1564 = vmatpush.xpose.msk.msrb.mxu2 %vm652_vm5, %v1967_v27 }
 0x5bf   : > { %1195 = vrot.lane.b32.xlu2 %v1967_v27, %s2146_s21 }
 0x5c7   : > { %1263 = vrot.lane.b32.xlu2 %v1967_v27, %s2147_s2 }
 0x611   : > { %v1128_v31 = vpop.permute.xlu2 %1127 }
 0x612   : > { %1568 = vmatpush.xpose.msk.msra.mxu3 %vm652_vm5, %v1128_v31 }
 0x619   : > { %v1196_v32 = vpop.permute.xlu2 %1195 }
 0x61a   : > { %1572 = vmatpush.xpose.msk.msra.mxu2 %vm652_vm5, %v1196_v32 }
 0x621   : > { %v1264_v33 = vpop.permute.xlu2 %1263 }
 0x626   : > { %v977_v10 = vpop.xlane.xlu1 %976 }
 0x627   : > { %v978_v11 = vmul.f32 %v977_v10, %v1824_v8 }
 0x629   : > { %v979_v12 = vadd.f32 1e-05, %v978_v11 }
 0x62b   : > { %1643 = vrsqrt.f32 %v979_v12  ;;  %vm986_vm10 = vweird.f32 %v979_v12 }
 0x631   : > { %v1644_v13 = vpop.eup %1643 }
 0x632   : > { %v981_v14 = vmul.f32 %v1644_v13, %v979_v12  ;;  %vm987_vm9 = vweird.f32 %v1644_v13 }
 0x633   : > { %vm988_vm11 = vmor %vm986_vm10, %vm987_vm9 }
 0x634   : > { %v982_v15 = vmul.f32 %v1644_v13, %v981_v14 }
 0x636   : > { %v983_v16 = vmul.f32 0.5, %v982_v15 }
 0x638   : > { %v984_v17 = vsub.f32 1.5, %v983_v16 }
 0x63a   : > { %v985_v18 = vmul.f32 %v1644_v13, %v984_v17 }
 0x63c   : > { %v989_v20 = vsel %vm988_vm11, %v1644_v13, %v985_v18 }
 0x63d   : > { %v990_v21 = vmul.f32 %v989_v20, %v973_v63 }
 0x63f   : > { %v992_v23 = vmul.f32 %v1614_v19, %v990_v21 }
 0x641   : > { %v994_v24 = vadd.f32 %v1615_v22, %v992_v23 }
 0x643   : > { %1562 = vmatmul.msk.f32.vlgmr.msrb.gmra.mxu3 %vm584_vm0, %v994_v24 }
 0x644   : > { %1576 = vmatpush.xpose.msk.msrb.mxu3 %vm652_vm5, %v1264_v33 }
 0x6c6   : > { %v1023_v29 = vpop.f32.mrf.mxu3 }
 0x6c7   : > { %v1024_v30 = vadd.f32 %v1617_v28, %v1023_v29 }
 0x6c9   : > { %1261 = vrot.lane.b32.xlu0 %v1024_v30, %s2147_s2  ;;  %1125 = vrot.lane.b32.xlu2 %v1024_v30, %s1688_s26  ;;  %s572_s26 = sld [smem:[#allocation3 + %s1806_s19]]  ;;  %s2148_s19 = smov 96  }
 0x6ca   : > { %1565 = vmatmul.msk.f32.vlgmr.msrb.gmra.mxu2 %vm652_vm5, %v1024_v30 }
 0x6cf   : > { %v579_v37 = vstv %s572_s26 }
 0x6d0   : > { %vm580_vm12 = vcmp.lt.s32.totalorder %v1877_v45, %v579_v37 }
 0x6d1   : > { %1193 = vrot.lane.b32.xlu2 %v1024_v30, %s2146_s21  ;;  %v581_v39 = vsel %vm580_vm12, 0.0, %v1694_v47  ;;  %s2155_s21 = sld [smem:[#allocation8_spill]] }
 0x6d7   : > { %v1347_v33 = vld [vmem:[%s2155_s21 + $0x18] sm:$0xff] }
 0x6d8   : > { %1363 = vmatpush.msrb.mxu2 %v1347_v33 }
 0x723   : > { %v1126_v34 = vpop.permute.xlu2 %1125 }
 0x724   : > { %1569 = vmatmul.msk.f32.vlgmr.msra.gmra.mxu3 %vm652_vm5, %v1126_v34  ;;  %v1346_v34 = vld [vmem:[%s2155_s21 + $0x10] sm:$0xff] }
 0x725   : > { %1364 = vmatpush.msrb.mxu2 %v1346_v34 }
 0x72b   : > { %v1194_v35 = vpop.permute.xlu2 %1193 }
 0x72c   : > { %1573 = vmatmul.msk.f32.vlgmr.msra.gmra.mxu2 %vm652_vm5, %v1194_v35  ;;  %v1345_v35 = vld [vmem:[%s2155_s21 + $0x8] sm:$0xff] }
 0x72d   : > { %1365 = vmatpush.msrb.mxu2 %v1345_v35 }
 0x73b   : > { %v1262_v36 = vpop.permute.xlu0 %1261 }
 0x73c   : > { %1577 = vmatmul.msk.f32.vlgmr.msrb.gmra.mxu3 %vm652_vm5, %v1262_v36  ;;  %v1344_v36 = vld [vmem:[%s2155_s21] sm:$0xff] }
 0x73d   : > { %1366 = vmatpush.msrb.mxu2 %v1344_v36 }
 0x74d   : > { %v1080_v38 = vpop.f32.mrf.mxu2 }
 0x74e   : > { %v1083_v40 = vmul.f32 0.35355338, %v1080_v38 }
 0x750   : > { %v1084_v41 = vadd.f32 %v1083_v40, %v581_v39 }
 0x752   : > { %v1086_v42 = vsel %vm1085_vm13, %v1084_v41, -inf }
 0x753   : > { %1087 = vmax.xlane.f32.xlu1 %v1086_v42 }
 0x7a7   : > { %v1150_v43 = vpop.f32.mrf.mxu3 }
 0x7a8   : > { %v1153_v44 = vmul.f32 0.35355338, %v1150_v43  ;;  %v1618_v43 = vld [vmem:[%s2120_s13] ss:$0 sm:$0xff] }
 0x7aa   : > { %v1154_v46 = vadd.f32 %v1153_v44, %v581_v39 }
 0x7ac   : > { %v1155_v48 = vsel %vm1085_vm13, %v1154_v46, -inf }
 0x7ad   : > { %1156 = vmax.xlane.f32.xlu2 %v1155_v48 }
 0x7af   : > { %v1218_v49 = vpop.f32.mrf.mxu2 }
 0x7b0   : > { %v1221_v50 = vmul.f32 0.35355338, %v1218_v49 }
 0x7b2   : > { %v1222_v51 = vadd.f32 %v1221_v50, %v581_v39 }
 0x7b4   : > { %v1223_v45 = vsel %vm1085_vm13, %v1222_v51, -inf }
 0x7b5   : > { %1224 = vmax.xlane.f32.xlu1 %v1223_v45 }
 0x7bf   : > { %v1286_v52 = vpop.f32.mrf.mxu3 }
 0x7c0   : > { %v1289_v47 = vmul.f32 0.35355338, %v1286_v52 }
 0x7c2   : > { %v1290_v53 = vadd.f32 %v1289_v47, %v581_v39 }
 0x7c4   : > { %v1291_v54 = vsel %vm1085_vm13, %v1290_v53, -inf }
 0x7c5   : > { %1292 = vmax.xlane.f32.xlu1 %v1291_v54  ;;  %v1406_v54 = vld [vmem:[%s2121_s14 + $0x8] sm:$0xff] }
 0x7c6   : > { %v1088_v55 = vpop.xlane.xlu1 %1087 }
 0x7c7   : > { %v1089_v56 = vsub.f32 %v1084_v41, %v1088_v55  ;;  %v1405_v55 = vld [vmem:[%s2121_s14] sm:$0xff] }
 0x7c9   : > { %v1090_v58 = vmul.f32 1.442695, %v1089_v56  ;;  %v1444_v56 = vld [vmem:[%s2123_s16 + $0x38] sm:$0xff] }
 0x7ca   : > { %1461 = vmatpush.msra.mxu3 %v1444_v56 }
 0x7cb   : > { %1645 = vpow2.f32 %v1090_v58  ;;  %v1443_v58 = vld [vmem:[%s2123_s16 + $0x30] sm:$0xff] }
 0x7cc   : > { %1462 = vmatpush.msra.mxu3 %v1443_v58 }
 0x7d1   : > { %v1646_v59 = vpop.eup %1645 }
 0x7d2   : > { %v1092_v60 = vsel %vm1085_vm13, %v1646_v59, 0.0 }
 0x7d3   : > { %1093 = vadd.xlane.f32.xlu0 %v1092_v60 }
 0x7de   : > { %1097 = vrot.lane.b32.xlu1 %v1967_v27, %s2148_s19  ;;  %s569_s19 = scalar_lea.vmem %s2125_s18, %s2156_s23 }
 0x7e7   : > { %1234 = vrot.lane.b32.xlu0 %v1967_v27, %s2149_s22 }
 0x820   : > { %v1157_v0 = vpop.xlane.xlu2 %1156 }
 0x821   : > { %v1158_v61 = vsub.f32 %v1154_v46, %v1157_v0 }
 0x823   : > { %v1159_v62 = vmul.f32 1.442695, %v1158_v61  ;;  %v1441_v61 = vld [vmem:[%s2123_s16 + $0x20] sm:$0xff] }
 0x825   : > { %1647 = vpow2.f32 %v1159_v62 }
 0x828   : > { %v1225_v63 = vpop.xlane.xlu1 %1224 }
 0x829   : > { %v1226_v1 = vsub.f32 %v1222_v51, %v1225_v63  ;;  %v1440_v63 = vld [vmem:[%s2123_s16 + $0x18] sm:$0xff] }
 0x82b   : > { %v1648_v2 = vpop.eup %1647  ;;  %v1227_v3 = vmul.f32 1.442695, %v1226_v1 }
 0x82c   : > { %v1161_v4 = vsel %vm1085_vm13, %v1648_v2, 0.0 }
 0x82d   : > { %1649 = vpow2.f32 %v1227_v3  ;;  %1162 = vadd.xlane.f32.xlu1 %v1161_v4 }
 0x833   : > { %v1650_v5 = vpop.eup %1649 }
 0x834   : > { %v1229_v6 = vsel %vm1085_vm13, %v1650_v5, 0.0 }
 0x835   : > { %1230 = vadd.xlane.f32.xlu1 %v1229_v6  ;;  %v1619_v6 = vld [vmem:[%s2110_s3 + $0x4] ss:$0 sm:$0xff] }
 0x838   : > { %v1293_v7 = vpop.xlane.xlu1 %1292 }
 0x839   : > { %v1294_v9 = vsub.f32 %v1290_v53, %v1293_v7  ;;  %v1408_v53 = vld [vmem:[%s2121_s14 + $0x18] sm:$0xff] }
 0x83b   : > { %v1295_v10 = vmul.f32 1.442695, %v1294_v9 }
 0x83d   : > { %1651 = vpow2.f32 %v1295_v10  ;;  %v1620_v10 = vld [vmem:[%s2110_s3 + $0x5] ss:$0 sm:$0xff] }
 0x843   : > { %v1652_v11 = vpop.eup %1651 }
 0x844   : > { %v1297_v12 = vsel %vm1085_vm13, %v1652_v11, 0.0 }
 0x845   : > { %1298 = vadd.xlane.f32.xlu2 %v1297_v12 }
 0x846   : > { %v1094_v13 = vpop.xlane.xlu0 %1093 }
 0x847   : > { %1653 = vrcp.f32 %v1094_v13  ;;  %v1439_v13 = vld [vmem:[%s2123_s16 + $0x10] sm:$0xff] }
 0x84d   : > { %v1654_v14 = vpop.eup %1653 }
 0x84e   : > { %1302 = vrot.lane.b32.xlu1 %v1967_v27, %s2150_s1  ;;  %v1096_v15 = vmul.f32 %v1654_v14, %v1646_v59  ;;  %v1442_v59 = vld [vmem:[%s2123_s16 + $0x28] sm:$0xff] }
 0x84f   : > { %1463 = vmatpush.msra.mxu3 %v1442_v59  ;;  %v1438_v14 = vld [vmem:[%s2123_s16 + $0x8] sm:$0xff] }
 0x850   : > { %v1098_v16 = vpop.permute.xlu1 %1097 }
 0x851   : > { %1566 = vmatpush.msk.msrb.mxu1 %vm1102_vm14, %v1098_v16  ;;  %1464 = vmatpush.msra.mxu3 %v1441_v61  ;;  %v1621_v16 = vld [vmem:[%s2122_s15] ss:$0 sm:$0xff] }
 0x852   : > { %1567 = vmatmul.msk.f32.vlgmr.msrb.gmra.mxu1 %vm1085_vm13, %v1096_v15  ;;  %v1437_v15 = vld [vmem:[%s2123_s16] sm:$0xff] }
 0x853   : > { %1465 = vmatpush.msra.mxu3 %v1440_v63 }
 0x855   : > { %1466 = vmatpush.msra.mxu3 %v1439_v13 }
 0x857   : > { %1467 = vmatpush.msra.mxu3 %v1438_v14 }
 0x859   : > { %v1235_v17 = vpop.permute.xlu0 %1234  ;;  %1468 = vmatpush.msra.mxu3 %v1437_v15 }
 0x85a   : > { %1574 = vmatpush.msk.msra.mxu1 %vm1102_vm14, %v1235_v17 }
 0x85c   : > { %1428 = vmatpush.msrb.mxu1 %v1408_v53 }
 0x85d   : > { %1166 = vrot.lane.b32.xlu2 %v1967_v27, %s2151_s27 }
 0x8a0   : > { %v1163_v18 = vpop.xlane.xlu1 %1162 }
 0x8a8   : > { %v1231_v19 = vpop.xlane.xlu1 %1230 }
 0x8a9   : > { %1655 = vrcp.f32 %v1231_v19 }
 0x8aa   : > { %1657 = vrcp.f32 %v1163_v18 }
 0x8af   : > { %v1656_v20 = vpop.eup %1655 }
 0x8b0   : > { %v1233_v21 = vmul.f32 %v1656_v20, %v1650_v5  ;;  %v1658_v23 = vpop.eup %1657  ;;  %v1622_v20 = vld [vmem:[%s2124_s17] ss:$0 sm:$0xff] }
 0x8b1   : > { %v1165_v24 = vmul.f32 %v1658_v23, %v1648_v2 }
 0x8b2   : > { %1575 = vmatmul.msk.f32.vlgmr.msra.gmra.mxu1 %vm1085_vm13, %v1233_v21 }
 0x8b8   : > { %v1299_v22 = vpop.xlane.xlu2 %1298 }
 0x8b9   : > { %1659 = vrcp.f32 %v1299_v22 }
 0x8bf   : > { %v1660_v27 = vpop.eup %1659 }
 0x8c0   : > { %v1167_v25 = vpop.permute.xlu2 %1166  ;;  %v1303_v26 = vpop.permute.xlu1 %1302  ;;  %v1301_v28 = vmul.f32 %v1660_v27, %v1652_v11 }
 0x8c1   : > { %1570 = vmatpush.msk.msra.mxu0 %vm1102_vm14, %v1167_v25 }
 0x8c2   : > { %1571 = vmatmul.msk.f32.vlgmr.msra.gmra.mxu0 %vm1085_vm13, %v1165_v24 }
 0x8c3   : > { %1578 = vmatpush.msk.msrb.mxu0 %vm1102_vm14, %v1303_v26 }
 0x8ca   : > { %1579 = vmatmul.msk.f32.vlgmr.msrb.gmra.mxu0 %vm1085_vm13, %v1301_v28 }
 0x8cf   : > { %v1122_v29 = vpop.f32.mrf.mxu1 }
 0x92f   : > { %v1258_v30 = vpop.f32.mrf.mxu1 }
 0x930   : > { %1334 = vrot.lane.b32.xlu2 %v1258_v30, %s2152_s30 }
 0x93f   : > { %v1190_v31 = vpop.f32.mrf.mxu0 }
 0x940   : > { %1330 = vrot.lane.b32.xlu1 %v1190_v31, %s2153_s20 }
 0x947   : > { %v1326_v32 = vpop.f32.mrf.mxu0 }
 0x948   : > { %1338 = vrot.lane.b32.xlu0 %v1326_v32, %s2154_s28 }
 0x98a   : > { %v1335_v39 = vpop.permute.xlu2 %1334 }
 0x9b2   : > { %v1331_v37 = vpop.permute.xlu1 %1330 }
 0x9b3   : > { %v1341_v38 = vsel %vm652_vm5, %v1122_v29, %v1331_v37 }
 0x9b4   : > { %v1342_v41 = vsel %vm930_vm7, %v1341_v38, %v1335_v39 }
 0x9ba   : > { %v1339_v40 = vpop.permute.xlu0 %1338 }
 0x9bb   : > { %v1343_v42 = vsel %vm932_vm8, %v1342_v41, %v1339_v40 }
 0x9bc   : > { %1580 = vmatmul.msk.f32.vlgmr.msrb.gmra.mxu2 %vm584_vm0, %v1343_v42 }
 0xa3f   : > { %v1368_v44 = vpop.f32.mrf.mxu2 }
 0xa40   : > { %v1371_v46 = vadd.f32 %v1368_v44, %v1920_v57  ;;  %v1407_v57 = vld [vmem:[%s2121_s14 + $0x10] sm:$0xff] }
 0xa41   : > { %1429 = vmatpush.msrb.mxu1 %v1407_v57 }
 0xa42   : > { %v2040_v48 = vadd.f32 %v1618_v43, %v1371_v46 }
 0xa43   : > { %1430 = vmatpush.msrb.mxu1 %v1406_v54 }
 0xa44   : > { %v1379_v49 = vsel %vm584_vm0, %v2040_v48, 0.0 }
 0xa45   : > { %1380 = vadd.xlane.f32.xlu1 %v1379_v49  ;;  %1431 = vmatpush.msrb.mxu1 %v1405_v55 }
 0xab8   : > { %v1381_v50 = vpop.xlane.xlu1 %1380 }
 0xab9   : > { %v1382_v51 = vmul.f32 %v1381_v50, %v1824_v8 }
 0xabb   : > { %v1383_v45 = vsub.f32 %v2040_v48, %v1382_v51 }
 0xabd   : > { %v1384_v52 = vmul.f32 %v1383_v45, %v1383_v45 }
 0xabf   : > { %v1385_v47 = vsel %vm584_vm0, %v1384_v52, 0.0 }
 0xac0   : > { %1386 = vadd.xlane.f32.xlu2 %v1385_v47 }
 0xb33   : > { %v1387_v60 = vpop.xlane.xlu2 %1386 }
 0xb34   : > { %v1388_v0 = vmul.f32 %v1387_v60, %v1824_v8 }
 0xb36   : > { %v1389_v62 = vadd.f32 1e-05, %v1388_v0 }
 0xb38   : > { %1661 = vrsqrt.f32 %v1389_v62  ;;  %vm1396_vm1 = vweird.f32 %v1389_v62 }
 0xb3e   : > { %v1662_v1 = vpop.eup %1661 }
 0xb3f   : > { %v1391_v2 = vmul.f32 %v1662_v1, %v1389_v62  ;;  %vm1397_vm15 = vweird.f32 %v1662_v1 }
 0xb40   : > { %vm1398_vm2 = vmor %vm1396_vm1, %vm1397_vm15 }
 0xb41   : > { %v1392_v3 = vmul.f32 %v1662_v1, %v1391_v2 }
 0xb43   : > { %v1393_v4 = vmul.f32 0.5, %v1392_v3 }
 0xb45   : > { %v1394_v5 = vsub.f32 1.5, %v1393_v4 }
 0xb47   : > { %v1395_v8 = vmul.f32 %v1662_v1, %v1394_v5 }
 0xb49   : > { %v1399_v7 = vsel %vm1398_vm2, %v1662_v1, %v1395_v8 }
 0xb4a   : > { %v1400_v9 = vmul.f32 %v1399_v7, %v1383_v45 }
 0xb4c   : > { %v1402_v11 = vmul.f32 %v1619_v6, %v1400_v9 }
 0xb4e   : > { %v1404_v12 = vadd.f32 %v1620_v10, %v1402_v11 }
 0xb50   : > { %1581 = vmatmul.msk.f32.vlgmr.msrb.gmra.mxu1 %vm584_vm0, %v1404_v12 }
 0xbcd   : > { %v1433_v17 = vpop.f32.mrf.mxu1 }
 0xbce   : > { %v1434_v18 = vadd.f32 %v1621_v16, %v1433_v17 }
 0xbd0   : > { %v1436_v19 = vmax.f32 %v1434_v18, 0.0 }
 0xbd2   : > { %1582 = vmatmul.msk.f32.vlgmr.msra.gmra.mxu3 %vm1449_vm3, %v1436_v19 }
 0xc55   : > { %v1470_v21 = vpop.f32.mrf.mxu3 }
 0xc56   : > { %v1471_v22 = vadd.f32 %v1622_v20, %v1470_v21 }
 0xc58   : > { %v1473_v23 = vadd.f32 %v1471_v22, %v2040_v48 }
 0xc5a   : > { %1474 = vst.msk [vmem:[%s569_s19] sm:$0xff] %vm584_vm0, %v1473_v23 }
 0xc5b PF: > { %s36_s0 = sadd.s32 1, %s1683_s0  }
 0xc5c   : > { %p33_p4 = scmp.ge.s32.totalorder %s36_s0, 4  }
 0xc5e   :  { %35 = sbr.rel (!%p33_p4) target bundleno = 17 (0x11), region = 121 }

</bundles_post_ra>
